<compile_context>
chip_gen: v7x
topology: tpu7x:2x2x1
jax: 0.10.0
libtpu: 0.0.40
codegen_flags: <defaults>
</compile_context>

<pallas_src>
import functools

import jax
import jax.numpy as jnp
from jax.experimental import pallas as pl


# ----------------------------- Pallas kernels -----------------------------

def layer_kernel(adj_ref, bc_ref, br_ref, x_ref, sprev_ref, mpc_ref, mpr_ref,
                 xgprev_ref, w_ref, b_ref, wsr_ref, bs_ref,
                 h_ref, s_ref, mc_ref, mr_ref, xg_ref,
                 *, num_graphs, ratio, apply_gate):
    """One fused SAGPool block: gate(prev) -> GCNConv+ReLU -> score GCNConv
    -> per-graph top-k keep mask -> gated global max/mean pooling readout."""
    n = adj_ref.shape[0]
    adj = adj_ref[...]
    x = x_ref[...]
    mpc = mpc_ref[...]                                      # (N,1) prev keep-mask
    mpr = mpr_ref[...]                                      # (1,N)

    if apply_gate:                                          # layers 2/3 only
        x = x * jnp.tanh(sprev_ref[...]) * mpc              # SAGPool node gate
        adj = adj * mpc * mpr                               # drop edges to removed nodes

    # --- GCNConv: relu(D^-1/2 (A+I) D^-1/2 X W + b), factored normalisation ---
    row = jax.lax.broadcasted_iota(jnp.int32, (n, n), 0)
    col = jax.lax.broadcasted_iota(jnp.int32, (n, n), 1)
    eye = row == col
    a_sl = adj + jnp.where(eye, 1.0, 0.0)                   # A + I
    d = jax.lax.rsqrt(jnp.sum(a_sl, axis=1, keepdims=True))  # (N,1); symmetric A

    xw = jnp.dot(x, w_ref[...], preferred_element_type=jnp.float32)
    h = d * jnp.dot(a_sl, d * xw, preferred_element_type=jnp.float32) + b_ref[...]
    h = jnp.maximum(h, 0.0)
    h_ref[...] = h

    # --- SAGPool score head: GCNConv(h) -> 1; H->1 projection on the VPU ---
    hw = jnp.sum(h * wsr_ref[...], axis=-1, keepdims=True)   # (N,1)
    s = d * jnp.dot(a_sl, d * hw, preferred_element_type=jnp.float32) + bs_ref[...]
    s_ref[...] = s

    # --- per-graph top-k keep mask, k = ceil(ratio * n_active) ---
    bc = bc_ref[...]                                        # (N,1) int32 graph id
    br = br_ref[...]                                        # (1,N) int32 graph id
    same = jnp.where(bc == br, 1.0, 0.0)                    # (N,N) same-graph
    # score on the lane axis WITHOUT a transpose: sublane-reduce diag(score)
    s_lane = jnp.sum(jnp.where(eye, s, 0.0), axis=0, keepdims=True)   # (1,N)

    # column layout: ranked node on sublanes, peers on lanes
    beat_c = jnp.where((s_lane > s) | ((s_lane == s) & (col < row)), 1.0, 0.0)
    act_c = same * mpr
    rank_c = jnp.sum(act_c * beat_c, axis=1, keepdims=True)            # (N,1)
    k_c = jnp.ceil(ratio * jnp.sum(act_c, axis=1, keepdims=True))
    keep_c = mpc * jnp.where(rank_c < k_c, 1.0, 0.0)                   # (N,1)

    # row layout: same mask, lane orientation (avoids any in-kernel transpose)
    beat_r = jnp.where((s > s_lane) | ((s == s_lane) & (row < col)), 1.0, 0.0)
    act_r = same * mpc
    rank_r = jnp.sum(act_r * beat_r, axis=0, keepdims=True)            # (1,N)
    k_r = jnp.ceil(ratio * jnp.sum(act_r, axis=0, keepdims=True))
    keep_r = mpr * jnp.where(rank_r < k_r, 1.0, 0.0)                   # (1,N)

    mc_ref[...] = keep_c
    mr_ref[...] = keep_r

    # --- readout: SAGPool gate + global max / mean pooling over kept nodes ---
    gated = h * jnp.tanh(s)                                 # (N,H); masked via memb
    nh = gated.shape[1]

    gid_row = jax.lax.broadcasted_iota(jnp.int32, (num_graphs, n), 0)
    memb = jnp.where(gid_row == br, 1.0, 0.0) * keep_r      # (B,N) kept-node memb.
    cnt = jnp.sum(memb, axis=1, keepdims=True)              # (B,1)
    inv_cnt = pl.reciprocal(jnp.maximum(cnt, 1.0), approx=True)        # EUP, guarded
    gap = jnp.dot(memb, gated, preferred_element_type=jnp.float32) * inv_cnt

    gid_col = jax.lax.broadcasted_iota(jnp.int32, (n, num_graphs), 1)
    membT = jnp.where(bc == gid_col, 1.0, 0.0) * keep_c     # (N,B)
    gsel = jax.lax.broadcasted_iota(jnp.int32, (num_graphs, nh), 0)
    gmp = jnp.zeros((num_graphs, nh), jnp.float32)
    for g in range(num_graphs):                             # static & tiny
        keep_g = membT[:, g:g + 1] > 0.5                    # (N,1)
        mx = jnp.max(jnp.where(keep_g, gated, -jnp.inf), axis=0, keepdims=True)
        gmp = jnp.where(gsel == g, mx, gmp)                 # place into row g
    gmp = jnp.where(cnt > 0.5, gmp, 0.0)                    # guard empty graphs

    # accumulate the running readout (x1 + x2 + x3) in-kernel, one dense store
    xg_ref[...] = xgprev_ref[...] + jnp.concatenate([gmp, gap], axis=1)


def heads_kernel(xg_ref, w1_ref, b1_ref, w2_ref, b2_ref, o_ref, *, num_tasks):
    """All task heads fused: Linear -> ReLU -> Linear -> log_softmax."""
    xg = xg_ref[...]
    for t in range(num_tasks):                              # static, tiny
        hid = jnp.dot(xg, w1_ref[t], preferred_element_type=jnp.float32) + b1_ref[t]
        hid = jnp.maximum(hid, 0.0)
        logits = jnp.dot(hid, w2_ref[t], preferred_element_type=jnp.float32) + b2_ref[t]
        z = logits - jnp.max(logits, axis=-1, keepdims=True)
        o_ref[t] = z - jnp.log(jnp.sum(jnp.exp(z), axis=-1, keepdims=True))


# ------------------------------ call helper --------------------------------

def run_kernel(kernel, args, out_shapes):
    """Whole-array (no-grid) pallas_call: every operand lives in one VMEM tile."""
    single = not isinstance(out_shapes, (list, tuple))
    outs = [out_shapes] if single else list(out_shapes)
    res = pl.pallas_call(kernel, out_shape=outs)(*args)
    return res[0] if single else res


# ------------------------------- forward ------------------------------------

def net_forward(x, adj, batch, params, *, num_graphs, ratio, num_tasks):
    n = x.shape[0]
    nhid = params["conv1_w"].shape[1]

    bi = batch.astype(jnp.int32)
    batch_col = bi[:, None]                                 # (N,1)
    batch_row = bi[None, :]                                 # (1,N)

    h = x
    sprev = jnp.zeros((n, 1), jnp.float32)                  # unused by layer 1
    mcol = jnp.ones((n, 1), jnp.float32)
    mrow = jnp.ones((1, n), jnp.float32)
    xg = jnp.zeros((num_graphs, 2 * nhid), jnp.float32)

    for layer in (1, 2, 3):
        w, b = params[f"conv{layer}_w"], params[f"conv{layer}_b"]
        wsr = params[f"score{layer}_w"].reshape(1, nhid)    # (1,H) row vector
        bs = params[f"score{layer}_b"]
        out_sd = [jax.ShapeDtypeStruct((n, nhid), jnp.float32),          # h
                  jax.ShapeDtypeStruct((n, 1), jnp.float32),             # score
                  jax.ShapeDtypeStruct((n, 1), jnp.float32),             # mask col
                  jax.ShapeDtypeStruct((1, n), jnp.float32),             # mask row
                  jax.ShapeDtypeStruct((num_graphs, 2 * nhid), jnp.float32)]  # xg
        kern = functools.partial(layer_kernel, num_graphs=num_graphs,
                                 ratio=ratio, apply_gate=(layer > 1))
        h, sprev, mcol, mrow, xg = run_kernel(
            kern,
            (adj, batch_col, batch_row, h, sprev, mcol, mrow, xg, w, b, wsr, bs),
            out_sd)

    # all task heads in a single pallas_call over stacked weights -> (T,B,C)
    w1 = jnp.stack([params[f"task{t}_w1"] for t in range(num_tasks)])
    b1 = jnp.stack([params[f"task{t}_b1"] for t in range(num_tasks)])
    w2 = jnp.stack([params[f"task{t}_w2"] for t in range(num_tasks)])
    b2 = jnp.stack([params[f"task{t}_b2"] for t in range(num_tasks)])
    ncls = w2.shape[-1]
    out_tbc = run_kernel(
        functools.partial(heads_kernel, num_tasks=num_tasks),
        (xg, w1, b1, w2, b2),
        jax.ShapeDtypeStruct((num_tasks, num_graphs, ncls), jnp.float32))
    return jnp.transpose(out_tbc, (1, 2, 0))                # (B,C,T) = stack(dim=-1)


# ---------------------------------- main ------------------------------------

if __name__ == "__main__":
    N_PER, B = 8, 2
    N = N_PER * B
    F_IN, NHID, NCLASS, NTASKS = 8, 32, 3, 2
    RATIO = 0.5  # pooling_ratio; dropout_ratio unused (forward has no dropout)

    keys = jax.random.split(jax.random.PRNGKey(0), 32)
    kit = iter(keys[1:])

    x = jax.random.normal(keys[0], (N, F_IN), jnp.float32)
    batch = jnp.concatenate([jnp.zeros(N_PER, jnp.int32), jnp.ones(N_PER, jnp.int32)])

    # two disjoint ring graphs -> dense symmetric adjacency
    adj = jnp.zeros((N, N), jnp.float32)
    for g in range(B):
        off = g * N_PER
        for i in range(N_PER):
            a, c = off + i, off + (i + 1) % N_PER
            adj = adj.at[a, c].set(1.0).at[c, a].set(1.0)

    def init(shape):
        return 0.1 * jax.random.normal(next(kit), shape, jnp.float32)

    params = {
        "conv1_w": init((F_IN, NHID)), "conv1_b": init((1, NHID)),
        "score1_w": init((NHID, 1)),   "score1_b": init((1, 1)),
        "conv2_w": init((NHID, NHID)), "conv2_b": init((1, NHID)),
        "score2_w": init((NHID, 1)),   "score2_b": init((1, 1)),
        "conv3_w": init((NHID, NHID)), "conv3_b": init((1, NHID)),
        "score3_w": init((NHID, 1)),   "score3_b": init((1, 1)),
    }
    for t in range(NTASKS):
        params[f"task{t}_w1"] = init((2 * NHID, NHID))
        params[f"task{t}_b1"] = init((1, NHID))
        params[f"task{t}_w2"] = init((NHID, NCLASS))
        params[f"task{t}_b2"] = init((1, NCLASS))

    forward = jax.jit(functools.partial(
        net_forward, num_graphs=B, ratio=RATIO, num_tasks=NTASKS))
    out = jax.block_until_ready(forward(x, adj, batch, params))

    assert out.shape == (B, NCLASS, NTASKS), out.shape
    assert bool(jnp.all(jnp.isfinite(out)))
    # log_softmax rows must sum to ~1 in prob space
    assert bool(jnp.all(jnp.abs(jnp.sum(jnp.exp(out), axis=1) - 1.0) < 1e-4))
    print("KERNEL_OK")
</pallas_src>

<mosaic_0001>
module attributes {stable_mosaic.version = 11 : i64} {
  func.func @layer_kernel(%arg0: memref<16x16xf32, #tpu.memory_space<vmem>>, %arg1: memref<16x1xi32, #tpu.memory_space<vmem>>, %arg2: memref<1x16xi32, #tpu.memory_space<vmem>>, %arg3: memref<16x32xf32, #tpu.memory_space<vmem>>, %arg4: memref<16x1xf32, #tpu.memory_space<vmem>>, %arg5: memref<16x1xf32, #tpu.memory_space<vmem>>, %arg6: memref<1x16xf32, #tpu.memory_space<vmem>>, %arg7: memref<2x64xf32, #tpu.memory_space<vmem>>, %arg8: memref<32x32xf32, #tpu.memory_space<vmem>>, %arg9: memref<1x32xf32, #tpu.memory_space<vmem>>, %arg10: memref<1x32xf32, #tpu.memory_space<vmem>>, %arg11: memref<1x1xf32, #tpu.memory_space<vmem>>, %arg12: memref<16x32xf32, #tpu.memory_space<vmem>>, %arg13: memref<16x1xf32, #tpu.memory_space<vmem>>, %arg14: memref<16x1xf32, #tpu.memory_space<vmem>>, %arg15: memref<1x16xf32, #tpu.memory_space<vmem>>, %arg16: memref<2x64xf32, #tpu.memory_space<vmem>>) attributes {dimension_semantics = [], scalar_prefetch = 0 : i64, scratch_operands = 0 : i64, tpu.core_type = #tpu.core_type<tc>} {
    %c0 = arith.constant 0 : index
    %c0_0 = arith.constant 0 : index
    %0 = vector.load %arg0[%c0, %c0_0] : memref<16x16xf32, #tpu.memory_space<vmem>>, vector<16x16xf32>
    %c0_1 = arith.constant 0 : index
    %c0_2 = arith.constant 0 : index
    %1 = vector.load %arg3[%c0_1, %c0_2] : memref<16x32xf32, #tpu.memory_space<vmem>>, vector<16x32xf32>
    %c0_3 = arith.constant 0 : index
    %c0_4 = arith.constant 0 : index
    %2 = vector.load %arg5[%c0_3, %c0_4] : memref<16x1xf32, #tpu.memory_space<vmem>>, vector<16x1xf32>
    %c0_5 = arith.constant 0 : index
    %c0_6 = arith.constant 0 : index
    %3 = vector.load %arg6[%c0_5, %c0_6] : memref<1x16xf32, #tpu.memory_space<vmem>>, vector<1x16xf32>
    %c0_7 = arith.constant 0 : index
    %c0_8 = arith.constant 0 : index
    %4 = vector.load %arg4[%c0_7, %c0_8] : memref<16x1xf32, #tpu.memory_space<vmem>>, vector<16x1xf32>
    %5 = math.tanh %4 : vector<16x1xf32>
    %6 = vector.broadcast %5 : vector<16x1xf32> to vector<16x32xf32>
    %7 = arith.mulf %1, %6 : vector<16x32xf32>
    %8 = vector.broadcast %2 : vector<16x1xf32> to vector<16x32xf32>
    %9 = arith.mulf %7, %8 : vector<16x32xf32>
    %10 = vector.broadcast %2 : vector<16x1xf32> to vector<16x16xf32>
    %11 = arith.mulf %0, %10 : vector<16x16xf32>
    %12 = vector.broadcast %3 : vector<1x16xf32> to vector<16x16xf32>
    %13 = arith.mulf %11, %12 : vector<16x16xf32>
    %14 = tpu.iota {dimensions = array<i32: 0>} : vector<16x16xi32>
    %15 = tpu.iota {dimensions = array<i32: 1>} : vector<16x16xi32>
    %16 = arith.cmpi eq, %14, %15 : vector<16x16xi32>
    %cst = arith.constant 1.000000e+00 : f32
    %cst_9 = arith.constant 0.000000e+00 : f32
    %17 = vector.broadcast %cst : f32 to vector<16x16xf32>
    %18 = vector.broadcast %cst_9 : f32 to vector<16x16xf32>
    %19 = arith.select %16, %17, %18 : vector<16x16xi1>, vector<16x16xf32>
    %20 = arith.addf %13, %19 : vector<16x16xf32>
    %cst_10 = arith.constant dense<0.000000e+00> : vector<16xf32>
    %21 = vector.multi_reduction <add>, %20, %cst_10 [1] : vector<16x16xf32> to vector<16xf32>
    %22 = vector.shape_cast %21 : vector<16xf32> to vector<16x1xf32>
    %23 = math.rsqrt %22 : vector<16x1xf32>
    %c0_11 = arith.constant 0 : index
    %c0_12 = arith.constant 0 : index
    %24 = vector.load %arg8[%c0_11, %c0_12] : memref<32x32xf32, #tpu.memory_space<vmem>>, vector<32x32xf32>
    %cst_13 = arith.constant dense<0.000000e+00> : vector<16x32xf32>
    %25 = tpu.matmul %9, %24, %cst_13 {dimension_numbers = #tpu.dot_dimension_numbers<[1], [0], [0], [1], [0, 0, 1, 1], [], []>} : vector<16x32xf32>, vector<32x32xf32>, vector<16x32xf32> -> vector<16x32xf32>
    %26 = vector.broadcast %23 : vector<16x1xf32> to vector<16x32xf32>
    %27 = arith.mulf %26, %25 : vector<16x32xf32>
    %cst_14 = arith.constant dense<0.000000e+00> : vector<16x32xf32>
    %28 = tpu.matmul %20, %27, %cst_14 {dimension_numbers = #tpu.dot_dimension_numbers<[1], [0], [0], [1], [0, 0, 1, 1], [], []>} : vector<16x16xf32>, vector<16x32xf32>, vector<16x32xf32> -> vector<16x32xf32>
    %29 = vector.broadcast %23 : vector<16x1xf32> to vector<16x32xf32>
    %30 = arith.mulf %29, %28 : vector<16x32xf32>
    %c0_15 = arith.constant 0 : index
    %c0_16 = arith.constant 0 : index
    %31 = vector.load %arg9[%c0_15, %c0_16] : memref<1x32xf32, #tpu.memory_space<vmem>>, vector<1x32xf32>
    %32 = vector.broadcast %31 : vector<1x32xf32> to vector<16x32xf32>
    %33 = arith.addf %30, %32 : vector<16x32xf32>
    %cst_17 = arith.constant 0.000000e+00 : f32
    %34 = vector.broadcast %cst_17 : f32 to vector<16x32xf32>
    %35 = arith.maximumf %33, %34 : vector<16x32xf32>
    %c0_18 = arith.constant 0 : index
    %c0_19 = arith.constant 0 : index
    %36 = vector.load %arg12[%c0_18, %c0_19] : memref<16x32xf32, #tpu.memory_space<vmem>>, vector<16x32xf32>
    tpu.vector_store %arg12[%c0_18, %c0_19], %35 {strides = array<i32>} : memref<16x32xf32, #tpu.memory_space<vmem>>, vector<16x32xf32>,
    %c0_20 = arith.constant 0 : index
    %c0_21 = arith.constant 0 : index
    %37 = vector.load %arg10[%c0_20, %c0_21] : memref<1x32xf32, #tpu.memory_space<vmem>>, vector<1x32xf32>
    %38 = vector.broadcast %37 : vector<1x32xf32> to vector<16x32xf32>
    %39 = arith.mulf %35, %38 : vector<16x32xf32>
    %cst_22 = arith.constant dense<0.000000e+00> : vector<16xf32>
    %40 = vector.multi_reduction <add>, %39, %cst_22 [1] : vector<16x32xf32> to vector<16xf32>
    %41 = vector.shape_cast %40 : vector<16xf32> to vector<16x1xf32>
    %42 = arith.mulf %23, %41 : vector<16x1xf32>
    %cst_23 = arith.constant dense<0.000000e+00> : vector<16x1xf32>
    %43 = tpu.matmul %20, %42, %cst_23 {dimension_numbers = #tpu.dot_dimension_numbers<[1], [0], [0], [1], [0, 0, 1, 1], [], []>} : vector<16x16xf32>, vector<16x1xf32>, vector<16x1xf32> -> vector<16x1xf32>
    %44 = arith.mulf %23, %43 : vector<16x1xf32>
    %c0_24 = arith.constant 0 : index
    %c0_25 = arith.constant 0 : index
    %45 = vector.load %arg11[%c0_24, %c0_25] : memref<1x1xf32, #tpu.memory_space<vmem>>, vector<1x1xf32>
    %46 = vector.broadcast %45 : vector<1x1xf32> to vector<16x1xf32>
    %47 = arith.addf %44, %46 : vector<16x1xf32>
    %c0_26 = arith.constant 0 : index
    %c0_27 = arith.constant 0 : index
    %48 = vector.load %arg13[%c0_26, %c0_27] : memref<16x1xf32, #tpu.memory_space<vmem>>, vector<16x1xf32>
    tpu.vector_store %arg13[%c0_26, %c0_27], %47 {strides = array<i32>} : memref<16x1xf32, #tpu.memory_space<vmem>>, vector<16x1xf32>,
    %c0_28 = arith.constant 0 : index
    %c0_29 = arith.constant 0 : index
    %49 = vector.load %arg1[%c0_28, %c0_29] : memref<16x1xi32, #tpu.memory_space<vmem>>, vector<16x1xi32>
    %c0_30 = arith.constant 0 : index
    %c0_31 = arith.constant 0 : index
    %50 = vector.load %arg2[%c0_30, %c0_31] : memref<1x16xi32, #tpu.memory_space<vmem>>, vector<1x16xi32>
    %51 = vector.broadcast %49 : vector<16x1xi32> to vector<16x16xi32>
    %52 = vector.broadcast %50 : vector<1x16xi32> to vector<16x16xi32>
    %53 = arith.cmpi eq, %51, %52 : vector<16x16xi32>
    %cst_32 = arith.constant 1.000000e+00 : f32
    %cst_33 = arith.constant 0.000000e+00 : f32
    %54 = vector.broadcast %cst_32 : f32 to vector<16x16xf32>
    %55 = vector.broadcast %cst_33 : f32 to vector<16x16xf32>
    %56 = arith.select %53, %54, %55 : vector<16x16xi1>, vector<16x16xf32>
    %cst_34 = arith.constant 0.000000e+00 : f32
    %57 = vector.shape_cast %47 : vector<16x1xf32> to vector<16x1xf32>
    %58 = vector.broadcast %57 : vector<16x1xf32> to vector<16x16xf32>
    %59 = vector.broadcast %cst_34 : f32 to vector<16x16xf32>
    %60 = arith.select %16, %58, %59 : vector<16x16xi1>, vector<16x16xf32>
    %cst_35 = arith.constant dense<0.000000e+00> : vector<16xf32>
    %61 = vector.multi_reduction <add>, %60, %cst_35 [0] : vector<16x16xf32> to vector<16xf32>
    %62 = vector.shape_cast %61 : vector<16xf32> to vector<1x16xf32>
    %63 = vector.broadcast %62 : vector<1x16xf32> to vector<16x16xf32>
    %64 = vector.broadcast %47 : vector<16x1xf32> to vector<16x16xf32>
    %65 = arith.cmpf ogt, %63, %64 : vector<16x16xf32>
    %66 = vector.broadcast %62 : vector<1x16xf32> to vector<16x16xf32>
    %67 = vector.broadcast %47 : vector<16x1xf32> to vector<16x16xf32>
    %68 = arith.cmpf oeq, %66, %67 : vector<16x16xf32>
    %69 = arith.cmpi slt, %15, %14 : vector<16x16xi32>
    %70 = arith.andi %68, %69 : vector<16x16xi1>
    %71 = arith.ori %65, %70 : vector<16x16xi1>
    %cst_36 = arith.constant 1.000000e+00 : f32
    %cst_37 = arith.constant 0.000000e+00 : f32
    %72 = vector.broadcast %cst_36 : f32 to vector<16x16xf32>
    %73 = vector.broadcast %cst_37 : f32 to vector<16x16xf32>
    %74 = arith.select %71, %72, %73 : vector<16x16xi1>, vector<16x16xf32>
    %75 = vector.broadcast %3 : vector<1x16xf32> to vector<16x16xf32>
    %76 = arith.mulf %56, %75 : vector<16x16xf32>
    %77 = arith.mulf %76, %74 : vector<16x16xf32>
    %cst_38 = arith.constant dense<0.000000e+00> : vector<16xf32>
    %78 = vector.multi_reduction <add>, %77, %cst_38 [1] : vector<16x16xf32> to vector<16xf32>
    %79 = vector.shape_cast %78 : vector<16xf32> to vector<16x1xf32>
    %cst_39 = arith.constant dense<0.000000e+00> : vector<16xf32>
    %80 = vector.multi_reduction <add>, %76, %cst_39 [1] : vector<16x16xf32> to vector<16xf32>
    %81 = vector.shape_cast %80 : vector<16xf32> to vector<16x1xf32>
    %cst_40 = arith.constant 5.000000e-01 : f32
    %82 = vector.broadcast %cst_40 : f32 to vector<16x1xf32>
    %83 = arith.mulf %82, %81 : vector<16x1xf32>
    %84 = math.ceil %83 : vector<16x1xf32>
    %85 = arith.cmpf olt, %79, %84 : vector<16x1xf32>
    %cst_41 = arith.constant 1.000000e+00 : f32
    %cst_42 = arith.constant 0.000000e+00 : f32
    %86 = vector.broadcast %cst_41 : f32 to vector<16x1xf32>
    %87 = vector.broadcast %cst_42 : f32 to vector<16x1xf32>
    %88 = arith.select %85, %86, %87 : vector<16x1xi1>, vector<16x1xf32>
    %89 = arith.mulf %2, %88 : vector<16x1xf32>
    %90 = vector.broadcast %47 : vector<16x1xf32> to vector<16x16xf32>
    %91 = vector.broadcast %62 : vector<1x16xf32> to vector<16x16xf32>
    %92 = arith.cmpf ogt, %90, %91 : vector<16x16xf32>
    %93 = vector.broadcast %47 : vector<16x1xf32> to vector<16x16xf32>
    %94 = vector.broadcast %62 : vector<1x16xf32> to vector<16x16xf32>
    %95 = arith.cmpf oeq, %93, %94 : vector<16x16xf32>
    %96 = arith.cmpi slt, %14, %15 : vector<16x16xi32>
    %97 = arith.andi %95, %96 : vector<16x16xi1>
    %98 = arith.ori %92, %97 : vector<16x16xi1>
    %cst_43 = arith.constant 1.000000e+00 : f32
    %cst_44 = arith.constant 0.000000e+00 : f32
    %99 = vector.broadcast %cst_43 : f32 to vector<16x16xf32>
    %100 = vector.broadcast %cst_44 : f32 to vector<16x16xf32>
    %101 = arith.select %98, %99, %100 : vector<16x16xi1>, vector<16x16xf32>
    %102 = vector.broadcast %2 : vector<16x1xf32> to vector<16x16xf32>
    %103 = arith.mulf %56, %102 : vector<16x16xf32>
    %104 = arith.mulf %103, %101 : vector<16x16xf32>
    %cst_45 = arith.constant dense<0.000000e+00> : vector<16xf32>
    %105 = vector.multi_reduction <add>, %104, %cst_45 [0] : vector<16x16xf32> to vector<16xf32>
    %106 = vector.shape_cast %105 : vector<16xf32> to vector<1x16xf32>
    %cst_46 = arith.constant dense<0.000000e+00> : vector<16xf32>
    %107 = vector.multi_reduction <add>, %103, %cst_46 [0] : vector<16x16xf32> to vector<16xf32>
    %108 = vector.shape_cast %107 : vector<16xf32> to vector<1x16xf32>
    %cst_47 = arith.constant 5.000000e-01 : f32
    %109 = vector.broadcast %cst_47 : f32 to vector<1x16xf32>
    %110 = arith.mulf %109, %108 : vector<1x16xf32>
    %111 = math.ceil %110 : vector<1x16xf32>
    %112 = arith.cmpf olt, %106, %111 : vector<1x16xf32>
    %cst_48 = arith.constant 1.000000e+00 : f32
    %cst_49 = arith.constant 0.000000e+00 : f32
    %113 = vector.broadcast %cst_48 : f32 to vector<1x16xf32>
    %114 = vector.broadcast %cst_49 : f32 to vector<1x16xf32>
    %115 = arith.select %112, %113, %114 : vector<1x16xi1>, vector<1x16xf32>
    %116 = arith.mulf %3, %115 : vector<1x16xf32>
    %c0_50 = arith.constant 0 : index
    %c0_51 = arith.constant 0 : index
    %117 = vector.load %arg14[%c0_50, %c0_51] : memref<16x1xf32, #tpu.memory_space<vmem>>, vector<16x1xf32>
    tpu.vector_store %arg14[%c0_50, %c0_51], %89 {strides = array<i32>} : memref<16x1xf32, #tpu.memory_space<vmem>>, vector<16x1xf32>,
    %c0_52 = arith.constant 0 : index
    %c0_53 = arith.constant 0 : index
    %118 = vector.load %arg15[%c0_52, %c0_53] : memref<1x16xf32, #tpu.memory_space<vmem>>, vector<1x16xf32>
    tpu.vector_store %arg15[%c0_52, %c0_53], %116 {strides = array<i32>} : memref<1x16xf32, #tpu.memory_space<vmem>>, vector<1x16xf32>,
    %119 = math.tanh %47 : vector<16x1xf32>
    %120 = vector.broadcast %119 : vector<16x1xf32> to vector<16x32xf32>
    %121 = arith.mulf %35, %120 : vector<16x32xf32>
    %122 = tpu.iota {dimensions = array<i32: 0>} : vector<2x16xi32>
    %123 = vector.broadcast %50 : vector<1x16xi32> to vector<2x16xi32>
    %124 = arith.cmpi eq, %122, %123 : vector<2x16xi32>
    %cst_54 = arith.constant 1.000000e+00 : f32
    %cst_55 = arith.constant 0.000000e+00 : f32
    %125 = vector.broadcast %cst_54 : f32 to vector<2x16xf32>
    %126 = vector.broadcast %cst_55 : f32 to vector<2x16xf32>
    %127 = arith.select %124, %125, %126 : vector<2x16xi1>, vector<2x16xf32>
    %128 = vector.broadcast %116 : vector<1x16xf32> to vector<2x16xf32>
    %129 = arith.mulf %127, %128 : vector<2x16xf32>
    %cst_56 = arith.constant dense<0.000000e+00> : vector<2xf32>
    %130 = vector.multi_reduction <add>, %129, %cst_56 [1] : vector<2x16xf32> to vector<2xf32>
    %131 = vector.shape_cast %130 : vector<2xf32> to vector<2x1xf32>
    %cst_57 = arith.constant 1.000000e+00 : f32
    %132 = vector.broadcast %cst_57 : f32 to vector<2x1xf32>
    %133 = arith.maximumf %131, %132 : vector<2x1xf32>
    %134 = tpu.reciprocal %133 {approx = true} : vector<2x1xf32> -> vector<2x1xf32>
    %cst_58 = arith.constant dense<0.000000e+00> : vector<2x32xf32>
    %135 = tpu.matmul %129, %121, %cst_58 {dimension_numbers = #tpu.dot_dimension_numbers<[1], [0], [0], [1], [0, 0, 1, 1], [], []>} : vector<2x16xf32>, vector<16x32xf32>, vector<2x32xf32> -> vector<2x32xf32>
    %136 = vector.broadcast %134 : vector<2x1xf32> to vector<2x32xf32>
    %137 = arith.mulf %135, %136 : vector<2x32xf32>
    %138 = tpu.iota {dimensions = array<i32: 1>} : vector<16x2xi32>
    %139 = vector.broadcast %49 : vector<16x1xi32> to vector<16x2xi32>
    %140 = arith.cmpi eq, %139, %138 : vector<16x2xi32>
    %cst_59 = arith.constant 1.000000e+00 : f32
    %cst_60 = arith.constant 0.000000e+00 : f32
    %141 = vector.broadcast %cst_59 : f32 to vector<16x2xf32>
    %142 = vector.broadcast %cst_60 : f32 to vector<16x2xf32>
    %143 = arith.select %140, %141, %142 : vector<16x2xi1>, vector<16x2xf32>
    %144 = vector.broadcast %89 : vector<16x1xf32> to vector<16x2xf32>
    %145 = arith.mulf %143, %144 : vector<16x2xf32>
    %146 = tpu.iota {dimensions = array<i32: 0>} : vector<2x32xi32>
    %cst_61 = arith.constant 0.000000e+00 : f32
    %147 = vector.broadcast %cst_61 : f32 to vector<2x32xf32>
    %148 = vector.extract_strided_slice %145 {offsets = [0, 0], sizes = [16, 1], strides = [1, 1]} : vector<16x2xf32> to vector<16x1xf32>
    %cst_62 = arith.constant 5.000000e-01 : f32
    %149 = vector.broadcast %cst_62 : f32 to vector<16x1xf32>
    %150 = arith.cmpf ogt, %148, %149 : vector<16x1xf32>
    %cst_63 = arith.constant 0xFF800000 : f32
    %151 = vector.shape_cast %150 : vector<16x1xi1> to vector<16x1xi1>
    %152 = vector.broadcast %151 : vector<16x1xi1> to vector<16x32xi1>
    %153 = vector.broadcast %cst_63 : f32 to vector<16x32xf32>
    %154 = arith.select %152, %121, %153 : vector<16x32xi1>, vector<16x32xf32>
    %cst_64 = arith.constant dense<0xFF800000> : vector<32xf32>
    %155 = vector.multi_reduction <maximumf>, %154, %cst_64 [0] : vector<16x32xf32> to vector<32xf32>
    %156 = vector.shape_cast %155 : vector<32xf32> to vector<1x32xf32>
    %c0_i32 = arith.constant 0 : i32
    %157 = vector.broadcast %c0_i32 : i32 to vector<2x32xi32>
    %158 = arith.cmpi eq, %146, %157 : vector<2x32xi32>
    %159 = vector.shape_cast %156 : vector<1x32xf32> to vector<1x32xf32>
    %160 = vector.broadcast %159 : vector<1x32xf32> to vector<2x32xf32>
    %161 = arith.select %158, %160, %147 : vector<2x32xi1>, vector<2x32xf32>
    %162 = vector.extract_strided_slice %145 {offsets = [0, 1], sizes = [16, 1], strides = [1, 1]} : vector<16x2xf32> to vector<16x1xf32>
    %cst_65 = arith.constant 5.000000e-01 : f32
    %163 = vector.broadcast %cst_65 : f32 to vector<16x1xf32>
    %164 = arith.cmpf ogt, %162, %163 : vector<16x1xf32>
    %cst_66 = arith.constant 0xFF800000 : f32
    %165 = vector.shape_cast %164 : vector<16x1xi1> to vector<16x1xi1>
    %166 = vector.broadcast %165 : vector<16x1xi1> to vector<16x32xi1>
    %167 = vector.broadcast %cst_66 : f32 to vector<16x32xf32>
    %168 = arith.select %166, %121, %167 : vector<16x32xi1>, vector<16x32xf32>
    %cst_67 = arith.constant dense<0xFF800000> : vector<32xf32>
    %169 = vector.multi_reduction <maximumf>, %168, %cst_67 [0] : vector<16x32xf32> to vector<32xf32>
    %170 = vector.shape_cast %169 : vector<32xf32> to vector<1x32xf32>
    %c1_i32 = arith.constant 1 : i32
    %171 = vector.broadcast %c1_i32 : i32 to vector<2x32xi32>
    %172 = arith.cmpi eq, %146, %171 : vector<2x32xi32>
    %173 = vector.shape_cast %170 : vector<1x32xf32> to vector<1x32xf32>
    %174 = vector.broadcast %173 : vector<1x32xf32> to vector<2x32xf32>
    %175 = arith.select %172, %174, %161 : vector<2x32xi1>, vector<2x32xf32>
    %cst_68 = arith.constant 5.000000e-01 : f32
    %176 = vector.broadcast %cst_68 : f32 to vector<2x1xf32>
    %177 = arith.cmpf ogt, %131, %176 : vector<2x1xf32>
    %cst_69 = arith.constant 0.000000e+00 : f32
    %178 = vector.shape_cast %177 : vector<2x1xi1> to vector<2x1xi1>
    %179 = vector.broadcast %178 : vector<2x1xi1> to vector<2x32xi1>
    %180 = vector.broadcast %cst_69 : f32 to vector<2x32xf32>
    %181 = arith.select %179, %175, %180 : vector<2x32xi1>, vector<2x32xf32>
    %c0_70 = arith.constant 0 : index
    %c0_71 = arith.constant 0 : index
    %182 = vector.load %arg7[%c0_70, %c0_71] : memref<2x64xf32, #tpu.memory_space<vmem>>, vector<2x64xf32>
    %183 = tpu.concatenate %181, %137 in 1 : vector<2x32xf32>, vector<2x32xf32> -> vector<2x64xf32>
    %184 = arith.addf %182, %183 : vector<2x64xf32>
    %c0_72 = arith.constant 0 : index
    %c0_73 = arith.constant 0 : index
    %185 = vector.load %arg16[%c0_72, %c0_73] : memref<2x64xf32, #tpu.memory_space<vmem>>, vector<2x64xf32>
    tpu.vector_store %arg16[%c0_72, %c0_73], %184 {strides = array<i32>} : memref<2x64xf32, #tpu.memory_space<vmem>>, vector<2x64xf32>,
    return
  }
}

module attributes {stable_mosaic.version = 11 : i64} {
  func.func @layer_kernel(%arg0: memref<16x16xf32, #tpu.memory_space<vmem>>, %arg1: memref<16x1xi32, #tpu.memory_space<vmem>>, %arg2: memref<1x16xi32, #tpu.memory_space<vmem>>, %arg3: memref<16x32xf32, #tpu.memory_space<vmem>>, %arg4: memref<16x1xf32, #tpu.memory_space<vmem>>, %arg5: memref<16x1xf32, #tpu.memory_space<vmem>>, %arg6: memref<1x16xf32, #tpu.memory_space<vmem>>, %arg7: memref<2x64xf32, #tpu.memory_space<vmem>>, %arg8: memref<32x32xf32, #tpu.memory_space<vmem>>, %arg9: memref<1x32xf32, #tpu.memory_space<vmem>>, %arg10: memref<1x32xf32, #tpu.memory_space<vmem>>, %arg11: memref<1x1xf32, #tpu.memory_space<vmem>>, %arg12: memref<16x32xf32, #tpu.memory_space<vmem>>, %arg13: memref<16x1xf32, #tpu.memory_space<vmem>>, %arg14: memref<16x1xf32, #tpu.memory_space<vmem>>, %arg15: memref<1x16xf32, #tpu.memory_space<vmem>>, %arg16: memref<2x64xf32, #tpu.memory_space<vmem>>) attributes {dimension_semantics = [], scalar_prefetch = 0 : i64, scratch_operands = 0 : i64, tpu.core_type = #tpu.core_type<tc>} {
    %c0 = arith.constant 0 : index
    %c0_0 = arith.constant 0 : index
    %0 = vector.load %arg0[%c0, %c0_0] : memref<16x16xf32, #tpu.memory_space<vmem>>, vector<16x16xf32>
    %c0_1 = arith.constant 0 : index
    %c0_2 = arith.constant 0 : index
    %1 = vector.load %arg3[%c0_1, %c0_2] : memref<16x32xf32, #tpu.memory_space<vmem>>, vector<16x32xf32>
    %c0_3 = arith.constant 0 : index
    %c0_4 = arith.constant 0 : index
    %2 = vector.load %arg5[%c0_3, %c0_4] : memref<16x1xf32, #tpu.memory_space<vmem>>, vector<16x1xf32>
    %c0_5 = arith.constant 0 : index
    %c0_6 = arith.constant 0 : index
    %3 = vector.load %arg6[%c0_5, %c0_6] : memref<1x16xf32, #tpu.memory_space<vmem>>, vector<1x16xf32>
    %c0_7 = arith.constant 0 : index
    %c0_8 = arith.constant 0 : index
    %4 = vector.load %arg4[%c0_7, %c0_8] : memref<16x1xf32, #tpu.memory_space<vmem>>, vector<16x1xf32>
    %5 = math.tanh %4 : vector<16x1xf32>
    %6 = vector.broadcast %5 : vector<16x1xf32> to vector<16x32xf32>
    %7 = arith.mulf %1, %6 : vector<16x32xf32>
    %8 = vector.broadcast %2 : vector<16x1xf32> to vector<16x32xf32>
    %9 = arith.mulf %7, %8 : vector<16x32xf32>
    %10 = vector.broadcast %2 : vector<16x1xf32> to vector<16x16xf32>
    %11 = arith.mulf %0, %10 : vector<16x16xf32>
    %12 = vector.broadcast %3 : vector<1x16xf32> to vector<16x16xf32>
    %13 = arith.mulf %11, %12 : vector<16x16xf32>
    %14 = tpu.iota {dimensions = array<i32: 0>} : vector<16x16xi32>
    %15 = tpu.iota {dimensions = array<i32: 1>} : vector<16x16xi32>
    %16 = arith.cmpi eq, %14, %15 : vector<16x16xi32>
    %cst = arith.constant 1.000000e+00 : f32
    %cst_9 = arith.constant 0.000000e+00 : f32
    %17 = vector.broadcast %cst : f32 to vector<16x16xf32>
    %18 = vector.broadcast %cst_9 : f32 to vector<16x16xf32>
    %19 = arith.select %16, %17, %18 : vector<16x16xi1>, vector<16x16xf32>
    %20 = arith.addf %13, %19 : vector<16x16xf32>
    %cst_10 = arith.constant dense<0.000000e+00> : vector<16xf32>
    %21 = vector.multi_reduction <add>, %20, %cst_10 [1] : vector<16x16xf32> to vector<16xf32>
    %22 = vector.shape_cast %21 : vector<16xf32> to vector<16x1xf32>
    %23 = math.rsqrt %22 : vector<16x1xf32>
    %c0_11 = arith.constant 0 : index
    %c0_12 = arith.constant 0 : index
    %24 = vector.load %arg8[%c0_11, %c0_12] : memref<32x32xf32, #tpu.memory_space<vmem>>, vector<32x32xf32>
    %cst_13 = arith.constant dense<0.000000e+00> : vector<16x32xf32>
    %25 = tpu.matmul %9, %24, %cst_13 {dimension_numbers = #tpu.dot_dimension_numbers<[1], [0], [0], [1], [0, 0, 1, 1], [], []>} : vector<16x32xf32>, vector<32x32xf32>, vector<16x32xf32> -> vector<16x32xf32>
    %26 = vector.broadcast %23 : vector<16x1xf32> to vector<16x32xf32>
    %27 = arith.mulf %26, %25 : vector<16x32xf32>
    %cst_14 = arith.constant dense<0.000000e+00> : vector<16x32xf32>
    %28 = tpu.matmul %20, %27, %cst_14 {dimension_numbers = #tpu.dot_dimension_numbers<[1], [0], [0], [1], [0, 0, 1, 1], [], []>} : vector<16x16xf32>, vector<16x32xf32>, vector<16x32xf32> -> vector<16x32xf32>
    %29 = vector.broadcast %23 : vector<16x1xf32> to vector<16x32xf32>
    %30 = arith.mulf %29, %28 : vector<16x32xf32>
    %c0_15 = arith.constant 0 : index
    %c0_16 = arith.constant 0 : index
    %31 = vector.load %arg9[%c0_15, %c0_16] : memref<1x32xf32, #tpu.memory_space<vmem>>, vector<1x32xf32>
    %32 = vector.broadcast %31 : vector<1x32xf32> to vector<16x32xf32>
    %33 = arith.addf %30, %32 : vector<16x32xf32>
    %cst_17 = arith.constant 0.000000e+00 : f32
    %34 = vector.broadcast %cst_17 : f32 to vector<16x32xf32>
    %35 = arith.maximumf %33, %34 : vector<16x32xf32>
    %c0_18 = arith.constant 0 : index
    %c0_19 = arith.constant 0 : index
    %36 = vector.load %arg12[%c0_18, %c0_19] : memref<16x32xf32, #tpu.memory_space<vmem>>, vector<16x32xf32>
    tpu.vector_store %arg12[%c0_18, %c0_19], %35 {strides = array<i32>} : memref<16x32xf32, #tpu.memory_space<vmem>>, vector<16x32xf32>,
    %c0_20 = arith.constant 0 : index
    %c0_21 = arith.constant 0 : index
    %37 = vector.load %arg10[%c0_20, %c0_21] : memref<1x32xf32, #tpu.memory_space<vmem>>, vector<1x32xf32>
    %38 = vector.broadcast %37 : vector<1x32xf32> to vector<16x32xf32>
    %39 = arith.mulf %35, %38 : vector<16x32xf32>
    %cst_22 = arith.constant dense<0.000000e+00> : vector<16xf32>
    %40 = vector.multi_reduction <add>, %39, %cst_22 [1] : vector<16x32xf32> to vector<16xf32>
    %41 = vector.shape_cast %40 : vector<16xf32> to vector<16x1xf32>
    %42 = arith.mulf %23, %41 : vector<16x1xf32>
    %cst_23 = arith.constant dense<0.000000e+00> : vector<16x1xf32>
    %43 = tpu.matmul %20, %42, %cst_23 {dimension_numbers = #tpu.dot_dimension_numbers<[1], [0], [0], [1], [0, 0, 1, 1], [], []>} : vector<16x16xf32>, vector<16x1xf32>, vector<16x1xf32> -> vector<16x1xf32>
    %44 = arith.mulf %23, %43 : vector<16x1xf32>
    %c0_24 = arith.constant 0 : index
    %c0_25 = arith.constant 0 : index
    %45 = vector.load %arg11[%c0_24, %c0_25] : memref<1x1xf32, #tpu.memory_space<vmem>>, vector<1x1xf32>
    %46 = vector.broadcast %45 : vector<1x1xf32> to vector<16x1xf32>
    %47 = arith.addf %44, %46 : vector<16x1xf32>
    %c0_26 = arith.constant 0 : index
    %c0_27 = arith.constant 0 : index
    %48 = vector.load %arg13[%c0_26, %c0_27] : memref<16x1xf32, #tpu.memory_space<vmem>>, vector<16x1xf32>
    tpu.vector_store %arg13[%c0_26, %c0_27], %47 {strides = array<i32>} : memref<16x1xf32, #tpu.memory_space<vmem>>, vector<16x1xf32>,
    %c0_28 = arith.constant 0 : index
    %c0_29 = arith.constant 0 : index
    %49 = vector.load %arg1[%c0_28, %c0_29] : memref<16x1xi32, #tpu.memory_space<vmem>>, vector<16x1xi32>
    %c0_30 = arith.constant 0 : index
    %c0_31 = arith.constant 0 : index
    %50 = vector.load %arg2[%c0_30, %c0_31] : memref<1x16xi32, #tpu.memory_space<vmem>>, vector<1x16xi32>
    %51 = vector.broadcast %49 : vector<16x1xi32> to vector<16x16xi32>
    %52 = vector.broadcast %50 : vector<1x16xi32> to vector<16x16xi32>
    %53 = arith.cmpi eq, %51, %52 : vector<16x16xi32>
    %cst_32 = arith.constant 1.000000e+00 : f32
    %cst_33 = arith.constant 0.000000e+00 : f32
    %54 = vector.broadcast %cst_32 : f32 to vector<16x16xf32>
    %55 = vector.broadcast %cst_33 : f32 to vector<16x16xf32>
    %56 = arith.select %53, %54, %55 : vector<16x16xi1>, vector<16x16xf32>
    %cst_34 = arith.constant 0.000000e+00 : f32
    %57 = vector.shape_cast %47 : vector<16x1xf32> to vector<16x1xf32>
    %58 = vector.broadcast %57 : vector<16x1xf32> to vector<16x16xf32>
    %59 = vector.broadcast %cst_34 : f32 to vector<16x16xf32>
    %60 = arith.select %16, %58, %59 : vector<16x16xi1>, vector<16x16xf32>
    %cst_35 = arith.constant dense<0.000000e+00> : vector<16xf32>
    %61 = vector.multi_reduction <add>, %60, %cst_35 [0] : vector<16x16xf32> to vector<16xf32>
    %62 = vector.shape_cast %61 : vector<16xf32> to vector<1x16xf32>
    %63 = vector.broadcast %62 : vector<1x16xf32> to vector<16x16xf32>
    %64 = vector.broadcast %47 : vector<16x1xf32> to vector<16x16xf32>
    %65 = arith.cmpf ogt, %63, %64 : vector<16x16xf32>
    %66 = vector.broadcast %62 : vector<1x16xf32> to vector<16x16xf32>
    %67 = vector.broadcast %47 : vector<16x1xf32> to vector<16x16xf32>
    %68 = arith.cmpf oeq, %66, %67 : vector<16x16xf32>
    %69 = arith.cmpi slt, %15, %14 : vector<16x16xi32>
    %70 = arith.andi %68, %69 : vector<16x16xi1>
    %71 = arith.ori %65, %70 : vector<16x16xi1>
    %cst_36 = arith.constant 1.000000e+00 : f32
    %cst_37 = arith.constant 0.000000e+00 : f32
    %72 = vector.broadcast %cst_36 : f32 to vector<16x16xf32>
    %73 = vector.broadcast %cst_37 : f32 to vector<16x16xf32>
    %74 = arith.select %71, %72, %73 : vector<16x16xi1>, vector<16x16xf32>
    %75 = vector.broadcast %3 : vector<1x16xf32> to vector<16x16xf32>
    %76 = arith.mulf %56, %75 : vector<16x16xf32>
    %77 = arith.mulf %76, %74 : vector<16x16xf32>
    %cst_38 = arith.constant dense<0.000000e+00> : vector<16xf32>
    %78 = vector.multi_reduction <add>, %77, %cst_38 [1] : vector<16x16xf32> to vector<16xf32>
    %79 = vector.shape_cast %78 : vector<16xf32> to vector<16x1xf32>
    %cst_39 = arith.constant dense<0.000000e+00> : vector<16xf32>
    %80 = vector.multi_reduction <add>, %76, %cst_39 [1] : vector<16x16xf32> to vector<16xf32>
    %81 = vector.shape_cast %80 : vector<16xf32> to vector<16x1xf32>
    %cst_40 = arith.constant 5.000000e-01 : f32
    %82 = vector.broadcast %cst_40 : f32 to vector<16x1xf32>
    %83 = arith.mulf %82, %81 : vector<16x1xf32>
    %84 = math.ceil %83 : vector<16x1xf32>
    %85 = arith.cmpf olt, %79, %84 : vector<16x1xf32>
    %cst_41 = arith.constant 1.000000e+00 : f32
    %cst_42 = arith.constant 0.000000e+00 : f32
    %86 = vector.broadcast %cst_41 : f32 to vector<16x1xf32>
    %87 = vector.broadcast %cst_42 : f32 to vector<16x1xf32>
    %88 = arith.select %85, %86, %87 : vector<16x1xi1>, vector<16x1xf32>
    %89 = arith.mulf %2, %88 : vector<16x1xf32>
    %90 = vector.broadcast %47 : vector<16x1xf32> to vector<16x16xf32>
    %91 = vector.broadcast %62 : vector<1x16xf32> to vector<16x16xf32>
    %92 = arith.cmpf ogt, %90, %91 : vector<16x16xf32>
    %93 = vector.broadcast %47 : vector<16x1xf32> to vector<16x16xf32>
    %94 = vector.broadcast %62 : vector<1x16xf32> to vector<16x16xf32>
    %95 = arith.cmpf oeq, %93, %94 : vector<16x16xf32>
    %96 = arith.cmpi slt, %14, %15 : vector<16x16xi32>
    %97 = arith.andi %95, %96 : vector<16x16xi1>
    %98 = arith.ori %92, %97 : vector<16x16xi1>
    %cst_43 = arith.constant 1.000000e+00 : f32
    %cst_44 = arith.constant 0.000000e+00 : f32
    %99 = vector.broadcast %cst_43 : f32 to vector<16x16xf32>
    %100 = vector.broadcast %cst_44 : f32 to vector<16x16xf32>
    %101 = arith.select %98, %99, %100 : vector<16x16xi1>, vector<16x16xf32>
    %102 = vector.broadcast %2 : vector<16x1xf32> to vector<16x16xf32>
    %103 = arith.mulf %56, %102 : vector<16x16xf32>
    %104 = arith.mulf %103, %101 : vector<16x16xf32>
    %cst_45 = arith.constant dense<0.000000e+00> : vector<16xf32>
    %105 = vector.multi_reduction <add>, %104, %cst_45 [0] : vector<16x16xf32> to vector<16xf32>
    %106 = vector.shape_cast %105 : vector<16xf32> to vector<1x16xf32>
    %cst_46 = arith.constant dense<0.000000e+00> : vector<16xf32>
    %107 = vector.multi_reduction <add>, %103, %cst_46 [0] : vector<16x16xf32> to vector<16xf32>
    %108 = vector.shape_cast %107 : vector<16xf32> to vector<1x16xf32>
    %cst_47 = arith.constant 5.000000e-01 : f32
    %109 = vector.broadcast %cst_47 : f32 to vector<1x16xf32>
    %110 = arith.mulf %109, %108 : vector<1x16xf32>
    %111 = math.ceil %110 : vector<1x16xf32>
    %112 = arith.cmpf olt, %106, %111 : vector<1x16xf32>
    %cst_48 = arith.constant 1.000000e+00 : f32
    %cst_49 = arith.constant 0.000000e+00 : f32
    %113 = vector.broadcast %cst_48 : f32 to vector<1x16xf32>
    %114 = vector.broadcast %cst_49 : f32 to vector<1x16xf32>
    %115 = arith.select %112, %113, %114 : vector<1x16xi1>, vector<1x16xf32>
    %116 = arith.mulf %3, %115 : vector<1x16xf32>
    %c0_50 = arith.constant 0 : index
    %c0_51 = arith.constant 0 : index
    %117 = vector.load %arg14[%c0_50, %c0_51] : memref<16x1xf32, #tpu.memory_space<vmem>>, vector<16x1xf32>
    tpu.vector_store %arg14[%c0_50, %c0_51], %89 {strides = array<i32>} : memref<16x1xf32, #tpu.memory_space<vmem>>, vector<16x1xf32>,
    %c0_52 = arith.constant 0 : index
    %c0_53 = arith.constant 0 : index
    %118 = vector.load %arg15[%c0_52, %c0_53] : memref<1x16xf32, #tpu.memory_space<vmem>>, vector<1x16xf32>
    tpu.vector_store %arg15[%c0_52, %c0_53], %116 {strides = array<i32>} : memref<1x16xf32, #tpu.memory_space<vmem>>, vector<1x16xf32>,
    %119 = math.tanh %47 : vector<16x1xf32>
    %120 = vector.broadcast %119 : vector<16x1xf32> to vector<16x32xf32>
    %121 = arith.mulf %35, %120 : vector<16x32xf32>
    %122 = tpu.iota {dimensions = array<i32: 0>} : vector<2x16xi32>
    %123 = vector.broadcast %50 : vector<1x16xi32> to vector<2x16xi32>
    %124 = arith.cmpi eq, %122, %123 : vector<2x16xi32>
    %cst_54 = arith.constant 1.000000e+00 : f32
    %cst_55 = arith.constant 0.000000e+00 : f32
    %125 = vector.broadcast %cst_54 : f32 to vector<2x16xf32>
    %126 = vector.broadcast %cst_55 : f32 to vector<2x16xf32>
    %127 = arith.select %124, %125, %126 : vector<2x16xi1>, vector<2x16xf32>
    %128 = vector.broadcast %116 : vector<1x16xf32> to vector<2x16xf32>
    %129 = arith.mulf %127, %128 : vector<2x16xf32>
    %cst_56 = arith.constant dense<0.000000e+00> : vector<2xf32>
    %130 = vector.multi_reduction <add>, %129, %cst_56 [1] : vector<2x16xf32> to vector<2xf32>
    %131 = vector.shape_cast %130 : vector<2xf32> to vector<2x1xf32>
    %cst_57 = arith.constant 1.000000e+00 : f32
    %132 = vector.broadcast %cst_57 : f32 to vector<2x1xf32>
    %133 = arith.maximumf %131, %132 : vector<2x1xf32>
    %134 = tpu.reciprocal %133 {approx = true} : vector<2x1xf32> -> vector<2x1xf32>
    %cst_58 = arith.constant dense<0.000000e+00> : vector<2x32xf32>
    %135 = tpu.matmul %129, %121, %cst_58 {dimension_numbers = #tpu.dot_dimension_numbers<[1], [0], [0], [1], [0, 0, 1, 1], [], []>} : vector<2x16xf32>, vector<16x32xf32>, vector<2x32xf32> -> vector<2x32xf32>
    %136 = vector.broadcast %134 : vector<2x1xf32> to vector<2x32xf32>
    %137 = arith.mulf %135, %136 : vector<2x32xf32>
    %138 = tpu.iota {dimensions = array<i32: 1>} : vector<16x2xi32>
    %139 = vector.broadcast %49 : vector<16x1xi32> to vector<16x2xi32>
    %140 = arith.cmpi eq, %139, %138 : vector<16x2xi32>
    %cst_59 = arith.constant 1.000000e+00 : f32
    %cst_60 = arith.constant 0.000000e+00 : f32
    %141 = vector.broadcast %cst_59 : f32 to vector<16x2xf32>
    %142 = vector.broadcast %cst_60 : f32 to vector<16x2xf32>
    %143 = arith.select %140, %141, %142 : vector<16x2xi1>, vector<16x2xf32>
    %144 = vector.broadcast %89 : vector<16x1xf32> to vector<16x2xf32>
    %145 = arith.mulf %143, %144 : vector<16x2xf32>
    %146 = tpu.iota {dimensions = array<i32: 0>} : vector<2x32xi32>
    %cst_61 = arith.constant 0.000000e+00 : f32
    %147 = vector.broadcast %cst_61 : f32 to vector<2x32xf32>
    %148 = vector.extract_strided_slice %145 {offsets = [0, 0], sizes = [16, 1], strides = [1, 1]} : vector<16x2xf32> to vector<16x1xf32>
    %cst_62 = arith.constant 5.000000e-01 : f32
    %149 = vector.broadcast %cst_62 : f32 to vector<16x1xf32>
    %150 = arith.cmpf ogt, %148, %149 : vector<16x1xf32>
    %cst_63 = arith.constant 0xFF800000 : f32
    %151 = vector.shape_cast %150 : vector<16x1xi1> to vector<16x1xi1>
    %152 = vector.broadcast %151 : vector<16x1xi1> to vector<16x32xi1>
    %153 = vector.broadcast %cst_63 : f32 to vector<16x32xf32>
    %154 = arith.select %152, %121, %153 : vector<16x32xi1>, vector<16x32xf32>
    %cst_64 = arith.constant dense<0xFF800000> : vector<32xf32>
    %155 = vector.multi_reduction <maximumf>, %154, %cst_64 [0] : vector<16x32xf32> to vector<32xf32>
    %156 = vector.shape_cast %155 : vector<32xf32> to vector<1x32xf32>
    %c0_i32 = arith.constant 0 : i32
    %157 = vector.broadcast %c0_i32 : i32 to vector<2x32xi32>
    %158 = arith.cmpi eq, %146, %157 : vector<2x32xi32>
    %159 = vector.shape_cast %156 : vector<1x32xf32> to vector<1x32xf32>
    %160 = vector.broadcast %159 : vector<1x32xf32> to vector<2x32xf32>
    %161 = arith.select %158, %160, %147 : vector<2x32xi1>, vector<2x32xf32>
    %162 = vector.extract_strided_slice %145 {offsets = [0, 1], sizes = [16, 1], strides = [1, 1]} : vector<16x2xf32> to vector<16x1xf32>
    %cst_65 = arith.constant 5.000000e-01 : f32
    %163 = vector.broadcast %cst_65 : f32 to vector<16x1xf32>
    %164 = arith.cmpf ogt, %162, %163 : vector<16x1xf32>
    %cst_66 = arith.constant 0xFF800000 : f32
    %165 = vector.shape_cast %164 : vector<16x1xi1> to vector<16x1xi1>
    %166 = vector.broadcast %165 : vector<16x1xi1> to vector<16x32xi1>
    %167 = vector.broadcast %cst_66 : f32 to vector<16x32xf32>
    %168 = arith.select %166, %121, %167 : vector<16x32xi1>, vector<16x32xf32>
    %cst_67 = arith.constant dense<0xFF800000> : vector<32xf32>
    %169 = vector.multi_reduction <maximumf>, %168, %cst_67 [0] : vector<16x32xf32> to vector<32xf32>
    %170 = vector.shape_cast %169 : vector<32xf32> to vector<1x32xf32>
    %c1_i32 = arith.constant 1 : i32
    %171 = vector.broadcast %c1_i32 : i32 to vector<2x32xi32>
    %172 = arith.cmpi eq, %146, %171 : vector<2x32xi32>
    %173 = vector.shape_cast %170 : vector<1x32xf32> to vector<1x32xf32>
    %174 = vector.broadcast %173 : vector<1x32xf32> to vector<2x32xf32>
    %175 = arith.select %172, %174, %161 : vector<2x32xi1>, vector<2x32xf32>
    %cst_68 = arith.constant 5.000000e-01 : f32
    %176 = vector.broadcast %cst_68 : f32 to vector<2x1xf32>
    %177 = arith.cmpf ogt, %131, %176 : vector<2x1xf32>
    %cst_69 = arith.constant 0.000000e+00 : f32
    %178 = vector.shape_cast %177 : vector<2x1xi1> to vector<2x1xi1>
    %179 = vector.broadcast %178 : vector<2x1xi1> to vector<2x32xi1>
    %180 = vector.broadcast %cst_69 : f32 to vector<2x32xf32>
    %181 = arith.select %179, %175, %180 : vector<2x32xi1>, vector<2x32xf32>
    %c0_70 = arith.constant 0 : index
    %c0_71 = arith.constant 0 : index
    %182 = vector.load %arg7[%c0_70, %c0_71] : memref<2x64xf32, #tpu.memory_space<vmem>>, vector<2x64xf32>
    %183 = tpu.concatenate %181, %137 in 1 : vector<2x32xf32>, vector<2x32xf32> -> vector<2x64xf32>
    %184 = arith.addf %182, %183 : vector<2x64xf32>
    %c0_72 = arith.constant 0 : index
    %c0_73 = arith.constant 0 : index
    %185 = vector.load %arg16[%c0_72, %c0_73] : memref<2x64xf32, #tpu.memory_space<vmem>>, vector<2x64xf32>
    tpu.vector_store %arg16[%c0_72, %c0_73], %184 {strides = array<i32>} : memref<2x64xf32, #tpu.memory_space<vmem>>, vector<2x64xf32>,
    return
  }
}

module attributes {stable_mosaic.version = 11 : i64} {
  func.func @layer_kernel(%arg0: memref<16x16xf32, #tpu.memory_space<vmem>>, %arg1: memref<16x1xi32, #tpu.memory_space<vmem>>, %arg2: memref<1x16xi32, #tpu.memory_space<vmem>>, %arg3: memref<16x8xf32, #tpu.memory_space<vmem>>, %arg4: memref<16x1xf32, #tpu.memory_space<vmem>>, %arg5: memref<16x1xf32, #tpu.memory_space<vmem>>, %arg6: memref<1x16xf32, #tpu.memory_space<vmem>>, %arg7: memref<2x64xf32, #tpu.memory_space<vmem>>, %arg8: memref<8x32xf32, #tpu.memory_space<vmem>>, %arg9: memref<1x32xf32, #tpu.memory_space<vmem>>, %arg10: memref<1x32xf32, #tpu.memory_space<vmem>>, %arg11: memref<1x1xf32, #tpu.memory_space<vmem>>, %arg12: memref<16x32xf32, #tpu.memory_space<vmem>>, %arg13: memref<16x1xf32, #tpu.memory_space<vmem>>, %arg14: memref<16x1xf32, #tpu.memory_space<vmem>>, %arg15: memref<1x16xf32, #tpu.memory_space<vmem>>, %arg16: memref<2x64xf32, #tpu.memory_space<vmem>>) attributes {dimension_semantics = [], scalar_prefetch = 0 : i64, scratch_operands = 0 : i64, tpu.core_type = #tpu.core_type<tc>} {
    %c0 = arith.constant 0 : index
    %c0_0 = arith.constant 0 : index
    %0 = vector.load %arg0[%c0, %c0_0] : memref<16x16xf32, #tpu.memory_space<vmem>>, vector<16x16xf32>
    %c0_1 = arith.constant 0 : index
    %c0_2 = arith.constant 0 : index
    %1 = vector.load %arg3[%c0_1, %c0_2] : memref<16x8xf32, #tpu.memory_space<vmem>>, vector<16x8xf32>
    %c0_3 = arith.constant 0 : index
    %c0_4 = arith.constant 0 : index
    %2 = vector.load %arg5[%c0_3, %c0_4] : memref<16x1xf32, #tpu.memory_space<vmem>>, vector<16x1xf32>
    %c0_5 = arith.constant 0 : index
    %c0_6 = arith.constant 0 : index
    %3 = vector.load %arg6[%c0_5, %c0_6] : memref<1x16xf32, #tpu.memory_space<vmem>>, vector<1x16xf32>
    %4 = tpu.iota {dimensions = array<i32: 0>} : vector<16x16xi32>
    %5 = tpu.iota {dimensions = array<i32: 1>} : vector<16x16xi32>
    %6 = arith.cmpi eq, %4, %5 : vector<16x16xi32>
    %cst = arith.constant 1.000000e+00 : f32
    %cst_7 = arith.constant 0.000000e+00 : f32
    %7 = vector.broadcast %cst : f32 to vector<16x16xf32>
    %8 = vector.broadcast %cst_7 : f32 to vector<16x16xf32>
    %9 = arith.select %6, %7, %8 : vector<16x16xi1>, vector<16x16xf32>
    %10 = arith.addf %0, %9 : vector<16x16xf32>
    %cst_8 = arith.constant dense<0.000000e+00> : vector<16xf32>
    %11 = vector.multi_reduction <add>, %10, %cst_8 [1] : vector<16x16xf32> to vector<16xf32>
    %12 = vector.shape_cast %11 : vector<16xf32> to vector<16x1xf32>
    %13 = math.rsqrt %12 : vector<16x1xf32>
    %c0_9 = arith.constant 0 : index
    %c0_10 = arith.constant 0 : index
    %14 = vector.load %arg8[%c0_9, %c0_10] : memref<8x32xf32, #tpu.memory_space<vmem>>, vector<8x32xf32>
    %cst_11 = arith.constant dense<0.000000e+00> : vector<16x32xf32>
    %15 = tpu.matmul %1, %14, %cst_11 {dimension_numbers = #tpu.dot_dimension_numbers<[1], [0], [0], [1], [0, 0, 1, 1], [], []>} : vector<16x8xf32>, vector<8x32xf32>, vector<16x32xf32> -> vector<16x32xf32>
    %16 = vector.broadcast %13 : vector<16x1xf32> to vector<16x32xf32>
    %17 = arith.mulf %16, %15 : vector<16x32xf32>
    %cst_12 = arith.constant dense<0.000000e+00> : vector<16x32xf32>
    %18 = tpu.matmul %10, %17, %cst_12 {dimension_numbers = #tpu.dot_dimension_numbers<[1], [0], [0], [1], [0, 0, 1, 1], [], []>} : vector<16x16xf32>, vector<16x32xf32>, vector<16x32xf32> -> vector<16x32xf32>
    %19 = vector.broadcast %13 : vector<16x1xf32> to vector<16x32xf32>
    %20 = arith.mulf %19, %18 : vector<16x32xf32>
    %c0_13 = arith.constant 0 : index
    %c0_14 = arith.constant 0 : index
    %21 = vector.load %arg9[%c0_13, %c0_14] : memref<1x32xf32, #tpu.memory_space<vmem>>, vector<1x32xf32>
    %22 = vector.broadcast %21 : vector<1x32xf32> to vector<16x32xf32>
    %23 = arith.addf %20, %22 : vector<16x32xf32>
    %cst_15 = arith.constant 0.000000e+00 : f32
    %24 = vector.broadcast %cst_15 : f32 to vector<16x32xf32>
    %25 = arith.maximumf %23, %24 : vector<16x32xf32>
    %c0_16 = arith.constant 0 : index
    %c0_17 = arith.constant 0 : index
    %26 = vector.load %arg12[%c0_16, %c0_17] : memref<16x32xf32, #tpu.memory_space<vmem>>, vector<16x32xf32>
    tpu.vector_store %arg12[%c0_16, %c0_17], %25 {strides = array<i32>} : memref<16x32xf32, #tpu.memory_space<vmem>>, vector<16x32xf32>,
    %c0_18 = arith.constant 0 : index
    %c0_19 = arith.constant 0 : index
    %27 = vector.load %arg10[%c0_18, %c0_19] : memref<1x32xf32, #tpu.memory_space<vmem>>, vector<1x32xf32>
    %28 = vector.broadcast %27 : vector<1x32xf32> to vector<16x32xf32>
    %29 = arith.mulf %25, %28 : vector<16x32xf32>
    %cst_20 = arith.constant dense<0.000000e+00> : vector<16xf32>
    %30 = vector.multi_reduction <add>, %29, %cst_20 [1] : vector<16x32xf32> to vector<16xf32>
    %31 = vector.shape_cast %30 : vector<16xf32> to vector<16x1xf32>
    %32 = arith.mulf %13, %31 : vector<16x1xf32>
    %cst_21 = arith.constant dense<0.000000e+00> : vector<16x1xf32>
    %33 = tpu.matmul %10, %32, %cst_21 {dimension_numbers = #tpu.dot_dimension_numbers<[1], [0], [0], [1], [0, 0, 1, 1], [], []>} : vector<16x16xf32>, vector<16x1xf32>, vector<16x1xf32> -> vector<16x1xf32>
    %34 = arith.mulf %13, %33 : vector<16x1xf32>
    %c0_22 = arith.constant 0 : index
    %c0_23 = arith.constant 0 : index
    %35 = vector.load %arg11[%c0_22, %c0_23] : memref<1x1xf32, #tpu.memory_space<vmem>>, vector<1x1xf32>
    %36 = vector.broadcast %35 : vector<1x1xf32> to vector<16x1xf32>
    %37 = arith.addf %34, %36 : vector<16x1xf32>
    %c0_24 = arith.constant 0 : index
    %c0_25 = arith.constant 0 : index
    %38 = vector.load %arg13[%c0_24, %c0_25] : memref<16x1xf32, #tpu.memory_space<vmem>>, vector<16x1xf32>
    tpu.vector_store %arg13[%c0_24, %c0_25], %37 {strides = array<i32>} : memref<16x1xf32, #tpu.memory_space<vmem>>, vector<16x1xf32>,
    %c0_26 = arith.constant 0 : index
    %c0_27 = arith.constant 0 : index
    %39 = vector.load %arg1[%c0_26, %c0_27] : memref<16x1xi32, #tpu.memory_space<vmem>>, vector<16x1xi32>
    %c0_28 = arith.constant 0 : index
    %c0_29 = arith.constant 0 : index
    %40 = vector.load %arg2[%c0_28, %c0_29] : memref<1x16xi32, #tpu.memory_space<vmem>>, vector<1x16xi32>
    %41 = vector.broadcast %39 : vector<16x1xi32> to vector<16x16xi32>
    %42 = vector.broadcast %40 : vector<1x16xi32> to vector<16x16xi32>
    %43 = arith.cmpi eq, %41, %42 : vector<16x16xi32>
    %cst_30 = arith.constant 1.000000e+00 : f32
    %cst_31 = arith.constant 0.000000e+00 : f32
    %44 = vector.broadcast %cst_30 : f32 to vector<16x16xf32>
    %45 = vector.broadcast %cst_31 : f32 to vector<16x16xf32>
    %46 = arith.select %43, %44, %45 : vector<16x16xi1>, vector<16x16xf32>
    %cst_32 = arith.constant 0.000000e+00 : f32
    %47 = vector.shape_cast %37 : vector<16x1xf32> to vector<16x1xf32>
    %48 = vector.broadcast %47 : vector<16x1xf32> to vector<16x16xf32>
    %49 = vector.broadcast %cst_32 : f32 to vector<16x16xf32>
    %50 = arith.select %6, %48, %49 : vector<16x16xi1>, vector<16x16xf32>
    %cst_33 = arith.constant dense<0.000000e+00> : vector<16xf32>
    %51 = vector.multi_reduction <add>, %50, %cst_33 [0] : vector<16x16xf32> to vector<16xf32>
    %52 = vector.shape_cast %51 : vector<16xf32> to vector<1x16xf32>
    %53 = vector.broadcast %52 : vector<1x16xf32> to vector<16x16xf32>
    %54 = vector.broadcast %37 : vector<16x1xf32> to vector<16x16xf32>
    %55 = arith.cmpf ogt, %53, %54 : vector<16x16xf32>
    %56 = vector.broadcast %52 : vector<1x16xf32> to vector<16x16xf32>
    %57 = vector.broadcast %37 : vector<16x1xf32> to vector<16x16xf32>
    %58 = arith.cmpf oeq, %56, %57 : vector<16x16xf32>
    %59 = arith.cmpi slt, %5, %4 : vector<16x16xi32>
    %60 = arith.andi %58, %59 : vector<16x16xi1>
    %61 = arith.ori %55, %60 : vector<16x16xi1>
    %cst_34 = arith.constant 1.000000e+00 : f32
    %cst_35 = arith.constant 0.000000e+00 : f32
    %62 = vector.broadcast %cst_34 : f32 to vector<16x16xf32>
    %63 = vector.broadcast %cst_35 : f32 to vector<16x16xf32>
    %64 = arith.select %61, %62, %63 : vector<16x16xi1>, vector<16x16xf32>
    %65 = vector.broadcast %3 : vector<1x16xf32> to vector<16x16xf32>
    %66 = arith.mulf %46, %65 : vector<16x16xf32>
    %67 = arith.mulf %66, %64 : vector<16x16xf32>
    %cst_36 = arith.constant dense<0.000000e+00> : vector<16xf32>
    %68 = vector.multi_reduction <add>, %67, %cst_36 [1] : vector<16x16xf32> to vector<16xf32>
    %69 = vector.shape_cast %68 : vector<16xf32> to vector<16x1xf32>
    %cst_37 = arith.constant dense<0.000000e+00> : vector<16xf32>
    %70 = vector.multi_reduction <add>, %66, %cst_37 [1] : vector<16x16xf32> to vector<16xf32>
    %71 = vector.shape_cast %70 : vector<16xf32> to vector<16x1xf32>
    %cst_38 = arith.constant 5.000000e-01 : f32
    %72 = vector.broadcast %cst_38 : f32 to vector<16x1xf32>
    %73 = arith.mulf %72, %71 : vector<16x1xf32>
    %74 = math.ceil %73 : vector<16x1xf32>
    %75 = arith.cmpf olt, %69, %74 : vector<16x1xf32>
    %cst_39 = arith.constant 1.000000e+00 : f32
    %cst_40 = arith.constant 0.000000e+00 : f32
    %76 = vector.broadcast %cst_39 : f32 to vector<16x1xf32>
    %77 = vector.broadcast %cst_40 : f32 to vector<16x1xf32>
    %78 = arith.select %75, %76, %77 : vector<16x1xi1>, vector<16x1xf32>
    %79 = arith.mulf %2, %78 : vector<16x1xf32>
    %80 = vector.broadcast %37 : vector<16x1xf32> to vector<16x16xf32>
    %81 = vector.broadcast %52 : vector<1x16xf32> to vector<16x16xf32>
    %82 = arith.cmpf ogt, %80, %81 : vector<16x16xf32>
    %83 = vector.broadcast %37 : vector<16x1xf32> to vector<16x16xf32>
    %84 = vector.broadcast %52 : vector<1x16xf32> to vector<16x16xf32>
    %85 = arith.cmpf oeq, %83, %84 : vector<16x16xf32>
    %86 = arith.cmpi slt, %4, %5 : vector<16x16xi32>
    %87 = arith.andi %85, %86 : vector<16x16xi1>
    %88 = arith.ori %82, %87 : vector<16x16xi1>
    %cst_41 = arith.constant 1.000000e+00 : f32
    %cst_42 = arith.constant 0.000000e+00 : f32
    %89 = vector.broadcast %cst_41 : f32 to vector<16x16xf32>
    %90 = vector.broadcast %cst_42 : f32 to vector<16x16xf32>
    %91 = arith.select %88, %89, %90 : vector<16x16xi1>, vector<16x16xf32>
    %92 = vector.broadcast %2 : vector<16x1xf32> to vector<16x16xf32>
    %93 = arith.mulf %46, %92 : vector<16x16xf32>
    %94 = arith.mulf %93, %91 : vector<16x16xf32>
    %cst_43 = arith.constant dense<0.000000e+00> : vector<16xf32>
    %95 = vector.multi_reduction <add>, %94, %cst_43 [0] : vector<16x16xf32> to vector<16xf32>
    %96 = vector.shape_cast %95 : vector<16xf32> to vector<1x16xf32>
    %cst_44 = arith.constant dense<0.000000e+00> : vector<16xf32>
    %97 = vector.multi_reduction <add>, %93, %cst_44 [0] : vector<16x16xf32> to vector<16xf32>
    %98 = vector.shape_cast %97 : vector<16xf32> to vector<1x16xf32>
    %cst_45 = arith.constant 5.000000e-01 : f32
    %99 = vector.broadcast %cst_45 : f32 to vector<1x16xf32>
    %100 = arith.mulf %99, %98 : vector<1x16xf32>
    %101 = math.ceil %100 : vector<1x16xf32>
    %102 = arith.cmpf olt, %96, %101 : vector<1x16xf32>
    %cst_46 = arith.constant 1.000000e+00 : f32
    %cst_47 = arith.constant 0.000000e+00 : f32
    %103 = vector.broadcast %cst_46 : f32 to vector<1x16xf32>
    %104 = vector.broadcast %cst_47 : f32 to vector<1x16xf32>
    %105 = arith.select %102, %103, %104 : vector<1x16xi1>, vector<1x16xf32>
    %106 = arith.mulf %3, %105 : vector<1x16xf32>
    %c0_48 = arith.constant 0 : index
    %c0_49 = arith.constant 0 : index
    %107 = vector.load %arg14[%c0_48, %c0_49] : memref<16x1xf32, #tpu.memory_space<vmem>>, vector<16x1xf32>
    tpu.vector_store %arg14[%c0_48, %c0_49], %79 {strides = array<i32>} : memref<16x1xf32, #tpu.memory_space<vmem>>, vector<16x1xf32>,
    %c0_50 = arith.constant 0 : index
    %c0_51 = arith.constant 0 : index
    %108 = vector.load %arg15[%c0_50, %c0_51] : memref<1x16xf32, #tpu.memory_space<vmem>>, vector<1x16xf32>
    tpu.vector_store %arg15[%c0_50, %c0_51], %106 {strides = array<i32>} : memref<1x16xf32, #tpu.memory_space<vmem>>, vector<1x16xf32>,
    %109 = math.tanh %37 : vector<16x1xf32>
    %110 = vector.broadcast %109 : vector<16x1xf32> to vector<16x32xf32>
    %111 = arith.mulf %25, %110 : vector<16x32xf32>
    %112 = tpu.iota {dimensions = array<i32: 0>} : vector<2x16xi32>
    %113 = vector.broadcast %40 : vector<1x16xi32> to vector<2x16xi32>
    %114 = arith.cmpi eq, %112, %113 : vector<2x16xi32>
    %cst_52 = arith.constant 1.000000e+00 : f32
    %cst_53 = arith.constant 0.000000e+00 : f32
    %115 = vector.broadcast %cst_52 : f32 to vector<2x16xf32>
    %116 = vector.broadcast %cst_53 : f32 to vector<2x16xf32>
    %117 = arith.select %114, %115, %116 : vector<2x16xi1>, vector<2x16xf32>
    %118 = vector.broadcast %106 : vector<1x16xf32> to vector<2x16xf32>
    %119 = arith.mulf %117, %118 : vector<2x16xf32>
    %cst_54 = arith.constant dense<0.000000e+00> : vector<2xf32>
    %120 = vector.multi_reduction <add>, %119, %cst_54 [1] : vector<2x16xf32> to vector<2xf32>
    %121 = vector.shape_cast %120 : vector<2xf32> to vector<2x1xf32>
    %cst_55 = arith.constant 1.000000e+00 : f32
    %122 = vector.broadcast %cst_55 : f32 to vector<2x1xf32>
    %123 = arith.maximumf %121, %122 : vector<2x1xf32>
    %124 = tpu.reciprocal %123 {approx = true} : vector<2x1xf32> -> vector<2x1xf32>
    %cst_56 = arith.constant dense<0.000000e+00> : vector<2x32xf32>
    %125 = tpu.matmul %119, %111, %cst_56 {dimension_numbers = #tpu.dot_dimension_numbers<[1], [0], [0], [1], [0, 0, 1, 1], [], []>} : vector<2x16xf32>, vector<16x32xf32>, vector<2x32xf32> -> vector<2x32xf32>
    %126 = vector.broadcast %124 : vector<2x1xf32> to vector<2x32xf32>
    %127 = arith.mulf %125, %126 : vector<2x32xf32>
    %128 = tpu.iota {dimensions = array<i32: 1>} : vector<16x2xi32>
    %129 = vector.broadcast %39 : vector<16x1xi32> to vector<16x2xi32>
    %130 = arith.cmpi eq, %129, %128 : vector<16x2xi32>
    %cst_57 = arith.constant 1.000000e+00 : f32
    %cst_58 = arith.constant 0.000000e+00 : f32
    %131 = vector.broadcast %cst_57 : f32 to vector<16x2xf32>
    %132 = vector.broadcast %cst_58 : f32 to vector<16x2xf32>
    %133 = arith.select %130, %131, %132 : vector<16x2xi1>, vector<16x2xf32>
    %134 = vector.broadcast %79 : vector<16x1xf32> to vector<16x2xf32>
    %135 = arith.mulf %133, %134 : vector<16x2xf32>
    %136 = tpu.iota {dimensions = array<i32: 0>} : vector<2x32xi32>
    %cst_59 = arith.constant 0.000000e+00 : f32
    %137 = vector.broadcast %cst_59 : f32 to vector<2x32xf32>
    %138 = vector.extract_strided_slice %135 {offsets = [0, 0], sizes = [16, 1], strides = [1, 1]} : vector<16x2xf32> to vector<16x1xf32>
    %cst_60 = arith.constant 5.000000e-01 : f32
    %139 = vector.broadcast %cst_60 : f32 to vector<16x1xf32>
    %140 = arith.cmpf ogt, %138, %139 : vector<16x1xf32>
    %cst_61 = arith.constant 0xFF800000 : f32
    %141 = vector.shape_cast %140 : vector<16x1xi1> to vector<16x1xi1>
    %142 = vector.broadcast %141 : vector<16x1xi1> to vector<16x32xi1>
    %143 = vector.broadcast %cst_61 : f32 to vector<16x32xf32>
    %144 = arith.select %142, %111, %143 : vector<16x32xi1>, vector<16x32xf32>
    %cst_62 = arith.constant dense<0xFF800000> : vector<32xf32>
    %145 = vector.multi_reduction <maximumf>, %144, %cst_62 [0] : vector<16x32xf32> to vector<32xf32>
    %146 = vector.shape_cast %145 : vector<32xf32> to vector<1x32xf32>
    %c0_i32 = arith.constant 0 : i32
    %147 = vector.broadcast %c0_i32 : i32 to vector<2x32xi32>
    %148 = arith.cmpi eq, %136, %147 : vector<2x32xi32>
    %149 = vector.shape_cast %146 : vector<1x32xf32> to vector<1x32xf32>
    %150 = vector.broadcast %149 : vector<1x32xf32> to vector<2x32xf32>
    %151 = arith.select %148, %150, %137 : vector<2x32xi1>, vector<2x32xf32>
    %152 = vector.extract_strided_slice %135 {offsets = [0, 1], sizes = [16, 1], strides = [1, 1]} : vector<16x2xf32> to vector<16x1xf32>
    %cst_63 = arith.constant 5.000000e-01 : f32
    %153 = vector.broadcast %cst_63 : f32 to vector<16x1xf32>
    %154 = arith.cmpf ogt, %152, %153 : vector<16x1xf32>
    %cst_64 = arith.constant 0xFF800000 : f32
    %155 = vector.shape_cast %154 : vector<16x1xi1> to vector<16x1xi1>
    %156 = vector.broadcast %155 : vector<16x1xi1> to vector<16x32xi1>
    %157 = vector.broadcast %cst_64 : f32 to vector<16x32xf32>
    %158 = arith.select %156, %111, %157 : vector<16x32xi1>, vector<16x32xf32>
    %cst_65 = arith.constant dense<0xFF800000> : vector<32xf32>
    %159 = vector.multi_reduction <maximumf>, %158, %cst_65 [0] : vector<16x32xf32> to vector<32xf32>
    %160 = vector.shape_cast %159 : vector<32xf32> to vector<1x32xf32>
    %c1_i32 = arith.constant 1 : i32
    %161 = vector.broadcast %c1_i32 : i32 to vector<2x32xi32>
    %162 = arith.cmpi eq, %136, %161 : vector<2x32xi32>
    %163 = vector.shape_cast %160 : vector<1x32xf32> to vector<1x32xf32>
    %164 = vector.broadcast %163 : vector<1x32xf32> to vector<2x32xf32>
    %165 = arith.select %162, %164, %151 : vector<2x32xi1>, vector<2x32xf32>
    %cst_66 = arith.constant 5.000000e-01 : f32
    %166 = vector.broadcast %cst_66 : f32 to vector<2x1xf32>
    %167 = arith.cmpf ogt, %121, %166 : vector<2x1xf32>
    %cst_67 = arith.constant 0.000000e+00 : f32
    %168 = vector.shape_cast %167 : vector<2x1xi1> to vector<2x1xi1>
    %169 = vector.broadcast %168 : vector<2x1xi1> to vector<2x32xi1>
    %170 = vector.broadcast %cst_67 : f32 to vector<2x32xf32>
    %171 = arith.select %169, %165, %170 : vector<2x32xi1>, vector<2x32xf32>
    %c0_68 = arith.constant 0 : index
    %c0_69 = arith.constant 0 : index
    %172 = vector.load %arg7[%c0_68, %c0_69] : memref<2x64xf32, #tpu.memory_space<vmem>>, vector<2x64xf32>
    %173 = tpu.concatenate %171, %127 in 1 : vector<2x32xf32>, vector<2x32xf32> -> vector<2x64xf32>
    %174 = arith.addf %172, %173 : vector<2x64xf32>
    %c0_70 = arith.constant 0 : index
    %c0_71 = arith.constant 0 : index
    %175 = vector.load %arg16[%c0_70, %c0_71] : memref<2x64xf32, #tpu.memory_space<vmem>>, vector<2x64xf32>
    tpu.vector_store %arg16[%c0_70, %c0_71], %174 {strides = array<i32>} : memref<2x64xf32, #tpu.memory_space<vmem>>, vector<2x64xf32>,
    return
  }
}

module attributes {stable_mosaic.version = 11 : i64} {
  func.func @heads_kernel(%arg0: memref<2x64xf32, #tpu.memory_space<vmem>>, %arg1: memref<2x64x32xf32, #tpu.memory_space<vmem>>, %arg2: memref<2x1x32xf32, #tpu.memory_space<vmem>>, %arg3: memref<2x32x3xf32, #tpu.memory_space<vmem>>, %arg4: memref<2x1x3xf32, #tpu.memory_space<vmem>>, %arg5: memref<2x2x3xf32, #tpu.memory_space<vmem>>) attributes {dimension_semantics = [], scalar_prefetch = 0 : i64, scratch_operands = 0 : i64, tpu.core_type = #tpu.core_type<tc>} {
    %c0 = arith.constant 0 : index
    %c0_0 = arith.constant 0 : index
    %0 = vector.load %arg0[%c0, %c0_0] : memref<2x64xf32, #tpu.memory_space<vmem>>, vector<2x64xf32>
    %c0_1 = arith.constant 0 : index
    %c0_2 = arith.constant 0 : index
    %c0_3 = arith.constant 0 : index
    %1 = vector.load %arg1[%c0_1, %c0_2, %c0_3] : memref<2x64x32xf32, #tpu.memory_space<vmem>>, vector<1x64x32xf32>
    %2 = vector.shape_cast %1 : vector<1x64x32xf32> to vector<64x32xf32>
    %cst = arith.constant dense<0.000000e+00> : vector<2x32xf32>
    %3 = tpu.matmul %0, %2, %cst {dimension_numbers = #tpu.dot_dimension_numbers<[1], [0], [0], [1], [0, 0, 1, 1], [], []>} : vector<2x64xf32>, vector<64x32xf32>, vector<2x32xf32> -> vector<2x32xf32>
    %c0_4 = arith.constant 0 : index
    %c0_5 = arith.constant 0 : index
    %c0_6 = arith.constant 0 : index
    %4 = vector.load %arg2[%c0_4, %c0_5, %c0_6] : memref<2x1x32xf32, #tpu.memory_space<vmem>>, vector<1x1x32xf32>
    %5 = vector.shape_cast %4 : vector<1x1x32xf32> to vector<1x32xf32>
    %6 = vector.broadcast %5 : vector<1x32xf32> to vector<2x32xf32>
    %7 = arith.addf %3, %6 : vector<2x32xf32>
    %cst_7 = arith.constant 0.000000e+00 : f32
    %8 = vector.broadcast %cst_7 : f32 to vector<2x32xf32>
    %9 = arith.maximumf %7, %8 : vector<2x32xf32>
    %c0_8 = arith.constant 0 : index
    %c0_9 = arith.constant 0 : index
    %c0_10 = arith.constant 0 : index
    %10 = vector.load %arg3[%c0_8, %c0_9, %c0_10] : memref<2x32x3xf32, #tpu.memory_space<vmem>>, vector<1x32x3xf32>
    %11 = vector.shape_cast %10 : vector<1x32x3xf32> to vector<32x3xf32>
    %cst_11 = arith.constant dense<0.000000e+00> : vector<2x3xf32>
    %12 = tpu.matmul %9, %11, %cst_11 {dimension_numbers = #tpu.dot_dimension_numbers<[1], [0], [0], [1], [0, 0, 1, 1], [], []>} : vector<2x32xf32>, vector<32x3xf32>, vector<2x3xf32> -> vector<2x3xf32>
    %c0_12 = arith.constant 0 : index
    %c0_13 = arith.constant 0 : index
    %c0_14 = arith.constant 0 : index
    %13 = vector.load %arg4[%c0_12, %c0_13, %c0_14] : memref<2x1x3xf32, #tpu.memory_space<vmem>>, vector<1x1x3xf32>
    %14 = vector.shape_cast %13 : vector<1x1x3xf32> to vector<1x3xf32>
    %15 = vector.broadcast %14 : vector<1x3xf32> to vector<2x3xf32>
    %16 = arith.addf %12, %15 : vector<2x3xf32>
    %cst_15 = arith.constant dense<0xFF800000> : vector<2xf32>
    %17 = vector.multi_reduction <maximumf>, %16, %cst_15 [1] : vector<2x3xf32> to vector<2xf32>
    %18 = vector.shape_cast %17 : vector<2xf32> to vector<2x1xf32>
    %19 = vector.broadcast %18 : vector<2x1xf32> to vector<2x3xf32>
    %20 = arith.subf %16, %19 : vector<2x3xf32>
    %21 = math.exp %20 : vector<2x3xf32>
    %cst_16 = arith.constant dense<0.000000e+00> : vector<2xf32>
    %22 = vector.multi_reduction <add>, %21, %cst_16 [1] : vector<2x3xf32> to vector<2xf32>
    %23 = vector.shape_cast %22 : vector<2xf32> to vector<2x1xf32>
    %24 = math.log %23 : vector<2x1xf32>
    %25 = vector.broadcast %24 : vector<2x1xf32> to vector<2x3xf32>
    %26 = arith.subf %20, %25 : vector<2x3xf32>
    %c0_17 = arith.constant 0 : index
    %c0_18 = arith.constant 0 : index
    %c0_19 = arith.constant 0 : index
    %27 = vector.load %arg5[%c0_17, %c0_18, %c0_19] : memref<2x2x3xf32, #tpu.memory_space<vmem>>, vector<1x2x3xf32>
    %28 = vector.shape_cast %27 : vector<1x2x3xf32> to vector<2x3xf32>
    %29 = vector.shape_cast %26 : vector<2x3xf32> to vector<1x2x3xf32>
    tpu.vector_store %arg5[%c0_17, %c0_18, %c0_19], %29 {strides = array<i32>} : memref<2x2x3xf32, #tpu.memory_space<vmem>>, vector<1x2x3xf32>,
    %c1 = arith.constant 1 : index
    %c0_20 = arith.constant 0 : index
    %c0_21 = arith.constant 0 : index
    %30 = vector.load %arg1[%c1, %c0_20, %c0_21] : memref<2x64x32xf32, #tpu.memory_space<vmem>>, vector<1x64x32xf32>
    %31 = vector.shape_cast %30 : vector<1x64x32xf32> to vector<64x32xf32>
    %cst_22 = arith.constant dense<0.000000e+00> : vector<2x32xf32>
    %32 = tpu.matmul %0, %31, %cst_22 {dimension_numbers = #tpu.dot_dimension_numbers<[1], [0], [0], [1], [0, 0, 1, 1], [], []>} : vector<2x64xf32>, vector<64x32xf32>, vector<2x32xf32> -> vector<2x32xf32>
    %c1_23 = arith.constant 1 : index
    %c0_24 = arith.constant 0 : index
    %c0_25 = arith.constant 0 : index
    %33 = vector.load %arg2[%c1_23, %c0_24, %c0_25] : memref<2x1x32xf32, #tpu.memory_space<vmem>>, vector<1x1x32xf32>
    %34 = vector.shape_cast %33 : vector<1x1x32xf32> to vector<1x32xf32>
    %35 = vector.broadcast %34 : vector<1x32xf32> to vector<2x32xf32>
    %36 = arith.addf %32, %35 : vector<2x32xf32>
    %cst_26 = arith.constant 0.000000e+00 : f32
    %37 = vector.broadcast %cst_26 : f32 to vector<2x32xf32>
    %38 = arith.maximumf %36, %37 : vector<2x32xf32>
    %c1_27 = arith.constant 1 : index
    %c0_28 = arith.constant 0 : index
    %c0_29 = arith.constant 0 : index
    %39 = vector.load %arg3[%c1_27, %c0_28, %c0_29] : memref<2x32x3xf32, #tpu.memory_space<vmem>>, vector<1x32x3xf32>
    %40 = vector.shape_cast %39 : vector<1x32x3xf32> to vector<32x3xf32>
    %cst_30 = arith.constant dense<0.000000e+00> : vector<2x3xf32>
    %41 = tpu.matmul %38, %40, %cst_30 {dimension_numbers = #tpu.dot_dimension_numbers<[1], [0], [0], [1], [0, 0, 1, 1], [], []>} : vector<2x32xf32>, vector<32x3xf32>, vector<2x3xf32> -> vector<2x3xf32>
    %c1_31 = arith.constant 1 : index
    %c0_32 = arith.constant 0 : index
    %c0_33 = arith.constant 0 : index
    %42 = vector.load %arg4[%c1_31, %c0_32, %c0_33] : memref<2x1x3xf32, #tpu.memory_space<vmem>>, vector<1x1x3xf32>
    %43 = vector.shape_cast %42 : vector<1x1x3xf32> to vector<1x3xf32>
    %44 = vector.broadcast %43 : vector<1x3xf32> to vector<2x3xf32>
    %45 = arith.addf %41, %44 : vector<2x3xf32>
    %cst_34 = arith.constant dense<0xFF800000> : vector<2xf32>
    %46 = vector.multi_reduction <maximumf>, %45, %cst_34 [1] : vector<2x3xf32> to vector<2xf32>
    %47 = vector.shape_cast %46 : vector<2xf32> to vector<2x1xf32>
    %48 = vector.broadcast %47 : vector<2x1xf32> to vector<2x3xf32>
    %49 = arith.subf %45, %48 : vector<2x3xf32>
    %50 = math.exp %49 : vector<2x3xf32>
    %cst_35 = arith.constant dense<0.000000e+00> : vector<2xf32>
    %51 = vector.multi_reduction <add>, %50, %cst_35 [1] : vector<2x3xf32> to vector<2xf32>
    %52 = vector.shape_cast %51 : vector<2xf32> to vector<2x1xf32>
    %53 = math.log %52 : vector<2x1xf32>
    %54 = vector.broadcast %53 : vector<2x1xf32> to vector<2x3xf32>
    %55 = arith.subf %49, %54 : vector<2x3xf32>
    %c1_36 = arith.constant 1 : index
    %c0_37 = arith.constant 0 : index
    %c0_38 = arith.constant 0 : index
    %56 = vector.load %arg5[%c1_36, %c0_37, %c0_38] : memref<2x2x3xf32, #tpu.memory_space<vmem>>, vector<1x2x3xf32>
    %57 = vector.shape_cast %56 : vector<1x2x3xf32> to vector<2x3xf32>
    %58 = vector.shape_cast %55 : vector<2x3xf32> to vector<1x2x3xf32>
    tpu.vector_store %arg5[%c1_36, %c0_37, %c0_38], %58 {strides = array<i32>} : memref<2x2x3xf32, #tpu.memory_space<vmem>>, vector<1x2x3xf32>,
    return
  }
}

</mosaic_0001>

<bundles_post_ra>
// kernel: net_forward.7
= control target key start
LH: loop header
LB: loop body
LE: loop exit
PB: predicated region body
PF: predicated region fallthrough
CT: control target
= control target key end

     0   :  { %v560_v0 = vmov 0.0|0.0   ;;  %vm561_vm0 = vmmov 0   ;;  %v562_v4 = vmov 0.0   ;;  %vm36_vm1 = vcmask 523264   ;;  %s712_s1 = inlined_call_operand.vmem [shape: f32[2,64,32], index: 1, kind: input, shape index: {}]   ;;  %s713_s3 = inlined_call_operand.vmem [shape: f32[2,32,3], index: 3, kind: input, shape index: {}]   ;;  %s714_s0 = inlined_call_operand.vmem [shape: f32[2,64], index: 0, kind: input, shape index: {}]   ;;  %s715_s2 = inlined_call_operand.vmem [shape: f32[2,1,32], index: 2, kind: input, shape index: {}]   ;;  %s716_s4 = inlined_call_operand.vmem [shape: f32[2,1,3], index: 4, kind: input, shape index: {}]   ;;  %s717_s5 = inlined_call_operand.vmem [shape: f32[2,2,3], index: 5, kind: output, shape index: {}]  }
   0x1   :  { %513 = vmatprep.subr.bf16.mxu0 %v560_v0  ;;  %v21_v1 = vld [vmem:[%s712_s1] sm:$0xff]  ;;  %v22_v2 = vld [vmem:[%s712_s1 + $0x8] sm:$0xff]  ;;  %v23_v3 = vld [vmem:[%s712_s1 + $0x10] sm:$0xff]  ;;  %469 = vmatprep.mubr.msk.f32.mxu0 %vm561_vm0, %v562_v4  ;;  %vm122_vm2 = vcmask 261120   ;;  %vm196_vm3 = vcmask 17408  }
   0x2   :  { %v514_v5 = vpack.c.bf16 %v22_v2, %v21_v1  ;;  %v24_v6 = vld [vmem:[%s712_s1 + $0x18] sm:$0xff]  ;;  %525 = vmatprep.subr.bf16.mxu1 %v560_v0  ;;  %480 = vmatprep.mubr.msk.f32.mxu1 %vm561_vm0, %v562_v4  ;;  %v111_v8 = vld [vmem:[%s713_s3] sm:$0xff]  ;;  %v112_v9 = vld [vmem:[%s713_s3 + $0x8] sm:$0xff] }
   0x3   :  { %v517_v7 = vpack.c.bf16 %v24_v6, %v23_v3  ;;  %v25_v10 = vld [vmem:[%s712_s1 + $0x20] sm:$0xff]  ;;  %v26_v11 = vld [vmem:[%s712_s1 + $0x28] sm:$0xff]  ;;  %v526_v12 = vpack.c.bf16 %v112_v9, %v111_v8  ;;  %v27_v14 = vld [vmem:[%s712_s1 + $0x30] sm:$0xff] }
   0x4   :  { %515 = vmatpush3.bf16.msra.mxu0 %v514_v5  ;;  %v520_v13 = vpack.c.bf16 %v26_v11, %v25_v10  ;;  %v28_v15 = vld [vmem:[%s712_s1 + $0x38] sm:$0xff]  ;;  %v20_v17 = vld [vmem:[%s714_s0] sm:$0x3]  ;;  %v113_v18 = vld [vmem:[%s713_s3 + $0x10] sm:$0xff] }
   0x5   :  { %516 = vmatprep.subr.bf16.mxu0 %v560_v0  ;;  %527 = vmatpush3.bf16.msra.mxu1 %v526_v12  ;;  %v523_v16 = vpack.c.bf16 %v28_v15, %v27_v14  ;;  %v114_v19 = vld [vmem:[%s713_s3 + $0x18] sm:$0xff]  ;;  %v402_v21 = vld [vmem:[%s715_s2] ss:$0 sm:$0xff]  ;;  %v407_v23 = vld [vmem:[%s712_s1 + $0x48] sm:$0xff] }
   0x6   :  { %528 = vmatprep.subr.bf16.mxu1 %v560_v0  ;;  %v529_v20 = vpack.c.bf16 %v114_v19, %v113_v18  ;;  %v406_v22 = vld [vmem:[%s712_s1 + $0x40] sm:$0xff]  ;;  %v408_v29 = vld [vmem:[%s712_s1 + $0x50] sm:$0xff]  ;;  %v409_v30 = vld [vmem:[%s712_s1 + $0x58] sm:$0xff] }
   0x7   :  { %v532_v27 = vpack.c.bf16 %v407_v23, %v406_v22  ;;  %v535_v31 = vpack.c.bf16 %v409_v30, %v408_v29  ;;  %v410_v32 = vld [vmem:[%s712_s1 + $0x60] sm:$0xff]  ;;  %v411_v33 = vld [vmem:[%s712_s1 + $0x68] sm:$0xff]  ;;  %v412_v35 = vld [vmem:[%s712_s1 + $0x70] sm:$0xff] }
   0x8   :  { %518 = vmatpush3.bf16.msra.mxu0 %v517_v7  ;;  %v538_v34 = vpack.c.bf16 %v411_v33, %v410_v32  ;;  %v413_v36 = vld [vmem:[%s712_s1 + $0x78] sm:$0xff]  ;;  %v417_v38 = vld [vmem:[%s713_s3 + $0x20] sm:$0xff]  ;;  %v418_v39 = vld [vmem:[%s713_s3 + $0x28] sm:$0xff] }
   0x9   :  { %519 = vmatprep.subr.bf16.mxu0 %v560_v0  ;;  %530 = vmatpush3.bf16.msra.mxu1 %v529_v20  ;;  %v541_v37 = vpack.c.bf16 %v413_v36, %v412_v35  ;;  %v544_v40 = vpack.c.bf16 %v418_v39, %v417_v38  ;;  %v419_v41 = vld [vmem:[%s713_s3 + $0x30] sm:$0xff]  ;;  %v420_v42 = vld [vmem:[%s713_s3 + $0x38] sm:$0xff]  ;;  %v404_v44 = vld [vmem:[%s716_s4] ss:$0 sm:$0xff] }
   0xa   :  { %531 = vmatprep.subr.bf16.mxu1 %v560_v0  ;;  %v547_v43 = vpack.c.bf16 %v420_v42, %v419_v41  ;;  %v415_v49 = vld [vmem:[%s715_s2 + $0x1] ss:$0 sm:$0xff] }
   0xb   :  { %v422_v59 = vld [vmem:[%s716_s4 + $0x1] ss:$0 sm:$0xff] }
   0xc   :  { %521 = vmatpush3.bf16.msra.mxu0 %v520_v13 }
   0xd   :  { %522 = vmatprep.subr.bf16.mxu0 %v560_v0 }
  0x10   :  { %524 = vmatpush3.bf16.msra.mxu0 %v523_v16 }
  0x11   :  { %543 = vmatprep.subr.bf16.mxu0 %v560_v0 }
  0x13   :  { %470 = vmatmul.mubr.msk.f32.vlgmr.msra.gmra.mrb[0].mxu0 %vm36_vm1, %v20_v17 }
  0x14   :  { %510 = vmatprep.mubr.msk.f32.mxu0 %vm561_vm0, %v562_v4  ;;  %545 = vmatpush3.bf16.msra.mxu0 %v544_v40 }
  0x15   :  { %546 = vmatprep.subr.bf16.mxu0 %v560_v0 }
  0x18   :  { %548 = vmatpush3.bf16.msra.mxu0 %v547_v43 }
  0xe6   :  { %v106_v24 = vpop.f32.mrb[0].mxu0 }
  0xe7   :  { %v107_v25 = vadd.f32 %v402_v21, %v106_v24  ;;  %v471_v26 = vpop.f32.mrb[1].mxu0 }
  0xe9   :  { %v110_v28 = vmax.f32 %v107_v25, 0.0 }
  0xeb   :  { %481 = vmatmul.mubr.msk.f32.vlgmr.msra.gmra.mrb[0].mxu1 %vm122_vm2, %v110_v28 }
  0xec   :  { %533 = vmatpush3.bf16.msra.mxu1 %v532_v27  ;;  %499 = vmatprep.mubr.msk.f32.mxu1 %vm561_vm0, %v562_v4 }
  0xed   :  { %534 = vmatprep.subr.bf16.mxu1 %v560_v0 }
  0xf0   :  { %536 = vmatpush3.bf16.msra.mxu1 %v535_v31 }
  0xf1   :  { %537 = vmatprep.subr.bf16.mxu1 %v560_v0 }
  0xf4   :  { %539 = vmatpush3.bf16.msra.mxu1 %v538_v34 }
  0xf5   :  { %540 = vmatprep.subr.bf16.mxu1 %v560_v0 }
  0xf8   :  { %542 = vmatpush3.bf16.msra.mxu1 %v541_v37 }
  0xfb   :  { %500 = vmatmul.mubr.msk.f32.vlgmr.msra.gmra.mrb[2].mxu1 %vm36_vm1, %v20_v17 }
 0x1be   :  { %v192_v45 = vpop.f32.mrb[0].mxu1 }
 0x1bf   :  { %v193_v46 = vadd.f32 %v404_v44, %v192_v45  ;;  %v482_v47 = vpop.f32.mrb[1].mxu1 }
 0x1c1   :  { %v197_v48 = vsel %vm196_vm3, %v193_v46, -inf }
 0x1c2   :  { %198 = vmax.xlane.f32.xlu0 %v197_v48 }
 0x1ce   :  { %v293_v50 = vpop.f32.mrb[2].mxu1 }
 0x1cf   :  { %v294_v51 = vadd.f32 %v415_v49, %v293_v50  ;;  %v501_v52 = vpop.f32.mrb[3].mxu1 }
 0x1d1   :  { %v297_v53 = vmax.f32 %v294_v51, 0.0 }
 0x1d3   :  { %511 = vmatmul.mubr.msk.f32.vlgmr.msra.gmra.mrb[2].mxu0 %vm122_vm2, %v297_v53 }
 0x24f   :  { %v199_v54 = vpop.xlane.xlu0 %198 }
 0x250   :  { %v200_v55 = vsub.f32 %v193_v46, %v199_v54 }
 0x252   :  { %v201_v56 = vmul.f32 1.442695, %v200_v55 }
 0x254   :  { %552 = vpow2.f32 %v201_v56 }
 0x25e   :  { %v553_v57 = vpop.eup %552 }
 0x25f   :  { %v203_v58 = vsel %vm196_vm3, %v553_v57, 0.0 }
 0x260   :  { %204 = vadd.xlane.f32.xlu1 %v203_v58 }
 0x2a6   :  { %v380_v60 = vpop.f32.mrb[2].mxu0 }
 0x2a7   :  { %v381_v61 = vadd.f32 %v422_v59, %v380_v60  ;;  %v512_v62 = vpop.f32.mrb[3].mxu0 }
 0x2a9   :  { %v384_v63 = vsel %vm196_vm3, %v381_v61, -inf }
 0x2aa   :  { %385 = vmax.xlane.f32.xlu0 %v384_v63 }
 0x2ed   :  { %v205_v0 = vpop.xlane.xlu1 %204 }
 0x2ee   :  { %554 = vlog2.f32 %v205_v0 }
 0x2f8   :  { %v555_v1 = vpop.eup %554 }
 0x2f9   :  { %v207_v2 = vmul.f32 0.6931472, %v555_v1 }
 0x2fb   :  { %v208_v3 = vsub.f32 %v200_v55, %v207_v2 }
 0x2fd   :  { %209 = vst.msk [vmem:[%s717_s5] sm:$0x3] %vm196_vm3, %v208_v3 }
 0x337   :  { %v386_v4 = vpop.xlane.xlu0 %385 }
 0x338   :  { %v387_v5 = vsub.f32 %v381_v61, %v386_v4 }
 0x33a   :  { %v388_v6 = vmul.f32 1.442695, %v387_v5 }
 0x33c   :  { %556 = vpow2.f32 %v388_v6 }
 0x346   :  { %v557_v7 = vpop.eup %556 }
 0x347   :  { %v390_v8 = vsel %vm196_vm3, %v557_v7, 0.0 }
 0x348   :  { %391 = vadd.xlane.f32.xlu1 %v390_v8 }
 0x3d5   :  { %v392_v9 = vpop.xlane.xlu1 %391 }
 0x3d6   :  { %558 = vlog2.f32 %v392_v9 }
 0x3e0   :  { %v559_v10 = vpop.eup %558 }
 0x3e1   :  { %v394_v11 = vmul.f32 0.6931472, %v559_v10 }
 0x3e3   :  { %v395_v12 = vsub.f32 %v387_v5, %v394_v11 }
 0x3e5   :  { %424 = vst.msk [vmem:[%s717_s5 + $0x2] sm:$0x3] %vm196_vm3, %v395_v12 }

// kernel: net_forward.6
= control target key start
LH: loop header
LB: loop body
LE: loop exit
PB: predicated region body
PF: predicated region fallthrough
CT: control target
= control target key end

     0   :  { %s1354_s0 = inlined_call_operand.vmem [shape: f32[16,16], index: 0, kind: input, shape index: {}]   ;;  %s1355_s1 = inlined_call_operand.vmem [shape: s32[16,1], index: 1, kind: input, shape index: {}]   ;;  %s1356_s2 = inlined_call_operand.vmem [shape: s32[1,16], index: 2, kind: input, shape index: {}]   ;;  %s1357_s3 = inlined_call_operand.vmem [shape: f32[16,32], index: 3, kind: input, shape index: {}]   ;;  %s1358_s4 = inlined_call_operand.vmem [shape: f32[16,1], index: 4, kind: input, shape index: {}]   ;;  %s1359_s5 = inlined_call_operand.vmem [shape: f32[16,1], index: 5, kind: input, shape index: {}]   ;;  %s1360_s6 = inlined_call_operand.vmem [shape: f32[1,16], index: 6, kind: input, shape index: {}]   ;;  %s1361_s7 = inlined_call_operand.vmem [shape: f32[2,64], index: 7, kind: input, shape index: {}]   ;;  %s1362_s8 = inlined_call_operand.vmem [shape: f32[32,32], index: 8, kind: input, shape index: {}]   ;;  %s1363_s9 = inlined_call_operand.vmem [shape: f32[1,32], index: 9, kind: input, shape index: {}]   ;;  %s1364_s10 = inlined_call_operand.vmem [shape: f32[1,32], index: 10, kind: input, shape index: {}]   ;;  %s1365_s11 = inlined_call_operand.<no memory space> [shape: f32[1,1], index: 11, kind: input, shape index: {}]   ;;  %s1366_s12 = inlined_call_operand.hbm [shape: f32[16,32], index: 12, kind: output, shape index: {0}]   ;;  %s1367_s13 = inlined_call_operand.hbm [shape: f32[16,1], index: 13, kind: output, shape index: {1}]   ;;  %s1368_s14 = inlined_call_operand.hbm [shape: f32[16,1], index: 14, kind: output, shape index: {2}]   ;;  %s1369_s15 = inlined_call_operand.hbm [shape: f32[1,16], index: 15, kind: output, shape index: {3}]   ;;  %s1370_s16 = inlined_call_operand.vmem [shape: f32[2,64], index: 16, kind: output, shape index: {4}]  }
   0x1   :  { %1373 = sst [smem:[#allocation13_spill]] %s1354_s0  ;;  %v22_v0 = vstv %s1365_s11 }
   0x2   :  { %23 = vst [vmem:[#allocation2] sm:$0x1] %v22_v0 }
   0x3   :  { %24 = vsyncpa [#allocation4], 0 }
   0x4   :  { %25 = vsyncpa [#allocation6], 0  ;;  %v1073_v1 = vld [vmem:[%s1359_s5] sm:$0xff]  ;;  %v970_v3 = vmov 0   ;;  %v59_v4 = vld [vmem:[%s1358_s4 + $0x8] sm:$0xff] }
   0x5   :  { %v58_v2 = vld [vmem:[%s1358_s4] sm:$0xff]  ;;  %860 = vset.pattern.permute.xlu1 %v970_v3  ;;  %859 = vset.pattern.permute.xlu0 %v970_v3 }
   0x6   :  { %862 = vtanh.f32 %v58_v2  ;;  %76 = vperm.xlu1 %860, %v1073_v1  }
   0x7   :  { %26 = vsyncpa [#allocation9], 0  ;;  %v1087_v5 = vld [vmem:[%s1359_s5 + $0x8] sm:$0xff]  ;;  %864 = vtanh.f32 %v59_v4  ;;  %v116_v6 = vld [vmem:[%s1362_s8] sm:$0xff]  ;;  %v89_v14 = vlaneseq  ;;  %s1374_s25 = sld [smem:[#allocation13_spill]]  ;;  %v971_v25 = vmov 0.0  }
   0x8   :  { %v117_v7 = vld [vmem:[%s1362_s8 + $0x8] sm:$0xff]  ;;  %v118_v11 = vld [vmem:[%s1362_s8 + $0x10] sm:$0xff]  ;;  %v119_v12 = vld [vmem:[%s1362_s8 + $0x18] sm:$0xff]  ;;  %vm107_vm2 = vcmask 130048   ;;  %vm1372_vm3 = vcmask 261120   ;;  %vm403_vm4 = vcmask 7168  }
   0x9   :  { %v828_v8 = vpack.c.bf16 %v117_v7, %v116_v6  ;;  %v832_v13 = vpack.c.bf16 %v119_v12, %v118_v11  ;;  %v1102_v15 = vshrl.u32 %v89_v14, 7  ;;  %v1105_v17 = vand.u32 127, %v89_v14  ;;  %v1110_v18 = vld [vmem:[%s1360_s6] sm:$0x1]  ;;  %v54_v39 = vld [vmem:[%s1357_s3 + $0x8] sm:$0xff]  ;;  %s976_s19 = smov [#allocation3]  }
   0xa   :  { %81 = vperm.xlu1 %860, %v1087_v5   ;;  %v53_v34 = vld [vmem:[%s1357_s3] sm:$0xff]  ;;  %vm973_vm5 = vmmov 0   ;;  %s708_s20 = sshll.u32 %s976_s19, 4  ;;  %s709_s20 = int_to_ptr.vmem [resolvable:$true] %s708_s20 }
   0xb   :  { %829 = vmatprep.subr.bf16.mxu0 %v828_v8  ;;  %v91_v16 = vsub.s32 0, %v1102_v15  ;;  %vm101_vm0 = vcmp.eq.s32.totalorder %v1102_v15, %v1105_v17  ;;  %v1123_v21 = vadd.s32 8, %v1102_v15  ;;  %v772_v54 = vld [vmem:[%s1363_s9] ss:$0 sm:$0xff]  ;;  %vm486_vm8 = vcmp.lt.s32.totalorder %v1102_v15, %v1105_v17 }
   0xc   :  { %831 = vmatpush3.bf16.msra.mxu0 %v828_v8  ;;  %v103_v26 = vsel %vm101_vm0, 1.0, %v971_v25  ;;  %v773_v61 = vld [vmem:[%s1364_s10] ss:$0 sm:$0xff] }
   0xd   :  { %833 = vmatprep.subr.bf16.mxu0 %v832_v13  ;;  %v51_v19 = vld [vmem:[%s1374_s25] sm:$0xff]  ;;  %v1118_v20 = vrot.slane %v1110_v18, %v91_v16  ;;  %v52_v24 = vld [vmem:[%s1374_s25 + $0x8] sm:$0xff]  ;;  %vm102_vm1 = vcmp.eq.s32.totalorder %v1123_v21, %v1105_v17  ;;  %vm487_vm12 = vcmp.lt.s32.totalorder %v1123_v21, %v1105_v17 }
   0xe   :  { %v104_v31 = vsel %vm102_vm1, 1.0, %v971_v25  ;;  %v776_v12 = vld [vmem:[#allocation2] ss:$0 sm:$0xff] }
  0x10   :  { %v863_v9 = vpop.eup %862  ;;  %835 = vmatpush3.bf16.msra.mxu0 %v832_v13 }
  0x11   :  { %64 = vperm.xlu0 %859, %v863_v9   ;;  %v865_v10 = vpop.eup %864 }
  0x15   :  { %69 = vperm.xlu0 %859, %v865_v10  }
  0x85   :  { %v1125_v22 = vpop.permute.xlu1 %76 }
  0x86   :  { %v86_v23 = vmul.f32 %v1125_v22, %v51_v19 }
  0x88   :  { %v94_v27 = vmul.f32 %v1118_v20, %v86_v23 }
  0x89   :  { %v1138_v28 = vpop.permute.xlu1 %81 }
  0x8a   :  { %v87_v29 = vmul.f32 %v1138_v28, %v52_v24  ;;  %v105_v30 = vadd.f32 %v103_v26, %v94_v27  ;;  %v406_v26 = vld [vmem:[%s1355_s1] sm:$0xff]  ;;  %v407_v27 = vld [vmem:[%s1355_s1 + $0x8] sm:$0xff] }
  0x8c   :  { %v95_v32 = vmul.f32 %v1118_v20, %v87_v29  ;;  %811 = vmatprep.mubr.msk.f32.mxu1 %vm107_vm2, %v105_v30  ;;  %v108_v33 = vsel %vm107_vm2, %v105_v30, 0.0 }
  0x8d   :  { %109 = vadd.xlane.f32.xlu0 %v108_v33 }
  0x8e   :  { %v106_v35 = vadd.f32 %v104_v31, %v95_v32  ;;  %v972_v31 = vmov 0.0|0.0  }
  0x8f   :  { %844 = vmatprep.subr.bf16.mxu0 %v972_v31 }
  0x90   :  { %v65_v36 = vpop.permute.xlu0 %64  ;;  %v111_v38 = vsel %vm107_vm2, %v106_v35, 0.0 }
  0x91   :  { %v72_v37 = vmul.f32 %v65_v36, %v53_v34  ;;  %112 = vadd.xlane.f32.xlu1 %v111_v38  ;;  %v1203_v38 = vld [vmem:[%s1356_s2] ss:$0 sm:$0xff]  ;;  %s975_s2 = smov [#allocation5]  }
  0x92   :  { %s720_s5 = sshll.u32 %s975_s2, 4  ;;  %s721_s5 = int_to_ptr.vmem [resolvable:$true] %s720_s5 }
  0x93   :  { %v84_v40 = vmul.f32 %v1125_v22, %v72_v37  ;;  %s876_s21 = scalar_lea.vmem %s721_s5, 256  ;;  %p881_p1 = scmp.lt.s32.totalorder %s721_s5, %s721_s5 }
  0x94   :  { %v70_v41 = vpop.permute.xlu0 %69  ;;  %p877_p0 = scmp.ne.s32.totalorder %s721_s5, %s876_s21  ;;  %p882_p2 = scmp.lt.s32.totalorder %s876_s21, %s876_s21 }
  0x95   :  { %v73_v42 = vmul.f32 %v70_v41, %v54_v39  ;;  %804 = vmatprep.mubr.msk.f32.mxu0 %vm1372_vm3, %v84_v40 }
  0x96   :  { %p883_p3 = por %p882_p2, %p881_p1 }
  0x97   :  { %v85_v43 = vmul.f32 %v1138_v28, %v73_v42 }
  0x98   :  { %p884_p4 = pnand %p883_p3, %p877_p0 }
  0x99   :  { %805 = vmatmul.mubr.msk.f32.vlgmr.msra.gmra.mrb[0].mxu0 %vm1372_vm3, %v85_v43 }
  0x9a   :  { %825 = vmatprep.mubr.msk.f32.mxu0 %vm973_vm5, %v971_v25 }
 0x11a   :  { %v110_v45 = vpop.xlane.xlu0 %109 }
 0x11e   :  { %v113_v44 = vpop.xlane.xlu1 %112 }
 0x11f   :  { %866 = vrsqrt.f32 %v113_v44 }
 0x120   :  { %868 = vrsqrt.f32 %v110_v45 }
 0x129   :  { %v867_v46 = vpop.eup %866 }
 0x12a   :  { %v869_v48 = vpop.eup %868 }
 0x16c   :  { %v806_v47 = vpop.f32.mrb[0].mxu0 }
 0x16d   :  { %v203_v49 = vmul.f32 %v867_v46, %v806_v47  ;;  %v193_v50 = vpop.f32.mrb[1].mxu0 }
 0x16e   :  { %v202_v51 = vmul.f32 %v869_v48, %v193_v50 }
 0x170   :  { %v836_v52 = vpack.c.bf16 %v203_v49, %v202_v51 }
 0x172   :  { %837 = vmatprep.subr.bf16.mxu1 %v836_v52 }
 0x173   :  { %839 = vmatpush3.bf16.msra.mxu1 %v836_v52 }
 0x176   :  { %812 = vmatmul.mubr.msk.f32.vlgmr.msra.gmra.mrb[0].mxu1 %vm107_vm2, %v106_v35 }
 0x177   :  { %818 = vmatprep.mubr.msk.f32.mxu1 %vm107_vm2, %v105_v30 }
 0x249   :  { %v813_v53 = vpop.f32.mrb[0].mxu1 }
 0x24a   :  { %v286_v55 = vmul.f32 %v867_v46, %v813_v53  ;;  %v276_v56 = vpop.f32.mrb[1].mxu1 }
 0x24b   :  { %v285_v57 = vmul.f32 %v869_v48, %v276_v56 }
 0x24c   :  { %v295_v58 = vadd.f32 %v772_v54, %v286_v55 }
 0x24d   :  { %v294_v59 = vadd.f32 %v772_v54, %v285_v57 }
 0x24e   :  { %v1164_v60 = vmax.f32 %v295_v58, 0.0 }
 0x24f   :  { %v1169_v62 = vmax.f32 %v294_v59, 0.0 }
 0x250   :  { %299 = vst.msk [vmem:[#allocation3 + $0x8] sm:$0xff] %vm1372_vm3, %v1164_v60  ;;  %v308_v2 = vmul.f32 %v773_v61, %v1164_v60 }
 0x251   :  { %298 = vst.msk [vmem:[#allocation3] sm:$0xff] %vm1372_vm3, %v1169_v62  ;;  %v307_v63 = vmul.f32 %v773_v61, %v1169_v62 }
 0x252   :  { %v312_v4 = vsel %vm1372_vm3, %v308_v2, 0.0 }
 0x253   :  { %v309_v0 = vsel %vm1372_vm3, %v307_v63, 0.0 }
 0x254   :  { %310 = vadd.xlane.f32.xlu0 %v309_v0 }
 0x258   :  { %313 = vadd.xlane.f32.xlu0 %v312_v4 }
 0x2e1   :  { %v311_v6 = vpop.xlane.xlu0 %310 }
 0x2e2   :  { %v315_v8 = vmul.f32 %v869_v48, %v311_v6 }
 0x2e5   :  { %v314_v7 = vpop.xlane.xlu0 %313 }
 0x2e6   :  { %v316_v9 = vmul.f32 %v867_v46, %v314_v7 }
 0x2e8   :  { %v840_v10 = vpack.c.bf16 %v316_v9, %v315_v8 }
 0x2ea   :  { %841 = vmatprep.subr.bf16.mxu1 %v840_v10 }
 0x2eb   :  { %843 = vmatpush3.bf16.msra.mxu1 %v840_v10 }
 0x2ee   :  { %819 = vmatmul.mubr.msk.f32.vlgmr.msra.gmra.mrb[2].mxu1 %vm107_vm2, %v106_v35 }
 0x3c1   :  { %v820_v11 = vpop.f32.mrb[2].mxu1 }
 0x3c2   :  { %v393_v13 = vmul.f32 %v867_v46, %v820_v11  ;;  %v383_v14 = vpop.f32.mrb[3].mxu1 }
 0x3c3   :  { %v392_v19 = vmul.f32 %v869_v48, %v383_v14 }
 0x3c4   :  { %v402_v23 = vadd.f32 %v776_v12, %v393_v13 }
 0x3c5   :  { %v401_v24 = vadd.f32 %v776_v12, %v392_v19 }
 0x3c6   :  { %430 = vperm.xlu0 %859, %v402_v23   ;;  %405 = vst.msk [vmem:[#allocation5 + $0x8] sm:$0xff] %vm403_vm4, %v402_v23 }
 0x3c7   :  { %870 = vtanh.f32 %v401_v24  ;;  %425 = vperm.xlu1 %860, %v401_v24   ;;  %404 = vst.msk [vmem:[#allocation5] sm:$0xff] %vm403_vm4, %v401_v24 }
 0x3c8   :  { %872 = vtanh.f32 %v402_v23 }
 0x3cb   :  { %410 = vperm.xlu1 %860, %v406_v26  }
 0x3cf   :  { %413 = vperm.xlu1 %860, %v407_v27  }
 0x3d1   :  { %v871_v29 = vpop.eup %870 }
 0x3d2   :  { %v873_v30 = vpop.eup %872  ;;  %529 = vperm.xlu0 %859, %v871_v29  }
 0x3d3   :  { %534 = vperm.xlu1 %860, %v873_v30  }
 0x445   :  { %v1189_v32 = vpop.permute.xlu0 %430 }
 0x446   :  { %v434_v33 = vsel %vm102_vm1, %v1189_v32, 0.0  ;;  %v426_v34 = vpop.permute.xlu1 %425  ;;  %vm448_vm1 = vcmp.lt.s32.totalorder %v1105_v17, %v1102_v15 }
 0x447   :  { %v436_v35 = vsel %vm107_vm2, %v434_v33, 0.0  ;;  %v433_v36 = vsel %vm101_vm0, %v426_v34, 0.0 }
 0x448   :  { %v435_v37 = vsel %vm107_vm2, %v433_v36, 0.0 }
 0x449   :  { %v437_v39 = vadd.f32 %v436_v35, %v435_v37 }
 0x44a   :  { %v1205_v40 = vpop.permute.xlu1 %410 }
 0x44b   :  { %v438_v41 = vrot.slane %v437_v39, 4  ;;  %vm419_vm6 = vcmp.eq.s32.totalorder %v1205_v40, %v1203_v38 }
 0x44c   :  { %v421_v42 = vsel %vm419_vm6, 1.0, %v971_v25 }
 0x44d   :  { %v439_v43 = vadd.f32 %v438_v41, %v437_v39  ;;  %v456_v44 = vmul.f32 %v421_v42, %v1118_v20  ;;  %v494_v45 = vmul.f32 %v421_v42, %v1125_v22 }
 0x44e   :  { %v1212_v46 = vpop.permute.xlu1 %413 }
 0x44f   :  { %v440_v47 = vrot.slane %v439_v43, 2  ;;  %vm420_vm7 = vcmp.eq.s32.totalorder %v1212_v46, %v1203_v38  ;;  %v466_v49 = vsel %vm107_vm2, %v456_v44, 0.0  ;;  %v507_v54 = vsel %vm107_vm2, %v494_v45, 0.0 }
 0x450   :  { %v422_v48 = vsel %vm420_vm7, 1.0, %v971_v25  ;;  %467 = vadd.xlane.f32.xlu0 %v466_v49 }
 0x451   :  { %v441_v50 = vadd.f32 %v440_v47, %v439_v43  ;;  %v495_v51 = vmul.f32 %v422_v48, %v1138_v28  ;;  %v530_v52 = vpop.permute.xlu0 %529  ;;  %v457_v53 = vmul.f32 %v422_v48, %v1118_v20 }
 0x452   :  { %v1222_v22 = vmul.f32 %v530_v52, %v1169_v62  ;;  %v535_v55 = vpop.permute.xlu1 %534 }
 0x453   :  { %v442_v56 = vrot.slane %v441_v50, 1  ;;  %v508_v57 = vsel %vm107_vm2, %v495_v51, 0.0  ;;  %v1226_v58 = vmul.f32 %v535_v55, %v1164_v60  ;;  %v469_v59 = vsel %vm107_vm2, %v457_v53, 0.0 }
 0x454   :  { %v509_v61 = vadd.f32 %v508_v57, %v507_v54  ;;  %470 = vadd.xlane.f32.xlu1 %v469_v59 }
 0x455   :  { %v443_v28 = vadd.f32 %v442_v56, %v441_v50  ;;  %v845_v20 = vpack.c.bf16 %v1226_v58, %v1222_v22 }
 0x456   :  { %v510_v62 = vrot.slane %v509_v61, 4 }
 0x457   :  { %vm482_vm9 = vcmp.gt.f32.partialorder %v426_v34, %v443_v28  ;;  %vm484_vm10 = vcmp.eq.f32.partialorder %v426_v34, %v443_v28  ;;  %vm485_vm11 = vcmp.eq.f32.partialorder %v1189_v32, %v443_v28  ;;  %846 = vmatpush3.bf16.msra.mxu0 %v845_v20  ;;  %vm483_vm14 = vcmp.gt.f32.partialorder %v1189_v32, %v443_v28 }
 0x458   :  { %vm488_vm13 = vmand %vm484_vm10, %vm486_vm8  ;;  %v511_v60 = vadd.f32 %v510_v62, %v509_v61  ;;  %vm446_vm0 = vcmp.eq.f32.partialorder %v443_v28, %v426_v34  ;;  %vm444_vm6 = vcmp.gt.f32.partialorder %v443_v28, %v426_v34  ;;  %vm447_vm3 = vcmp.eq.f32.partialorder %v443_v28, %v1189_v32 }
 0x459   :  { %vm490_vm15 = vmor %vm482_vm9, %vm488_vm13  ;;  %vm449_vm8 = vcmp.lt.s32.totalorder %v1105_v17, %v1123_v21  ;;  %vm445_vm10 = vcmp.gt.f32.partialorder %v443_v28, %v1189_v32 }
 0x45a   :  { %v492_v63 = vsel %vm490_vm15, 1.0, %v971_v25  ;;  %vm489_vm5 = vmand %vm485_vm11, %vm487_vm12  ;;  %v512_v0 = vrot.slane %v511_v60, 2  ;;  %vm523_vm15 = vcmask 122880  }
 0x45b   :  { %v496_v2 = vmul.f32 %v494_v45, %v492_v63  ;;  %vm491_vm7 = vmor %vm483_vm14, %vm489_vm5  ;;  %vm628_vm5 = vcmp.eq.s32.totalorder %v1205_v40, %v1105_v17  ;;  %v974_v40 = vmov 1  }
 0x45c   :  { %v493_v4 = vsel %vm491_vm7, 1.0, %v971_v25  ;;  %v513_v6 = vadd.f32 %v512_v0, %v511_v60  ;;  %vm450_vm9 = vmand %vm446_vm0, %vm448_vm1 }
 0x45d   :  { %v498_v7 = vsel %vm107_vm2, %v496_v2, 0.0  ;;  %v497_v8 = vmul.f32 %v495_v51, %v493_v4  ;;  %vm452_vm13 = vmor %vm444_vm6, %vm450_vm9  ;;  %vm629_vm6 = vcmp.eq.s32.totalorder %v1212_v46, %v1105_v17 }
 0x45e   :  { %v454_v9 = vsel %vm452_vm13, 1.0, %v971_v25  ;;  %vm451_vm11 = vmand %vm447_vm3, %vm449_vm8  ;;  %v514_v13 = vrot.slane %v513_v6, 1  ;;  %vm539_vm3 = vcmp.eq.s32.totalorder %v1102_v15, %v1203_v38 }
 0x45f   :  { %v499_v10 = vsel %vm107_vm2, %v497_v8, 0.0  ;;  %v458_v11 = vmul.f32 %v456_v44, %v454_v9  ;;  %vm453_vm12 = vmor %vm445_vm10, %vm451_vm11  ;;  %v540_v37 = vsel %vm539_vm3, 1.0, %v971_v25 }
 0x460   :  { %v500_v12 = vadd.f32 %v499_v10, %v498_v7  ;;  %v455_v21 = vsel %vm453_vm12, 1.0, %v971_v25  ;;  %v515_v26 = vadd.f32 %v514_v13, %v513_v6 }
 0x461   :  { %v460_v14 = vsel %vm107_vm2, %v458_v11, 0.0  ;;  %v459_v19 = vmul.f32 %v457_v53, %v455_v21 }
 0x462   :  { %v501_v23 = vrot.slane %v500_v12, 4  ;;  %461 = vadd.xlane.f32.xlu0 %v460_v14  ;;  %v516_v31 = vmul.f32 0.5, %v515_v26 }
 0x463   :  { %v463_v27 = vsel %vm107_vm2, %v459_v19, 0.0 }
 0x464   :  { %v502_v24 = vadd.f32 %v501_v23, %v500_v12  ;;  %v517_v34 = vceil.f32 %v516_v31 }
 0x466   :  { %v503_v29 = vrot.slane %v502_v24, 2  ;;  %464 = vadd.xlane.f32.xlu0 %v463_v27 }
 0x468   :  { %v504_v30 = vadd.f32 %v503_v29, %v502_v24 }
 0x46a   :  { %v505_v32 = vrot.slane %v504_v30, 1 }
 0x46c   :  { %v506_v33 = vadd.f32 %v505_v32, %v504_v30 }
 0x46e   :  { %vm518_vm14 = vcmp.lt.f32.partialorder %v506_v33, %v517_v34 }
 0x46f   :  { %v519_v35 = vsel %vm518_vm14, 1.0, %v971_v25 }
 0x470   :  { %v520_v36 = vmul.f32 %v519_v35, %v1110_v18 }
 0x472   :  { %v545_v39 = vrot.slane %v520_v36, %v91_v16  ;;  %524 = vst.msk [vmem:[#allocation8] sm:$0x1] %vm523_vm15, %v520_v36 }
 0x474   :  { %v547_v41 = vmul.f32 %v545_v39, %v540_v37 }
 0x476   :  { %826 = vmatmul.mubr.msk.f32.vlgmr.msra.gmra.mrb[2].mxu0 %vm107_vm2, %v547_v41  ;;  %vm548_vm2 = vcmask 123904  }
 0x477   :  { %v549_v52 = vsel %vm548_vm2, %v547_v41, 0.0 }
 0x4dd   :  { %v468_v42 = vpop.xlane.xlu0 %467 }
 0x4de   :  { %v472_v43 = vmul.f32 0.5, %v468_v42 }
 0x4e0   :  { %v474_v45 = vceil.f32 %v472_v43 }
 0x4e1   :  { %v471_v44 = vpop.xlane.xlu1 %470 }
 0x4e2   :  { %v473_v38 = vmul.f32 0.5, %v471_v44 }
 0x4e4   :  { %v475_v49 = vceil.f32 %v473_v38 }
 0x4ef   :  { %v462_v47 = vpop.xlane.xlu0 %461 }
 0x4f0   :  { %vm476_vm0 = vcmp.lt.f32.partialorder %v462_v47, %v474_v45 }
 0x4f1   :  { %v478_v48 = vsel %vm476_vm0, 1.0, %v971_v25 }
 0x4f2   :  { %v480_v18 = vmul.f32 %v478_v48, %v1073_v1  ;;  %v630_v1 = vsel %vm628_vm5, 1.0, %v971_v25 }
 0x4f3   :  { %v465_v50 = vpop.xlane.xlu0 %464 }
 0x4f4   :  { %521 = vst.msk [vmem:[#allocation7] sm:$0xff] %vm403_vm4, %v480_v18  ;;  %vm477_vm1 = vcmp.lt.f32.partialorder %v465_v50, %v475_v49  ;;  %634 = vperm.xlu1 %860, %v480_v18  }
 0x4f5   :  { %v479_v16 = vsel %vm477_vm1, 1.0, %v971_v25 }
 0x4f6   :  { %v481_v51 = vmul.f32 %v479_v16, %v1087_v5  ;;  %v631_v5 = vsel %vm629_vm6, 1.0, %v971_v25 }
 0x4f8   :  { %522 = vst.msk [vmem:[#allocation7 + $0x8] sm:$0xff] %vm403_vm4, %v481_v51  ;;  %639 = vperm.xlu0 %859, %v481_v51  }
 0x518   :  { %550 = vadd.xlane.f32.xlu1 %v549_v52 }
 0x549   :  { %v1265_v53 = vpop.f32.mrb[2].mxu0 }
 0x54a   :  { %v827_v54 = vpop.f32.mrb[3].mxu0 }
 0x573   :  { %v635_v55 = vpop.permute.xlu1 %634 }
 0x574   :  { %v642_v56 = vmul.f32 %v635_v55, %v630_v1 }
 0x576   :  { %vm644_vm7 = vcmp.gt.f32.partialorder %v642_v56, 0.5 }
 0x577   :  { %v640_v57 = vpop.permute.xlu0 %639  ;;  %v646_v59 = vsel %vm644_vm7, 1, %v970_v3 }
 0x578   :  { %v643_v61 = vmul.f32 %v640_v57, %v631_v5  ;;  %649 = vperm.xlu0 %859, %v646_v59  }
 0x57a   :  { %vm645_vm4 = vcmp.gt.f32.partialorder %v643_v61, 0.5 }
 0x57b   :  { %v647_v28 = vsel %vm645_vm4, 1, %v970_v3 }
 0x57c   :  { %652 = vperm.xlu0 %859, %v647_v28  }
 0x580   :  { %861 = vset.pattern.permute.xlu0 %v974_v40 }
 0x581   :  { %670 = vperm.xlu0 %861, %v646_v59  }
 0x585   :  { %673 = vperm.xlu0 %861, %v647_v28  }
 0x5a5   :  { %v1275_v20 = vpop.xlane.xlu1 %550 }
 0x5a6   :  { %v552_v17 = vmax.f32 %v1275_v20, 1.0 }
 0x5a8   :  { %874 = vrcp.f32 %v552_v17 }
 0x5a9   :  { %887 = shalt.err (!%p884_p4)
}
 0x5aa   :  { %s888_s24 = scalar_lea.hbm %s1367_s13, 256 }
 0x5ab   :  { %p889_p5 = scmp.ne.s32.totalorder %s1367_s13, %s888_s24  ;;  %p892_p6 = scmp.lt.u32.totalorder %s888_s24, %s1367_s13 }
 0x5ad   :  { %p894_p7 = pnand %p892_p6, %p889_p5 }
 0x5af   :  { %897 = shalt.err (!%p894_p7)
}
 0x5b0   :  { %s977_s27 = smov 128   ;;  %s978_s11 = smov 8  }
 0x5b1   :  { %726 = dma.vmem_to_hbm [thread:$0]  %s721_s5, 256, %s1367_s13, [#allocation6], %s977_s27, %s977_s27, %s978_s11  }
 0x5b2   :  { %s898_s29 = scalar_lea.vmem %s709_s20, 256  ;;  %p903_p9 = scmp.lt.s32.totalorder %s709_s20, %s709_s20 }
 0x5b3   :  { %p899_p8 = scmp.ne.s32.totalorder %s709_s20, %s898_s29  ;;  %p904_p10 = scmp.lt.s32.totalorder %s898_s29, %s898_s29 }
 0x5b5   :  { %p905_p11 = por %p904_p10, %p903_p9 }
 0x5b7   :  { %p906_p12 = pnand %p905_p11, %p899_p8 }
 0x5b9   :  { %909 = shalt.err (!%p906_p12)
}
 0x5ba   :  { %s910_s9 = scalar_lea.hbm %s1366_s12, 256 }
 0x5bb   :  { %p911_p13 = scmp.ne.s32.totalorder %s1366_s12, %s910_s9  ;;  %p914_p0 = scmp.lt.u32.totalorder %s910_s9, %s1366_s12 }
 0x5bd   :  { %p916_p1 = pnand %p914_p0, %p911_p13 }
 0x5bf   :  { %919 = shalt.err (!%p916_p1)
}
 0x5c0   :  { %714 = dma.vmem_to_hbm [thread:$0]  %s709_s20, 256, %s1366_s12, [#allocation4], %s977_s27, %s977_s27, %s978_s11   ;;  %v875_v3 = vpop.eup %874 }
 0x5c1   :  { %s979_s2 = smov [#allocation7]   ;;  %s980_s19 = smov [#allocation8]  }
 0x5c2   :  { %s732_s5 = sshll.u32 %s979_s2, 4  ;;  %s745_s21 = sshll.u32 %s980_s19, 4  ;;  %s733_s5 = int_to_ptr.vmem [resolvable:$true] %s732_s5  ;;  %s746_s21 = int_to_ptr.vmem [resolvable:$true] %s745_s21 }
 0x5c3   :  { %s920_s22 = scalar_lea.vmem %s733_s5, 256  ;;  %p925_p3 = scmp.lt.s32.totalorder %s733_s5, %s733_s5 }
 0x5c4   :  { %p921_p2 = scmp.ne.s32.totalorder %s733_s5, %s920_s22  ;;  %p926_p4 = scmp.lt.s32.totalorder %s920_s22, %s920_s22 }
 0x5c6   :  { %p927_p5 = por %p926_p4, %p925_p3 }
 0x5c8   :  { %p928_p6 = pnand %p927_p5, %p921_p2 }
 0x5ca   :  { %931 = shalt.err (!%p928_p6)
}
 0x5cb   :  { %s932_s25 = scalar_lea.hbm %s1368_s14, 256 }
 0x5cc   :  { %p933_p7 = scmp.ne.s32.totalorder %s1368_s14, %s932_s25  ;;  %p936_p8 = scmp.lt.u32.totalorder %s932_s25, %s1368_s14 }
 0x5ce   :  { %p938_p9 = pnand %p936_p8, %p933_p7 }
 0x5d0   :  { %941 = shalt.err (!%p938_p9)
}
 0x5d1   :  { %738 = dma.vmem_to_hbm [thread:$0]  %s733_s5, 256, %s1368_s14, [#allocation6], %s977_s27, %s977_s27, %s978_s11   ;;  %v627_v25 = vmul.f32 %v875_v3, %v1265_v53 }
 0x5d2   :  { %s942_s3 = scalar_lea.vmem %s746_s21, 16  ;;  %s946_s29 = scalar_lea.vmem %s746_s21, 32 }
 0x5d3   :  { %p943_p10 = scmp.ne.s32.totalorder %s746_s21, %s942_s3  ;;  %p947_p11 = scmp.lt.s32.totalorder %s746_s21, %s746_s21 }
 0x5d4   :  { %p948_p12 = scmp.lt.s32.totalorder %s946_s29, %s942_s3 }
 0x5d6   :  { %p949_p13 = por %p948_p12, %p947_p11 }
 0x5d8   :  { %p950_p0 = pnand %p949_p13, %p943_p10 }
 0x5da   :  { %953 = shalt.err (!%p950_p0)
}
 0x5db   :  { %s954_s9 = scalar_lea.hbm %s1369_s15, 16 }
 0x5dc   :  { %p955_p1 = scmp.ne.s32.totalorder %s1369_s15, %s954_s9  ;;  %p958_p2 = scmp.lt.u32.totalorder %s954_s9, %s1369_s15 }
 0x5de   :  { %p960_p3 = pnand %p958_p2, %p955_p1 }
 0x5e0   :  { %963 = shalt.err (!%p960_p3)
}
 0x5e1   :  { %748 = dma.vmem_to_hbm [thread:$0]  %s746_s21, 16, %s1369_s15, [#allocation9]   ;;  %vm1375_vm13 = vcmask 261120   ;;  %vm667_vm15 = vcmp.eq.s32.totalorder %v1102_v15, 0  ;;  %vm688_vm0 = vcmp.eq.s32.totalorder %v1102_v15, 1  ;;  %vm690_vm1 = vcmp.gt.f32.partialorder %v1275_v20, 0.5 }
 0x5e2   :  { %s981_s1 = smov 32   ;;  %vm1376_vm12 = vmmov %vm1375_vm13  ;;  %v694_v33 = vld [vmem:[%s1361_s7] sm:$0x3]  ;;  %vm701_vm2 = vcmask 517120  }
 0x5e3   :  { %696 = vrot.lane.b32.xlu0 %v627_v25, %s981_s1  ;;  %vm1377_vm3 = vmmov %vm1376_vm12 }
 0x5e4   :  { %vm1378_vm14 = vmmov %vm1377_vm3 }
 0x5e5   :  { %vm1379_vm5 = vmmov %vm1377_vm3 }
 0x5f7   :  { %v650_v46 = vpop.permute.xlu0 %649 }
 0x5f8   :  { %vm654_vm9 = vcmp.eq.s32.totalorder %v650_v46, 1 }
 0x5f9   :  { %v656_v0 = vsel %vm654_vm9, %v1222_v22, -inf }
 0x5fa   :  { %v658_v7 = vsel %vm1376_vm12, %v656_v0, -inf }
 0x5fb   :  { %v653_v62 = vpop.permute.xlu0 %652 }
 0x5fc   :  { %vm655_vm8 = vcmp.eq.s32.totalorder %v653_v62, 1 }
 0x5fd   :  { %v657_v63 = vsel %vm655_vm8, %v1226_v58, -inf }
 0x5fe   :  { %v659_v2 = vsel %vm1375_vm13, %v657_v63, -inf }
 0x5ff   :  { %v660_v9 = vmax.f32 %v658_v7, %v659_v2 }
 0x600   :  { %v671_v60 = vpop.permute.xlu0 %670 }
 0x601   :  { %vm675_vm10 = vcmp.eq.s32.totalorder %v671_v60, 1  ;;  %v661_v13 = vrot.slane %v660_v9, 4 }
 0x602   :  { %v677_v4 = vsel %vm675_vm10, %v1222_v22, -inf }
 0x603   :  { %v679_v10 = vsel %vm1377_vm3, %v677_v4, -inf  ;;  %v662_v14 = vmax.f32 %v660_v9, %v661_v13 }
 0x604   :  { %v674_v6 = vpop.permute.xlu0 %673 }
 0x605   :  { %vm676_vm11 = vcmp.eq.s32.totalorder %v674_v6, 1  ;;  %v663_v23 = vrot.slane %v662_v14, 2 }
 0x606   :  { %v678_v8 = vsel %vm676_vm11, %v1226_v58, -inf }
 0x607   :  { %v680_v11 = vsel %vm1378_vm14, %v678_v8, -inf  ;;  %v664_v26 = vmax.f32 %v662_v14, %v663_v23 }
 0x608   :  { %v681_v12 = vmax.f32 %v679_v10, %v680_v11 }
 0x609   :  { %v665_v27 = vrot.slane %v664_v26, 1 }
 0x60a   :  { %v682_v21 = vrot.slane %v681_v12, 4 }
 0x60b   :  { %v666_v30 = vmax.f32 %v664_v26, %v665_v27 }
 0x60c   :  { %v683_v19 = vmax.f32 %v681_v12, %v682_v21 }
 0x60d   :  { %v668_v31 = vsel %vm667_vm15, %v666_v30, 0.0 }
 0x60e   :  { %v684_v24 = vrot.slane %v683_v19, 2 }
 0x610   :  { %v685_v22 = vmax.f32 %v683_v19, %v684_v24 }
 0x612   :  { %v686_v29 = vrot.slane %v685_v22, 1 }
 0x614   :  { %v687_v58 = vmax.f32 %v685_v22, %v686_v29 }
 0x616   :  { %v689_v32 = vsel %vm688_vm0, %v687_v58, %v668_v31 }
 0x617   :  { %v693_v34 = vsel %vm690_vm1, %v689_v32, 0.0 }
 0x655   :  { %v697_v35 = vpop.permute.xlu0 %696 }
 0x656   :  { %v699_v36 = vsel %vm1379_vm5, %v693_v34, %v697_v35 }
 0x657   :  { %v700_v37 = vadd.f32 %v699_v36, %v694_v33 }
 0x659   :  { %702 = vst.msk [vmem:[%s1370_s16] sm:$0x3] %vm701_vm2, %v700_v37 }
 0x65a   :  { %964 = dma.done.wait [#allocation4], 256  }
 0x65b   :  { %965 = vsyncadd [#allocation4], 4294967040 }
 0x65c   :  { %966 = dma.done.wait [#allocation6], 512  }
 0x65d   :  { %967 = vsyncadd [#allocation6], 4294966784 }
 0x65e   :  { %968 = dma.done.wait [#allocation9], 16  }
 0x65f   :  { %969 = vsyncadd [#allocation9], 4294967280 }
 0x660   :  { %765 = vsyncpa [#allocation4], 1 }
 0x661   :  { %766 = vsyncpa [#allocation6], 1 }
 0x662   :  { %767 = vsyncpa [#allocation9], 1 }

// kernel: net_forward.5
= control target key start
LH: loop header
LB: loop body
LE: loop exit
PB: predicated region body
PF: predicated region fallthrough
CT: control target
= control target key end

     0   :  { %v822_v0 = vmov 0   ;;  %v86_v13 = vlaneseq  ;;  %v823_v24 = vmov 0.0   ;;  %vm104_vm2 = vcmask 130048   ;;  %s1157_s5 = inlined_call_operand.vmem [shape: f32[16,1], index: 5, kind: input, shape index: {}]   ;;  %s1158_s4 = inlined_call_operand.vmem [shape: f32[16,1], index: 4, kind: input, shape index: {}]   ;;  %s1159_s8 = inlined_call_operand.vmem [shape: f32[32,32], index: 8, kind: input, shape index: {}]   ;;  %s1160_s6 = inlined_call_operand.vmem [shape: f32[1,16], index: 6, kind: input, shape index: {}]   ;;  %s1161_s0 = inlined_call_operand.vmem [shape: f32[16,16], index: 0, kind: input, shape index: {}]   ;;  %s1162_s3 = inlined_call_operand.vmem [shape: f32[16,32], index: 3, kind: input, shape index: {}]   ;;  %s1163_s9 = inlined_call_operand.vmem [shape: f32[1,32], index: 9, kind: input, shape index: {}]   ;;  %s1164_s10 = inlined_call_operand.vmem [shape: f32[1,32], index: 10, kind: input, shape index: {}]   ;;  %s1165_s12 = inlined_call_operand.vmem [shape: f32[16,32], index: 12, kind: output, shape index: {0}]   ;;  %s1166_s11 = inlined_call_operand.<no memory space> [shape: f32[1,1], index: 11, kind: input, shape index: {}]   ;;  %s1167_s13 = inlined_call_operand.vmem [shape: f32[16,1], index: 13, kind: output, shape index: {1}]   ;;  %s1168_s1 = inlined_call_operand.vmem [shape: s32[16,1], index: 1, kind: input, shape index: {}]   ;;  %s1169_s2 = inlined_call_operand.vmem [shape: s32[1,16], index: 2, kind: input, shape index: {}]   ;;  %s1170_s15 = inlined_call_operand.vmem [shape: f32[1,16], index: 15, kind: output, shape index: {3}]   ;;  %s1171_s14 = inlined_call_operand.vmem [shape: f32[16,1], index: 14, kind: output, shape index: {2}]   ;;  %s1172_s7 = inlined_call_operand.vmem [shape: f32[2,64], index: 7, kind: input, shape index: {}]   ;;  %s1173_s16 = inlined_call_operand.vmem [shape: f32[2,64], index: 16, kind: output, shape index: {4}]  }
   0x1   :  { %1176 = sst [smem:[#allocation3_spill]] %s1157_s5  ;;  %806 = vset.pattern.permute.xlu1 %v822_v0  ;;  %805 = vset.pattern.permute.xlu0 %v822_v0  ;;  %v55_v2 = vld [vmem:[%s1158_s4] sm:$0xff]  ;;  %v56_v3 = vld [vmem:[%s1158_s4 + $0x8] sm:$0xff]  ;;  %v115_v10 = vld [vmem:[%s1159_s8 + $0x10] sm:$0xff]  ;;  %vm1175_vm3 = vcmask 261120   ;;  %vm400_vm4 = vcmask 7168  }
   0x2   :  { %s1177_s23 = sld [smem:[#allocation3_spill]]  ;;  %808 = vtanh.f32 %v55_v2  ;;  %v113_v5 = vld [vmem:[%s1159_s8] sm:$0xff]  ;;  %v114_v6 = vld [vmem:[%s1159_s8 + $0x8] sm:$0xff]  ;;  %v116_v11 = vld [vmem:[%s1159_s8 + $0x18] sm:$0xff]  ;;  %v945_v14 = vshrl.u32 %v86_v13, 7  ;;  %v948_v16 = vand.u32 127, %v86_v13 }
   0x3   :  { %810 = vtanh.f32 %v56_v3  ;;  %v780_v7 = vpack.c.bf16 %v114_v6, %v113_v5  ;;  %v784_v12 = vpack.c.bf16 %v116_v11, %v115_v10  ;;  %v953_v17 = vld [vmem:[%s1160_s6] sm:$0x1]  ;;  %v49_v23 = vld [vmem:[%s1161_s0 + $0x8] sm:$0xff]  ;;  %v22_v5 = vstv %s1166_s11 }
   0x4   :  { %v88_v15 = vsub.s32 0, %v945_v14  ;;  %v48_v18 = vld [vmem:[%s1161_s0] sm:$0xff]  ;;  %vm98_vm0 = vcmp.eq.s32.totalorder %v945_v14, %v948_v16  ;;  %v966_v20 = vadd.s32 8, %v945_v14  ;;  %v51_v38 = vld [vmem:[%s1162_s3 + $0x8] sm:$0xff]  ;;  %23 = vst [vmem:[#allocation2] sm:$0x1] %v22_v5  ;;  %vm483_vm8 = vcmp.lt.s32.totalorder %v945_v14, %v948_v16 }
   0x5   :  { %781 = vmatprep.subr.bf16.mxu0 %v780_v7  ;;  %v100_v25 = vsel %vm98_vm0, 1.0, %v823_v24  ;;  %v50_v33 = vld [vmem:[%s1162_s3] sm:$0xff]  ;;  %vm825_vm5 = vmmov 0  }
   0x6   :  { %783 = vmatpush3.bf16.msra.mxu0 %v780_v7  ;;  %v961_v19 = vrot.slane %v953_v17, %v88_v15  ;;  %vm99_vm1 = vcmp.eq.s32.totalorder %v966_v20, %v948_v16  ;;  %v724_v53 = vld [vmem:[%s1163_s9] ss:$0 sm:$0xff]  ;;  %vm484_vm12 = vcmp.lt.s32.totalorder %v966_v20, %v948_v16 }
   0x7   :  { %785 = vmatprep.subr.bf16.mxu0 %v784_v12  ;;  %v101_v30 = vsel %vm99_vm1, 1.0, %v823_v24  ;;  %v725_v60 = vld [vmem:[%s1164_s10] ss:$0 sm:$0xff] }
   0x8   :  { %v917_v1 = vld [vmem:[%s1177_s23] sm:$0xff]  ;;  %v930_v4 = vld [vmem:[%s1177_s23 + $0x8] sm:$0xff] }
   0x9   :  { %73 = vperm.xlu1 %806, %v917_v1  }
   0xa   :  { %787 = vmatpush3.bf16.msra.mxu0 %v784_v12 }
   0xb   :  { %v728_v12 = vld [vmem:[#allocation2] ss:$0 sm:$0xff] }
   0xc   :  { %v809_v8 = vpop.eup %808 }
   0xd   :  { %78 = vperm.xlu1 %806, %v930_v4   ;;  %61 = vperm.xlu0 %805, %v809_v8   ;;  %v811_v9 = vpop.eup %810 }
  0x11   :  { %66 = vperm.xlu0 %805, %v811_v9  }
  0x88   :  { %v968_v21 = vpop.permute.xlu1 %73 }
  0x89   :  { %v83_v22 = vmul.f32 %v968_v21, %v48_v18 }
  0x8b   :  { %v91_v26 = vmul.f32 %v961_v19, %v83_v22 }
  0x8c   :  { %v981_v27 = vpop.permute.xlu1 %78  ;;  %v62_v35 = vpop.permute.xlu0 %61 }
  0x8d   :  { %v84_v28 = vmul.f32 %v981_v27, %v49_v23  ;;  %v102_v29 = vadd.f32 %v100_v25, %v91_v26  ;;  %v69_v37 = vmul.f32 %v62_v35, %v50_v33  ;;  %v403_v26 = vld [vmem:[%s1168_s1] sm:$0xff] }
  0x8f   :  { %v92_v31 = vmul.f32 %v961_v19, %v84_v28  ;;  %763 = vmatprep.mubr.msk.f32.mxu1 %vm104_vm2, %v102_v29  ;;  %v105_v32 = vsel %vm104_vm2, %v102_v29, 0.0  ;;  %v81_v39 = vmul.f32 %v968_v21, %v69_v37  ;;  %v404_v28 = vld [vmem:[%s1168_s1 + $0x8] sm:$0xff] }
  0x90   :  { %106 = vadd.xlane.f32.xlu0 %v105_v32  ;;  %v67_v40 = vpop.permute.xlu0 %66 }
  0x91   :  { %v103_v34 = vadd.f32 %v101_v30, %v92_v31  ;;  %v70_v41 = vmul.f32 %v67_v40, %v51_v38  ;;  %756 = vmatprep.mubr.msk.f32.mxu0 %vm1175_vm3, %v81_v39  ;;  %v824_v31 = vmov 0.0|0.0   ;;  %v1061_v38 = vld [vmem:[%s1169_s2] ss:$0 sm:$0xff] }
  0x92   :  { %796 = vmatprep.subr.bf16.mxu0 %v824_v31 }
  0x93   :  { %v108_v36 = vsel %vm104_vm2, %v103_v34, 0.0  ;;  %v82_v42 = vmul.f32 %v981_v27, %v70_v41 }
  0x94   :  { %109 = vadd.xlane.f32.xlu1 %v108_v36 }
  0x95   :  { %757 = vmatmul.mubr.msk.f32.vlgmr.msra.gmra.mrb[0].mxu0 %vm1175_vm3, %v82_v42 }
  0x96   :  { %777 = vmatprep.mubr.msk.f32.mxu0 %vm825_vm5, %v823_v24 }
 0x11d   :  { %v107_v44 = vpop.xlane.xlu0 %106 }
 0x121   :  { %v110_v43 = vpop.xlane.xlu1 %109 }
 0x122   :  { %812 = vrsqrt.f32 %v110_v43 }
 0x123   :  { %814 = vrsqrt.f32 %v107_v44 }
 0x12c   :  { %v813_v45 = vpop.eup %812 }
 0x12d   :  { %v815_v47 = vpop.eup %814 }
 0x168   :  { %v758_v46 = vpop.f32.mrb[0].mxu0 }
 0x169   :  { %v200_v48 = vmul.f32 %v813_v45, %v758_v46  ;;  %v190_v49 = vpop.f32.mrb[1].mxu0 }
 0x16a   :  { %v199_v50 = vmul.f32 %v815_v47, %v190_v49 }
 0x16c   :  { %v788_v51 = vpack.c.bf16 %v200_v48, %v199_v50 }
 0x16e   :  { %789 = vmatprep.subr.bf16.mxu1 %v788_v51 }
 0x16f   :  { %791 = vmatpush3.bf16.msra.mxu1 %v788_v51 }
 0x172   :  { %764 = vmatmul.mubr.msk.f32.vlgmr.msra.gmra.mrb[0].mxu1 %vm104_vm2, %v103_v34 }
 0x173   :  { %770 = vmatprep.mubr.msk.f32.mxu1 %vm104_vm2, %v102_v29 }
 0x245   :  { %v765_v52 = vpop.f32.mrb[0].mxu1 }
 0x246   :  { %v283_v54 = vmul.f32 %v813_v45, %v765_v52  ;;  %v273_v55 = vpop.f32.mrb[1].mxu1 }
 0x247   :  { %v282_v56 = vmul.f32 %v815_v47, %v273_v55 }
 0x248   :  { %v292_v57 = vadd.f32 %v724_v53, %v283_v54 }
 0x249   :  { %v291_v58 = vadd.f32 %v724_v53, %v282_v56 }
 0x24a   :  { %v1007_v59 = vmax.f32 %v292_v57, 0.0 }
 0x24b   :  { %v1012_v61 = vmax.f32 %v291_v58, 0.0 }
 0x24c   :  { %296 = vst.msk [vmem:[%s1165_s12 + $0x8] sm:$0xff] %vm1175_vm3, %v1007_v59  ;;  %v305_v2 = vmul.f32 %v725_v60, %v1007_v59 }
 0x24d   :  { %295 = vst.msk [vmem:[%s1165_s12] sm:$0xff] %vm1175_vm3, %v1012_v61  ;;  %v304_v62 = vmul.f32 %v725_v60, %v1012_v61 }
 0x24e   :  { %v309_v3 = vsel %vm1175_vm3, %v305_v2, 0.0 }
 0x24f   :  { %v306_v63 = vsel %vm1175_vm3, %v304_v62, 0.0 }
 0x250   :  { %307 = vadd.xlane.f32.xlu0 %v306_v63 }
 0x254   :  { %310 = vadd.xlane.f32.xlu0 %v309_v3 }
 0x2dd   :  { %v308_v6 = vpop.xlane.xlu0 %307 }
 0x2de   :  { %v312_v8 = vmul.f32 %v815_v47, %v308_v6 }
 0x2e1   :  { %v311_v7 = vpop.xlane.xlu0 %310 }
 0x2e2   :  { %v313_v9 = vmul.f32 %v813_v45, %v311_v7 }
 0x2e4   :  { %v792_v10 = vpack.c.bf16 %v313_v9, %v312_v8 }
 0x2e6   :  { %793 = vmatprep.subr.bf16.mxu1 %v792_v10 }
 0x2e7   :  { %795 = vmatpush3.bf16.msra.mxu1 %v792_v10 }
 0x2ea   :  { %771 = vmatmul.mubr.msk.f32.vlgmr.msra.gmra.mrb[2].mxu1 %vm104_vm2, %v103_v34 }
 0x3bd   :  { %v772_v11 = vpop.f32.mrb[2].mxu1 }
 0x3be   :  { %v390_v13 = vmul.f32 %v813_v45, %v772_v11  ;;  %v380_v18 = vpop.f32.mrb[3].mxu1 }
 0x3bf   :  { %v389_v22 = vmul.f32 %v815_v47, %v380_v18 }
 0x3c0   :  { %v399_v23 = vadd.f32 %v728_v12, %v390_v13 }
 0x3c1   :  { %v398_v25 = vadd.f32 %v728_v12, %v389_v22 }
 0x3c2   :  { %402 = vst.msk [vmem:[%s1167_s13 + $0x8] sm:$0xff] %vm400_vm4, %v399_v23  ;;  %427 = vperm.xlu0 %805, %v399_v23  }
 0x3c3   :  { %401 = vst.msk [vmem:[%s1167_s13] sm:$0xff] %vm400_vm4, %v398_v25  ;;  %816 = vtanh.f32 %v398_v25  ;;  %422 = vperm.xlu1 %806, %v398_v25  }
 0x3c4   :  { %818 = vtanh.f32 %v399_v23 }
 0x3c7   :  { %407 = vperm.xlu1 %806, %v403_v26  }
 0x3cb   :  { %410 = vperm.xlu1 %806, %v404_v28  }
 0x3cd   :  { %v817_v29 = vpop.eup %816 }
 0x3ce   :  { %v819_v30 = vpop.eup %818  ;;  %526 = vperm.xlu0 %805, %v817_v29  }
 0x3cf   :  { %531 = vperm.xlu1 %806, %v819_v30  }
 0x441   :  { %v1047_v32 = vpop.permute.xlu0 %427 }
 0x442   :  { %v431_v33 = vsel %vm99_vm1, %v1047_v32, 0.0  ;;  %v423_v34 = vpop.permute.xlu1 %422  ;;  %vm445_vm1 = vcmp.lt.s32.totalorder %v948_v16, %v945_v14 }
 0x443   :  { %v433_v35 = vsel %vm104_vm2, %v431_v33, 0.0  ;;  %v430_v36 = vsel %vm98_vm0, %v423_v34, 0.0 }
 0x444   :  { %v432_v37 = vsel %vm104_vm2, %v430_v36, 0.0 }
 0x445   :  { %v434_v39 = vadd.f32 %v433_v35, %v432_v37 }
 0x446   :  { %v1063_v40 = vpop.permute.xlu1 %407 }
 0x447   :  { %v435_v41 = vrot.slane %v434_v39, 4  ;;  %vm416_vm6 = vcmp.eq.s32.totalorder %v1063_v40, %v1061_v38 }
 0x448   :  { %v418_v42 = vsel %vm416_vm6, 1.0, %v823_v24 }
 0x449   :  { %v436_v43 = vadd.f32 %v435_v41, %v434_v39  ;;  %v453_v44 = vmul.f32 %v418_v42, %v961_v19  ;;  %v491_v45 = vmul.f32 %v418_v42, %v968_v21 }
 0x44a   :  { %v1070_v46 = vpop.permute.xlu1 %410 }
 0x44b   :  { %v437_v47 = vrot.slane %v436_v43, 2  ;;  %vm417_vm7 = vcmp.eq.s32.totalorder %v1070_v46, %v1061_v38  ;;  %v463_v49 = vsel %vm104_vm2, %v453_v44, 0.0  ;;  %v504_v54 = vsel %vm104_vm2, %v491_v45, 0.0 }
 0x44c   :  { %v419_v48 = vsel %vm417_vm7, 1.0, %v823_v24  ;;  %464 = vadd.xlane.f32.xlu0 %v463_v49 }
 0x44d   :  { %v438_v50 = vadd.f32 %v437_v47, %v436_v43  ;;  %v492_v51 = vmul.f32 %v419_v48, %v981_v27  ;;  %v527_v52 = vpop.permute.xlu0 %526  ;;  %v454_v53 = vmul.f32 %v419_v48, %v961_v19 }
 0x44e   :  { %v1080_v21 = vmul.f32 %v527_v52, %v1012_v61  ;;  %v532_v55 = vpop.permute.xlu1 %531 }
 0x44f   :  { %v439_v56 = vrot.slane %v438_v50, 1  ;;  %v505_v57 = vsel %vm104_vm2, %v492_v51, 0.0  ;;  %v1084_v58 = vmul.f32 %v532_v55, %v1007_v59  ;;  %v466_v60 = vsel %vm104_vm2, %v454_v53, 0.0 }
 0x450   :  { %v506_v62 = vadd.f32 %v505_v57, %v504_v54  ;;  %467 = vadd.xlane.f32.xlu1 %v466_v60 }
 0x451   :  { %v440_v27 = vadd.f32 %v439_v56, %v438_v50  ;;  %v797_v19 = vpack.c.bf16 %v1084_v58, %v1080_v21 }
 0x452   :  { %v507_v61 = vrot.slane %v506_v62, 4 }
 0x453   :  { %vm479_vm9 = vcmp.gt.f32.partialorder %v423_v34, %v440_v27  ;;  %vm481_vm10 = vcmp.eq.f32.partialorder %v423_v34, %v440_v27  ;;  %vm482_vm11 = vcmp.eq.f32.partialorder %v1047_v32, %v440_v27  ;;  %798 = vmatpush3.bf16.msra.mxu0 %v797_v19  ;;  %vm480_vm14 = vcmp.gt.f32.partialorder %v1047_v32, %v440_v27 }
 0x454   :  { %vm485_vm13 = vmand %vm481_vm10, %vm483_vm8  ;;  %v508_v59 = vadd.f32 %v507_v61, %v506_v62  ;;  %vm443_vm0 = vcmp.eq.f32.partialorder %v440_v27, %v423_v34  ;;  %vm441_vm6 = vcmp.gt.f32.partialorder %v440_v27, %v423_v34  ;;  %vm444_vm3 = vcmp.eq.f32.partialorder %v440_v27, %v1047_v32 }
 0x455   :  { %vm487_vm15 = vmor %vm479_vm9, %vm485_vm13  ;;  %vm446_vm8 = vcmp.lt.s32.totalorder %v948_v16, %v966_v20  ;;  %vm442_vm10 = vcmp.gt.f32.partialorder %v440_v27, %v1047_v32 }
 0x456   :  { %v489_v63 = vsel %vm487_vm15, 1.0, %v823_v24  ;;  %vm486_vm5 = vmand %vm482_vm11, %vm484_vm12  ;;  %v509_v2 = vrot.slane %v508_v59, 2  ;;  %vm520_vm15 = vcmask 122880  }
 0x457   :  { %v493_v3 = vmul.f32 %v491_v45, %v489_v63  ;;  %vm488_vm7 = vmor %vm480_vm14, %vm486_vm5  ;;  %vm625_vm5 = vcmp.eq.s32.totalorder %v1063_v40, %v948_v16  ;;  %v826_v40 = vmov 1  }
 0x458   :  { %v490_v5 = vsel %vm488_vm7, 1.0, %v823_v24  ;;  %v510_v6 = vadd.f32 %v509_v2, %v508_v59  ;;  %vm447_vm9 = vmand %vm443_vm0, %vm445_vm1  ;;  %v627_v54 = vsel %vm625_vm5, 1.0, %v823_v24 }
 0x459   :  { %v495_v7 = vsel %vm104_vm2, %v493_v3, 0.0  ;;  %v494_v8 = vmul.f32 %v492_v51, %v490_v5  ;;  %vm449_vm13 = vmor %vm441_vm6, %vm447_vm9  ;;  %vm626_vm6 = vcmp.eq.s32.totalorder %v1070_v46, %v948_v16 }
 0x45a   :  { %v451_v9 = vsel %vm449_vm13, 1.0, %v823_v24  ;;  %vm448_vm11 = vmand %vm444_vm3, %vm446_vm8  ;;  %v511_v13 = vrot.slane %v510_v6, 1  ;;  %vm536_vm3 = vcmp.eq.s32.totalorder %v945_v14, %v1061_v38  ;;  %v628_v56 = vsel %vm626_vm6, 1.0, %v823_v24 }
 0x45b   :  { %v496_v10 = vsel %vm104_vm2, %v494_v8, 0.0  ;;  %v455_v11 = vmul.f32 %v453_v44, %v451_v9  ;;  %vm450_vm12 = vmor %vm442_vm10, %vm448_vm11  ;;  %v537_v37 = vsel %vm536_vm3, 1.0, %v823_v24  ;;  %vm1178_vm13 = vcmask 261120  }
 0x45c   :  { %v497_v12 = vadd.f32 %v496_v10, %v495_v7  ;;  %v452_v20 = vsel %vm450_vm12, 1.0, %v823_v24  ;;  %v512_v26 = vadd.f32 %v511_v13, %v510_v6  ;;  %vm1179_vm12 = vmmov %vm1178_vm13 }
 0x45d   :  { %v457_v18 = vsel %vm104_vm2, %v455_v11, 0.0  ;;  %v456_v22 = vmul.f32 %v454_v53, %v452_v20  ;;  %vm1180_vm3 = vmmov %vm1179_vm12 }
 0x45e   :  { %v498_v23 = vrot.slane %v497_v12, 4  ;;  %458 = vadd.xlane.f32.xlu0 %v457_v18  ;;  %v513_v31 = vmul.f32 0.5, %v512_v26  ;;  %vm1182_vm5 = vmmov %vm1180_vm3 }
 0x45f   :  { %v460_v28 = vsel %vm104_vm2, %v456_v22, 0.0 }
 0x460   :  { %v499_v25 = vadd.f32 %v498_v23, %v497_v12  ;;  %v514_v34 = vceil.f32 %v513_v31 }
 0x462   :  { %v500_v29 = vrot.slane %v499_v25, 2  ;;  %461 = vadd.xlane.f32.xlu0 %v460_v28 }
 0x464   :  { %v501_v30 = vadd.f32 %v500_v29, %v499_v25 }
 0x466   :  { %v502_v32 = vrot.slane %v501_v30, 1 }
 0x468   :  { %v503_v33 = vadd.f32 %v502_v32, %v501_v30 }
 0x46a   :  { %vm515_vm14 = vcmp.lt.f32.partialorder %v503_v33, %v514_v34  ;;  %v691_v33 = vld [vmem:[%s1172_s7] sm:$0x3] }
 0x46b   :  { %v516_v35 = vsel %vm515_vm14, 1.0, %v823_v24  ;;  %vm1181_vm14 = vmmov %vm1180_vm3 }
 0x46c   :  { %v517_v36 = vmul.f32 %v516_v35, %v953_v17 }
 0x46e   :  { %521 = vst.msk [vmem:[%s1170_s15] sm:$0x1] %vm520_vm15, %v517_v36  ;;  %v542_v39 = vrot.slane %v517_v36, %v88_v15  ;;  %vm664_vm15 = vcmp.eq.s32.totalorder %v945_v14, 0 }
 0x470   :  { %v544_v41 = vmul.f32 %v542_v39, %v537_v37 }
 0x472   :  { %778 = vmatmul.mubr.msk.f32.vlgmr.msra.gmra.mrb[2].mxu0 %vm104_vm2, %v544_v41  ;;  %vm545_vm2 = vcmask 123904  }
 0x4d9   :  { %v465_v42 = vpop.xlane.xlu0 %464 }
 0x4da   :  { %v469_v38 = vmul.f32 0.5, %v465_v42 }
 0x4dc   :  { %v471_v44 = vceil.f32 %v469_v38 }
 0x4dd   :  { %v468_v43 = vpop.xlane.xlu1 %467 }
 0x4de   :  { %v470_v45 = vmul.f32 0.5, %v468_v43 }
 0x4e0   :  { %v472_v48 = vceil.f32 %v470_v45 }
 0x4eb   :  { %v459_v47 = vpop.xlane.xlu0 %458 }
 0x4ec   :  { %vm473_vm0 = vcmp.lt.f32.partialorder %v459_v47, %v471_v44 }
 0x4ed   :  { %v475_v17 = vsel %vm473_vm0, 1.0, %v823_v24  ;;  %vm685_vm0 = vcmp.eq.s32.totalorder %v945_v14, 1 }
 0x4ee   :  { %v477_v49 = vmul.f32 %v475_v17, %v917_v1  ;;  %v546_v1 = vsel %vm545_vm2, %v544_v41, 0.0  ;;  %vm698_vm2 = vcmask 517120  }
 0x4ef   :  { %v462_v50 = vpop.xlane.xlu0 %461 }
 0x4f0   :  { %518 = vst.msk [vmem:[%s1171_s14] sm:$0xff] %vm400_vm4, %v477_v49  ;;  %vm474_vm1 = vcmp.lt.f32.partialorder %v462_v50, %v472_v48  ;;  %631 = vperm.xlu1 %806, %v477_v49  }
 0x4f1   :  { %v476_v15 = vsel %vm474_vm1, 1.0, %v823_v24 }
 0x4f2   :  { %v478_v51 = vmul.f32 %v476_v15, %v930_v4 }
 0x4f4   :  { %519 = vst.msk [vmem:[%s1171_s14 + $0x8] sm:$0xff] %vm400_vm4, %v478_v51  ;;  %636 = vperm.xlu0 %805, %v478_v51   ;;  %s827_s14 = smov 32  }
 0x514   :  { %547 = vadd.xlane.f32.xlu1 %v546_v1 }
 0x545   :  { %v620_v52 = vpop.f32.mrb[2].mxu0 }
 0x546   :  { %v779_v53 = vpop.f32.mrb[3].mxu0 }
 0x56f   :  { %v632_v55 = vpop.permute.xlu1 %631 }
 0x570   :  { %v639_v4 = vmul.f32 %v632_v55, %v627_v54 }
 0x572   :  { %vm641_vm7 = vcmp.gt.f32.partialorder %v639_v4, 0.5 }
 0x573   :  { %v637_v57 = vpop.permute.xlu0 %636  ;;  %v643_v60 = vsel %vm641_vm7, 1, %v822_v0 }
 0x574   :  { %v640_v62 = vmul.f32 %v637_v57, %v628_v56  ;;  %646 = vperm.xlu0 %805, %v643_v60  }
 0x576   :  { %vm642_vm4 = vcmp.gt.f32.partialorder %v640_v62, 0.5 }
 0x577   :  { %v644_v27 = vsel %vm642_vm4, 1, %v822_v0 }
 0x578   :  { %649 = vperm.xlu0 %805, %v644_v27  }
 0x57c   :  { %807 = vset.pattern.permute.xlu0 %v826_v40 }
 0x57d   :  { %667 = vperm.xlu0 %807, %v643_v60  }
 0x581   :  { %670 = vperm.xlu0 %807, %v644_v27  }
 0x5a1   :  { %v548_v19 = vpop.xlane.xlu1 %547 }
 0x5a2   :  { %v549_v61 = vmax.f32 %v548_v19, 1.0  ;;  %vm687_vm1 = vcmp.gt.f32.partialorder %v548_v19, 0.5 }
 0x5a4   :  { %820 = vrcp.f32 %v549_v61 }
 0x5ae   :  { %v821_v16 = vpop.eup %820 }
 0x5af   :  { %v624_v46 = vmul.f32 %v821_v16, %v620_v52 }
 0x5b1   :  { %693 = vrot.lane.b32.xlu0 %v624_v46, %s827_s14 }
 0x5f3   :  { %v647_v24 = vpop.permute.xlu0 %646 }
 0x5f4   :  { %vm651_vm9 = vcmp.eq.s32.totalorder %v647_v24, 1 }
 0x5f5   :  { %v653_v0 = vsel %vm651_vm9, %v1080_v21, -inf }
 0x5f6   :  { %v655_v7 = vsel %vm1179_vm12, %v653_v0, -inf }
 0x5f7   :  { %v650_v59 = vpop.permute.xlu0 %649 }
 0x5f8   :  { %vm652_vm8 = vcmp.eq.s32.totalorder %v650_v59, 1 }
 0x5f9   :  { %v654_v2 = vsel %vm652_vm8, %v1084_v58, -inf }
 0x5fa   :  { %v656_v3 = vsel %vm1178_vm13, %v654_v2, -inf }
 0x5fb   :  { %v657_v9 = vmax.f32 %v655_v7, %v656_v3 }
 0x5fc   :  { %v668_v63 = vpop.permute.xlu0 %667 }
 0x5fd   :  { %vm672_vm10 = vcmp.eq.s32.totalorder %v668_v63, 1  ;;  %v658_v13 = vrot.slane %v657_v9, 4 }
 0x5fe   :  { %v674_v5 = vsel %vm672_vm10, %v1080_v21, -inf }
 0x5ff   :  { %v676_v10 = vsel %vm1180_vm3, %v674_v5, -inf  ;;  %v659_v18 = vmax.f32 %v657_v9, %v658_v13 }
 0x600   :  { %v671_v6 = vpop.permute.xlu0 %670 }
 0x601   :  { %vm673_vm11 = vcmp.eq.s32.totalorder %v671_v6, 1  ;;  %v660_v23 = vrot.slane %v659_v18, 2 }
 0x602   :  { %v675_v8 = vsel %vm673_vm11, %v1084_v58, -inf }
 0x603   :  { %v677_v11 = vsel %vm1181_vm14, %v675_v8, -inf  ;;  %v661_v26 = vmax.f32 %v659_v18, %v660_v23 }
 0x604   :  { %v678_v12 = vmax.f32 %v676_v10, %v677_v11 }
 0x605   :  { %v662_v28 = vrot.slane %v661_v26, 1 }
 0x606   :  { %v679_v20 = vrot.slane %v678_v12, 4 }
 0x607   :  { %v663_v30 = vmax.f32 %v661_v26, %v662_v28 }
 0x608   :  { %v680_v22 = vmax.f32 %v678_v12, %v679_v20 }
 0x609   :  { %v665_v31 = vsel %vm664_vm15, %v663_v30, 0.0 }
 0x60a   :  { %v681_v25 = vrot.slane %v680_v22, 2 }
 0x60c   :  { %v682_v21 = vmax.f32 %v680_v22, %v681_v25 }
 0x60e   :  { %v683_v29 = vrot.slane %v682_v21, 1 }
 0x610   :  { %v684_v58 = vmax.f32 %v682_v21, %v683_v29 }
 0x612   :  { %v686_v32 = vsel %vm685_vm0, %v684_v58, %v665_v31 }
 0x613   :  { %v690_v34 = vsel %vm687_vm1, %v686_v32, 0.0 }
 0x623   :  { %v694_v35 = vpop.permute.xlu0 %693 }
 0x624   :  { %v696_v36 = vsel %vm1182_vm5, %v690_v34, %v694_v35 }
 0x625   :  { %v697_v37 = vadd.f32 %v696_v36, %v691_v33 }
 0x627   :  { %699 = vst.msk [vmem:[%s1173_s16] sm:$0x3] %vm698_vm2, %v697_v37 }

// kernel: net_forward.4
= control target key start
LH: loop header
LB: loop body
LE: loop exit
PB: predicated region body
PF: predicated region fallthrough
CT: control target
= control target key end

     0   :  { %vm76_vm0 = vcmask 64512   ;;  %v55_v0 = vlaneseq  ;;  %v777_v8 = vmov 0.0   ;;  %vm66_vm2 = vcmask 130048   ;;  %s1079_s4 = inlined_call_operand.vmem [shape: f32[16,1], index: 4, kind: input, shape index: {}]   ;;  %s1080_s8 = inlined_call_operand.vmem [shape: f32[8,32], index: 8, kind: input, shape index: {}]   ;;  %s1081_s3 = inlined_call_operand.vmem [shape: f32[16,8], index: 3, kind: input, shape index: {}]   ;;  %s1082_s0 = inlined_call_operand.vmem [shape: f32[16,16], index: 0, kind: input, shape index: {}]   ;;  %s1083_s9 = inlined_call_operand.vmem [shape: f32[1,32], index: 9, kind: input, shape index: {}]   ;;  %s1084_s10 = inlined_call_operand.vmem [shape: f32[1,32], index: 10, kind: input, shape index: {}]   ;;  %s1085_s12 = inlined_call_operand.vmem [shape: f32[16,32], index: 12, kind: output, shape index: {0}]   ;;  %s1086_s11 = inlined_call_operand.<no memory space> [shape: f32[1,1], index: 11, kind: input, shape index: {}]   ;;  %s1087_s13 = inlined_call_operand.vmem [shape: f32[16,1], index: 13, kind: output, shape index: {1}]   ;;  %s1088_s1 = inlined_call_operand.vmem [shape: s32[16,1], index: 1, kind: input, shape index: {}]   ;;  %s1089_s5 = inlined_call_operand.vmem [shape: f32[16,1], index: 5, kind: input, shape index: {}]   ;;  %s1090_s6 = inlined_call_operand.vmem [shape: f32[1,16], index: 6, kind: input, shape index: {}]   ;;  %s1091_s2 = inlined_call_operand.vmem [shape: s32[1,16], index: 2, kind: input, shape index: {}]   ;;  %s1092_s15 = inlined_call_operand.vmem [shape: f32[1,16], index: 15, kind: output, shape index: {3}]   ;;  %s1093_s14 = inlined_call_operand.vmem [shape: f32[16,1], index: 14, kind: output, shape index: {2}]   ;;  %s1094_s7 = inlined_call_operand.vmem [shape: f32[2,64], index: 7, kind: input, shape index: {}]   ;;  %s1095_s16 = inlined_call_operand.vmem [shape: f32[2,64], index: 16, kind: output, shape index: {4}]  }
   0x1   :  { %v75_v1 = vld [vmem:[%s1080_s8] sm:$0xff]  ;;  %v51_v3 = vld [vmem:[%s1081_s3 + $0x8] sm:$0xff]  ;;  %vm254_vm4 = vcmask 261120   ;;  %v22_v39 = vstv %s1086_s11  ;;  %v778_v45 = vmov 0   ;;  %vm360_vm5 = vcmask 7168  }
   0x2   :  { %v50_v2 = vld [vmem:[%s1081_s3] sm:$0xff]  ;;  %721 = vmatprep.subr.mxu0 %v75_v1  ;;  %v877_v4 = vshrl.u32 %v55_v0, 7  ;;  %v879_v5 = vand.u32 127, %v55_v0  ;;  %v49_v10 = vld [vmem:[%s1082_s0 + $0x8] sm:$0xff]  ;;  %23 = vst [vmem:[#allocation2] sm:$0x1] %v22_v39  ;;  %765 = vset.pattern.permute.xlu1 %v778_v45 }
   0x3   :  { %723 = vmatprep.mubr.msk.f32.mxu0 %vm76_vm0, %v50_v2  ;;  %722 = vmatpush3.msra.mxu0 %v75_v1  ;;  %v48_v6 = vld [vmem:[%s1082_s0] sm:$0xff]  ;;  %v364_v54 = vld [vmem:[%s1088_s1 + $0x8] sm:$0xff]  ;;  %v779_v59 = vmov 0.0|0.0   ;;  %vm780_vm6 = vmmov 0  }
   0x4   :  { %724 = vmatmul.mubr.msk.f32.vlgmr.msra.gmra.mrb[0].mxu0 %vm76_vm0, %v51_v3  ;;  %vm60_vm1 = vcmp.eq.s32.totalorder %v877_v4, %v879_v5  ;;  %v887_v7 = vadd.s32 8, %v877_v4  ;;  %v700_v26 = vld [vmem:[%s1083_s9] ss:$0 sm:$0xff]  ;;  %764 = vset.pattern.permute.xlu0 %v778_v45  ;;  %v960_v56 = vld [vmem:[%s1089_s5 + $0x8] sm:$0xff]  ;;  %v416_v60 = vsub.s32 0, %v877_v4  ;;  %vm449_vm9 = vcmp.lt.s32.totalorder %v877_v4, %v879_v5 }
   0x5   :  { %v62_v9 = vsel %vm60_vm1, 1.0, %v777_v8  ;;  %v701_v33 = vld [vmem:[%s1084_s10] ss:$0 sm:$0xff] }
   0x6   :  { %v64_v11 = vadd.f32 %v62_v9, %v48_v6  ;;  %vm61_vm3 = vcmp.eq.s32.totalorder %v887_v7, %v879_v5  ;;  %v363_v53 = vld [vmem:[%s1088_s1] sm:$0xff]  ;;  %vm450_vm12 = vcmp.lt.s32.totalorder %v887_v7, %v879_v5 }
   0x7   :  { %v63_v12 = vsel %vm61_vm3, 1.0, %v777_v8  ;;  %v954_v55 = vld [vmem:[%s1089_s5] sm:$0xff] }
   0x8   :  { %v67_v13 = vsel %vm66_vm2, %v64_v11, 0.0  ;;  %v65_v14 = vadd.f32 %v63_v12, %v49_v10  ;;  %730 = vmatprep.mubr.msk.f32.mxu1 %vm66_vm2, %v64_v11  ;;  %737 = vmatprep.mubr.msk.f32.mxu0 %vm66_vm2, %v64_v11  ;;  %v970_v62 = vld [vmem:[%s1090_s6] sm:$0x1] }
   0x9   :  { %68 = vadd.xlane.f32.xlu0 %v67_v13  ;;  %v704_v47 = vld [vmem:[#allocation2] ss:$0 sm:$0xff]  ;;  %v417_v9 = vrot.slane %v970_v62, %v416_v60 }
   0xa   :  { %v70_v15 = vsel %vm66_vm2, %v65_v14, 0.0  ;;  %v983_v3 = vld [vmem:[%s1091_s2] ss:$0 sm:$0xff] }
   0xd   :  { %71 = vadd.xlane.f32.xlu0 %v70_v15 }
  0x96   :  { %v69_v16 = vpop.xlane.xlu0 %68 }
  0x9a   :  { %v72_v17 = vpop.xlane.xlu0 %71 }
  0x9b   :  { %767 = vrsqrt.f32 %v72_v17 }
  0x9c   :  { %769 = vrsqrt.f32 %v69_v16 }
  0xa5   :  { %v768_v18 = vpop.eup %767 }
  0xa6   :  { %v770_v20 = vpop.eup %769 }
  0xd7   :  { %v725_v19 = vpop.f32.mrb[0].mxu0 }
  0xd8   :  { %v159_v21 = vmul.f32 %v768_v18, %v725_v19  ;;  %v149_v22 = vpop.f32.mrb[1].mxu0 }
  0xd9   :  { %v158_v23 = vmul.f32 %v770_v20, %v149_v22 }
  0xdb   :  { %v747_v24 = vpack.c.bf16 %v159_v21, %v158_v23 }
  0xdd   :  { %748 = vmatprep.subr.bf16.mxu1 %v747_v24 }
  0xde   :  { %750 = vmatpush3.bf16.msra.mxu1 %v747_v24 }
  0xdf   :  { %755 = vmatprep.subr.bf16.mxu1 %v779_v59 }
  0xe1   :  { %731 = vmatmul.mubr.msk.f32.vlgmr.msra.gmra.mrb[0].mxu1 %vm66_vm2, %v65_v14 }
  0xe2   :  { %744 = vmatprep.mubr.msk.f32.mxu1 %vm780_vm6, %v777_v8 }
 0x1b4   :  { %v732_v25 = vpop.f32.mrb[0].mxu1 }
 0x1b5   :  { %v242_v27 = vmul.f32 %v768_v18, %v732_v25  ;;  %v232_v28 = vpop.f32.mrb[1].mxu1 }
 0x1b6   :  { %v241_v29 = vmul.f32 %v770_v20, %v232_v28 }
 0x1b7   :  { %v251_v30 = vadd.f32 %v700_v26, %v242_v27 }
 0x1b8   :  { %v250_v31 = vadd.f32 %v700_v26, %v241_v29 }
 0x1b9   :  { %v910_v32 = vmax.f32 %v251_v30, 0.0 }
 0x1ba   :  { %v915_v34 = vmax.f32 %v250_v31, 0.0 }
 0x1bb   :  { %256 = vst.msk [vmem:[%s1085_s12 + $0x8] sm:$0xff] %vm254_vm4, %v910_v32  ;;  %v265_v37 = vmul.f32 %v701_v33, %v910_v32 }
 0x1bc   :  { %255 = vst.msk [vmem:[%s1085_s12] sm:$0xff] %vm254_vm4, %v915_v34  ;;  %v264_v35 = vmul.f32 %v701_v33, %v915_v34 }
 0x1bd   :  { %v269_v38 = vsel %vm254_vm4, %v265_v37, 0.0 }
 0x1be   :  { %v266_v36 = vsel %vm254_vm4, %v264_v35, 0.0 }
 0x1bf   :  { %267 = vadd.xlane.f32.xlu1 %v266_v36 }
 0x1c3   :  { %270 = vadd.xlane.f32.xlu1 %v269_v38 }
 0x24c   :  { %v268_v40 = vpop.xlane.xlu1 %267 }
 0x24d   :  { %v272_v42 = vmul.f32 %v770_v20, %v268_v40 }
 0x250   :  { %v271_v41 = vpop.xlane.xlu1 %270 }
 0x251   :  { %v273_v43 = vmul.f32 %v768_v18, %v271_v41 }
 0x253   :  { %v751_v44 = vpack.c.bf16 %v273_v43, %v272_v42 }
 0x255   :  { %752 = vmatprep.subr.bf16.mxu0 %v751_v44 }
 0x256   :  { %754 = vmatpush3.bf16.msra.mxu0 %v751_v44 }
 0x259   :  { %738 = vmatmul.mubr.msk.f32.vlgmr.msra.gmra.mrb[2].mxu0 %vm66_vm2, %v65_v14 }
 0x32c   :  { %v739_v46 = vpop.f32.mrb[2].mxu0 }
 0x32d   :  { %v350_v48 = vmul.f32 %v768_v18, %v739_v46  ;;  %v340_v49 = vpop.f32.mrb[3].mxu0 }
 0x32e   :  { %v349_v50 = vmul.f32 %v770_v20, %v340_v49 }
 0x32f   :  { %v359_v51 = vadd.f32 %v704_v47, %v350_v48 }
 0x330   :  { %v358_v52 = vadd.f32 %v704_v47, %v349_v50 }
 0x331   :  { %362 = vst.msk [vmem:[%s1087_s13 + $0x8] sm:$0xff] %vm360_vm5, %v359_v51  ;;  %387 = vperm.xlu1 %765, %v359_v51  }
 0x332   :  { %361 = vst.msk [vmem:[%s1087_s13] sm:$0xff] %vm360_vm5, %v358_v52  ;;  %382 = vperm.xlu0 %764, %v358_v52   ;;  %771 = vtanh.f32 %v358_v52 }
 0x333   :  { %773 = vtanh.f32 %v359_v51 }
 0x335   :  { %367 = vperm.xlu1 %765, %v363_v53  }
 0x339   :  { %370 = vperm.xlu1 %765, %v364_v54  }
 0x33c   :  { %v772_v57 = vpop.eup %771 }
 0x33d   :  { %459 = vperm.xlu1 %765, %v954_v55   ;;  %v774_v58 = vpop.eup %773 }
 0x341   :  { %464 = vperm.xlu1 %765, %v960_v56  }
 0x345   :  { %502 = vperm.xlu1 %765, %v772_v57  }
 0x349   :  { %507 = vperm.xlu1 %765, %v774_v58  }
 0x3b0   :  { %v965_v61 = vpop.permute.xlu1 %387 }
 0x3b1   :  { %v391_v63 = vsel %vm61_vm3, %v965_v61, 0.0  ;;  %v383_v0 = vpop.permute.xlu0 %382  ;;  %vm405_vm3 = vcmp.lt.s32.totalorder %v879_v5, %v877_v4 }
 0x3b2   :  { %v393_v1 = vsel %vm66_vm2, %v391_v63, 0.0  ;;  %v390_v2 = vsel %vm60_vm1, %v383_v0, 0.0 }
 0x3b3   :  { %v392_v6 = vsel %vm66_vm2, %v390_v2, 0.0 }
 0x3b4   :  { %v394_v10 = vadd.f32 %v393_v1, %v392_v6  ;;  %v989_v11 = vpop.permute.xlu1 %367 }
 0x3b5   :  { %vm376_vm7 = vcmp.eq.s32.totalorder %v989_v11, %v983_v3 }
 0x3b6   :  { %v395_v12 = vrot.slane %v394_v10, 4  ;;  %v378_v13 = vsel %vm376_vm7, 1.0, %v777_v8 }
 0x3b7   :  { %v419_v14 = vmul.f32 %v417_v9, %v378_v13 }
 0x3b8   :  { %v396_v15 = vadd.f32 %v395_v12, %v394_v10  ;;  %v994_v16 = vpop.permute.xlu1 %370 }
 0x3b9   :  { %vm377_vm8 = vcmp.eq.s32.totalorder %v994_v16, %v983_v3  ;;  %v429_v17 = vsel %vm66_vm2, %v419_v14, 0.0 }
 0x3ba   :  { %v397_v18 = vrot.slane %v396_v15, 2  ;;  %v379_v19 = vsel %vm377_vm8, 1.0, %v777_v8  ;;  %430 = vadd.xlane.f32.xlu1 %v429_v17 }
 0x3bb   :  { %v420_v20 = vmul.f32 %v417_v9, %v379_v19 }
 0x3bc   :  { %v398_v21 = vadd.f32 %v397_v18, %v396_v15  ;;  %v460_v22 = vpop.permute.xlu1 %459 }
 0x3bd   :  { %v432_v23 = vsel %vm66_vm2, %v420_v20, 0.0  ;;  %v467_v25 = vmul.f32 %v460_v22, %v378_v13 }
 0x3be   :  { %v399_v24 = vrot.slane %v398_v21, 1  ;;  %433 = vadd.xlane.f32.xlu0 %v432_v23 }
 0x3bf   :  { %v480_v29 = vsel %vm66_vm2, %v467_v25, 0.0 }
 0x3c0   :  { %v400_v26 = vadd.f32 %v399_v24, %v398_v21  ;;  %v465_v27 = vpop.permute.xlu1 %464 }
 0x3c1   :  { %v468_v28 = vmul.f32 %v465_v27, %v379_v19 }
 0x3c2   :  { %vm445_vm10 = vcmp.gt.f32.partialorder %v383_v0, %v400_v26  ;;  %vm447_vm11 = vcmp.eq.f32.partialorder %v383_v0, %v400_v26  ;;  %vm448_vm13 = vcmp.eq.f32.partialorder %v965_v61, %v400_v26  ;;  %vm446_vm15 = vcmp.gt.f32.partialorder %v965_v61, %v400_v26 }
 0x3c3   :  { %vm451_vm14 = vmand %vm447_vm11, %vm449_vm9  ;;  %v481_v30 = vsel %vm66_vm2, %v468_v28, 0.0  ;;  %vm403_vm1 = vcmp.eq.f32.partialorder %v400_v26, %v383_v0  ;;  %vm401_vm7 = vcmp.gt.f32.partialorder %v400_v26, %v383_v0  ;;  %vm404_vm9 = vcmp.eq.f32.partialorder %v400_v26, %v965_v61 }
 0x3c4   :  { %vm453_vm0 = vmor %vm445_vm10, %vm451_vm14  ;;  %v482_v31 = vadd.f32 %v481_v30, %v480_v29  ;;  %v503_v33 = vpop.permute.xlu1 %502  ;;  %vm406_vm11 = vcmp.lt.s32.totalorder %v879_v5, %v887_v7  ;;  %vm402_vm14 = vcmp.gt.f32.partialorder %v400_v26, %v965_v61 }
 0x3c5   :  { %v455_v35 = vsel %vm453_vm0, 1.0, %v777_v8  ;;  %vm452_vm6 = vmand %vm448_vm13, %vm450_vm12  ;;  %v1019_v43 = vmul.f32 %v503_v33, %v915_v34  ;;  %vm512_vm0 = vcmp.eq.s32.totalorder %v877_v4, %v983_v3 }
 0x3c6   :  { %v469_v36 = vmul.f32 %v467_v25, %v455_v35  ;;  %vm454_vm8 = vmor %vm446_vm15, %vm452_vm6  ;;  %v483_v37 = vrot.slane %v482_v31, 4  ;;  %v513_v12 = vsel %vm512_vm0, 1.0, %v777_v8  ;;  %vm661_vm0 = vcmp.eq.s32.totalorder %v877_v4, 1 }
 0x3c7   :  { %v456_v38 = vsel %vm454_vm8, 1.0, %v777_v8  ;;  %vm407_vm10 = vmand %vm403_vm1, %vm405_vm3  ;;  %vm496_vm3 = vcmask 122880   ;;  %vm601_vm8 = vcmp.eq.s32.totalorder %v989_v11, %v879_v5  ;;  %v781_v11 = vmov 1  }
 0x3c8   :  { %v471_v39 = vsel %vm66_vm2, %v469_v36, 0.0  ;;  %v470_v40 = vmul.f32 %v468_v28, %v456_v38  ;;  %v484_v41 = vadd.f32 %v483_v37, %v482_v31  ;;  %v508_v42 = vpop.permute.xlu1 %507  ;;  %vm409_vm12 = vmor %vm401_vm7, %vm407_vm10 }
 0x3c9   :  { %v1022_v44 = vmul.f32 %v508_v42, %v910_v32  ;;  %v411_v46 = vsel %vm409_vm12, 1.0, %v777_v8  ;;  %vm408_vm13 = vmand %vm404_vm9, %vm406_vm11  ;;  %vm602_vm9 = vcmp.eq.s32.totalorder %v994_v16, %v879_v5 }
 0x3ca   :  { %v472_v7 = vsel %vm66_vm2, %v470_v40, 0.0  ;;  %v485_v47 = vrot.slane %v484_v41, 2  ;;  %v421_v48 = vmul.f32 %v419_v14, %v411_v46  ;;  %vm410_vm15 = vmor %vm402_vm14, %vm408_vm13  ;;  %v604_v29 = vsel %vm602_vm9, 1.0, %v777_v8 }
 0x3cb   :  { %v473_v49 = vadd.f32 %v472_v7, %v471_v39  ;;  %v756_v50 = vpack.c.bf16 %v1022_v44, %v1019_v43  ;;  %v412_v51 = vsel %vm410_vm15, 1.0, %v777_v8  ;;  %vm640_vm15 = vcmp.eq.s32.totalorder %v877_v4, 0 }
 0x3cc   :  { %v486_v52 = vadd.f32 %v485_v47, %v484_v41  ;;  %v423_v34 = vsel %vm66_vm2, %v421_v48, 0.0  ;;  %v422_v53 = vmul.f32 %v420_v20, %v412_v51 }
 0x3cd   :  { %v474_v32 = vrot.slane %v473_v49, 4  ;;  %424 = vadd.xlane.f32.xlu0 %v423_v34  ;;  %757 = vmatpush3.bf16.msra.mxu1 %v756_v50 }
 0x3ce   :  { %v487_v54 = vrot.slane %v486_v52, 1  ;;  %v426_v57 = vsel %vm66_vm2, %v422_v53, 0.0 }
 0x3cf   :  { %v475_v58 = vadd.f32 %v474_v32, %v473_v49  ;;  %427 = vadd.xlane.f32.xlu1 %v426_v57 }
 0x3d0   :  { %v488_v59 = vadd.f32 %v487_v54, %v486_v52 }
 0x3d1   :  { %v476_v61 = vrot.slane %v475_v58, 2 }
 0x3d2   :  { %v489_v63 = vmul.f32 0.5, %v488_v59 }
 0x3d3   :  { %v477_v0 = vadd.f32 %v476_v61, %v475_v58 }
 0x3d4   :  { %v490_v2 = vceil.f32 %v489_v63 }
 0x3d5   :  { %v478_v1 = vrot.slane %v477_v0, 1 }
 0x3d7   :  { %v479_v6 = vadd.f32 %v478_v1, %v477_v0 }
 0x3d9   :  { %vm491_vm1 = vcmp.lt.f32.partialorder %v479_v6, %v490_v2  ;;  %v667_v2 = vld [vmem:[%s1094_s7] sm:$0x3] }
 0x3da   :  { %v492_v9 = vsel %vm491_vm1, 1.0, %v777_v8 }
 0x3db   :  { %v493_v10 = vmul.f32 %v492_v9, %v970_v62 }
 0x3dd   :  { %497 = vst.msk [vmem:[%s1092_s15] sm:$0x1] %vm496_vm3, %v493_v10  ;;  %v518_v13 = vrot.slane %v493_v10, %v416_v60  ;;  %vm674_vm3 = vcmask 517120  }
 0x3df   :  { %v520_v14 = vmul.f32 %v518_v13, %v513_v12 }
 0x3e1   :  { %745 = vmatmul.mubr.msk.f32.vlgmr.msra.gmra.mrb[2].mxu1 %vm66_vm2, %v520_v14  ;;  %vm521_vm2 = vcmask 123904  }
 0x3e2   :  { %v522_v25 = vsel %vm521_vm2, %v520_v14, 0.0 }
 0x447   :  { %v431_v15 = vpop.xlane.xlu1 %430 }
 0x448   :  { %v435_v17 = vmul.f32 0.5, %v431_v15 }
 0x44a   :  { %v437_v19 = vceil.f32 %v435_v17 }
 0x44b   :  { %v434_v3 = vpop.xlane.xlu0 %433 }
 0x44c   :  { %v436_v18 = vmul.f32 0.5, %v434_v3 }
 0x44e   :  { %v438_v21 = vceil.f32 %v436_v18 }
 0x45a   :  { %v425_v20 = vpop.xlane.xlu0 %424 }
 0x45b   :  { %vm439_vm6 = vcmp.lt.f32.partialorder %v425_v20, %v437_v19 }
 0x45c   :  { %v441_v62 = vsel %vm439_vm6, 1.0, %v777_v8  ;;  %v428_v22 = vpop.xlane.xlu1 %427 }
 0x45d   :  { %v443_v23 = vmul.f32 %v441_v62, %v954_v55  ;;  %vm440_vm7 = vcmp.lt.f32.partialorder %v428_v22, %v438_v21 }
 0x45e   :  { %v442_v24 = vsel %vm440_vm7, 1.0, %v777_v8 }
 0x45f   :  { %494 = vst.msk [vmem:[%s1093_s14] sm:$0xff] %vm360_vm5, %v443_v23  ;;  %v444_v60 = vmul.f32 %v442_v24, %v960_v56  ;;  %607 = vperm.xlu0 %764, %v443_v23   ;;  %v603_v56 = vsel %vm601_vm8, 1.0, %v777_v8 }
 0x461   :  { %495 = vst.msk [vmem:[%s1093_s14 + $0x8] sm:$0xff] %vm360_vm5, %v444_v60  ;;  %612 = vperm.xlu1 %765, %v444_v60   ;;  %s782_s14 = smov 32  }
 0x485   :  { %523 = vadd.xlane.f32.xlu1 %v522_v25 }
 0x4b4   :  { %v596_v55 = vpop.f32.mrb[2].mxu1 }
 0x4b5   :  { %v746_v26 = vpop.f32.mrb[3].mxu1 }
 0x4de   :  { %v608_v27 = vpop.permute.xlu0 %607 }
 0x4df   :  { %v615_v28 = vmul.f32 %v608_v27, %v603_v56 }
 0x4e0   :  { %v613_v30 = vpop.permute.xlu1 %612 }
 0x4e1   :  { %vm617_vm5 = vcmp.gt.f32.partialorder %v615_v28, 0.5  ;;  %v616_v31 = vmul.f32 %v613_v30, %v604_v29 }
 0x4e2   :  { %v619_v33 = vsel %vm617_vm5, 1, %v778_v45 }
 0x4e3   :  { %vm618_vm11 = vcmp.gt.f32.partialorder %v616_v31, 0.5  ;;  %622 = vperm.xlu0 %764, %v619_v33  }
 0x4e4   :  { %v620_v35 = vsel %vm618_vm11, 1, %v778_v45 }
 0x4e7   :  { %625 = vperm.xlu0 %764, %v620_v35  }
 0x4eb   :  { %766 = vset.pattern.permute.xlu0 %v781_v11 }
 0x4ec   :  { %643 = vperm.xlu0 %766, %v619_v33  }
 0x4f0   :  { %646 = vperm.xlu0 %766, %v620_v35  }
 0x512   :  { %v524_v5 = vpop.xlane.xlu1 %523 }
 0x513   :  { %v525_v16 = vmax.f32 %v524_v5, 1.0  ;;  %vm663_vm1 = vcmp.gt.f32.partialorder %v524_v5, 0.5 }
 0x515   :  { %775 = vrcp.f32 %v525_v16 }
 0x51f   :  { %v776_v36 = vpop.eup %775 }
 0x520   :  { %v600_v37 = vmul.f32 %v776_v36, %v596_v55 }
 0x522   :  { %669 = vrot.lane.b32.xlu0 %v600_v37, %s782_s14 }
 0x562   :  { %v623_v8 = vpop.permute.xlu0 %622 }
 0x563   :  { %vm627_vm14 = vcmp.eq.s32.totalorder %v623_v8, 1 }
 0x564   :  { %v629_v41 = vsel %vm627_vm14, %v1019_v43, -inf }
 0x565   :  { %v631_v48 = vsel %vm254_vm4, %v629_v41, -inf }
 0x566   :  { %v626_v38 = vpop.permute.xlu0 %625 }
 0x567   :  { %vm628_vm10 = vcmp.eq.s32.totalorder %v626_v38, 1 }
 0x568   :  { %v630_v40 = vsel %vm628_vm10, %v1022_v44, -inf }
 0x569   :  { %v632_v42 = vsel %vm254_vm4, %v630_v40, -inf }
 0x56a   :  { %v633_v49 = vmax.f32 %v631_v48, %v632_v42 }
 0x56b   :  { %v644_v39 = vpop.permute.xlu0 %643 }
 0x56c   :  { %vm648_vm12 = vcmp.eq.s32.totalorder %v644_v39, 1  ;;  %v634_v52 = vrot.slane %v633_v49, 4 }
 0x56d   :  { %v650_v46 = vsel %vm648_vm12, %v1019_v43, -inf }
 0x56e   :  { %v652_v50 = vsel %vm254_vm4, %v650_v46, -inf  ;;  %v635_v53 = vmax.f32 %v633_v49, %v634_v52 }
 0x56f   :  { %v647_v45 = vpop.permute.xlu0 %646 }
 0x570   :  { %vm649_vm13 = vcmp.eq.s32.totalorder %v647_v45, 1  ;;  %v636_v54 = vrot.slane %v635_v53, 2 }
 0x571   :  { %v651_v7 = vsel %vm649_vm13, %v1022_v44, -inf }
 0x572   :  { %v653_v47 = vsel %vm254_vm4, %v651_v7, -inf  ;;  %v637_v58 = vmax.f32 %v635_v53, %v636_v54 }
 0x573   :  { %v654_v51 = vmax.f32 %v652_v50, %v653_v47 }
 0x574   :  { %v638_v61 = vrot.slane %v637_v58, 1 }
 0x575   :  { %v655_v34 = vrot.slane %v654_v51, 4 }
 0x576   :  { %v639_v63 = vmax.f32 %v637_v58, %v638_v61 }
 0x577   :  { %v656_v32 = vmax.f32 %v654_v51, %v655_v34 }
 0x578   :  { %v641_v0 = vsel %vm640_vm15, %v639_v63, 0.0 }
 0x579   :  { %v657_v57 = vrot.slane %v656_v32, 2 }
 0x57b   :  { %v658_v59 = vmax.f32 %v656_v32, %v657_v57 }
 0x57d   :  { %v659_v43 = vrot.slane %v658_v59, 1 }
 0x57f   :  { %v660_v44 = vmax.f32 %v658_v59, %v659_v43 }
 0x581   :  { %v662_v1 = vsel %vm661_vm0, %v660_v44, %v641_v0 }
 0x582   :  { %v666_v6 = vsel %vm663_vm1, %v662_v1, 0.0 }
 0x594   :  { %v670_v9 = vpop.permute.xlu0 %669 }
 0x595   :  { %v672_v10 = vsel %vm254_vm4, %v666_v6, %v670_v9 }
 0x596   :  { %v673_v12 = vadd.f32 %v672_v10, %v667_v2 }
 0x598   :  { %675 = vst.msk [vmem:[%s1095_s16] sm:$0x3] %vm674_vm3, %v673_v12 }

</bundles_post_ra>
